<compile_context>
chip_gen: v7x
topology: tpu7x:2x2x1
jax: 0.10.0
libtpu: 0.0.40
codegen_flags: <defaults>
</compile_context>

<pallas_src>
import numpy as np
import jax
import jax.numpy as jnp
from jax.experimental import pallas as pl
from jax.experimental.pallas import tpu as pltpu


# ---------------------------------------------------------------------------
# Pallas kernel: TM images per grid step, each image is one flattened row.
# ---------------------------------------------------------------------------
def _make_kernel(num_layers, compute_dtype):
    def kernel(*refs):
        x_ref = refs[0]                                    # (TM, HW*C)
        w1_ref, c1_ref = refs[1], refs[2]
        layer_refs = [refs[3 + 2 * l: 5 + 2 * l] for l in range(num_layers)]
        wl_ref = refs[3 + 2 * num_layers]
        bl_ref = refs[4 + 2 * num_layers]
        out_ref = refs[5 + 2 * num_layers]                 # (TM, 1)

        def mm(h, w_ref):
            # MXU matmul in compute_dtype (bf16 on v6e/v7x), f32 accumulation.
            return jnp.dot(h.astype(compute_dtype), w_ref[...],
                           preferred_element_type=jnp.float32)

        # 1x1 reduce conv (block-diag folded, BN scale folded in) + shift + ReLU
        h = jnp.maximum(mm(x_ref[...], w1_ref) + c1_ref[...], 0.0)

        # each dilated 3x3 conv folded into a single (HW_in*Cr, HW_out*Cr) matmul
        for w_ref, c_ref in layer_refs:
            h = jnp.maximum(mm(h, w_ref) + c_ref[...], 0.0)

        # last 1x1 conv -> one scalar per image; broadcast happens in wrapper
        out_ref[...] = mm(h, wl_ref) + bl_ref[...]

    return kernel


# ---------------------------------------------------------------------------
# Host-side folding helpers (static numpy work, done once per trace)
# ---------------------------------------------------------------------------
def _build_selection(h_in, w_in, ksize=3, pad=1, dilation=2):
    """0/1 matrices S[t, p, q]: output position p of tap t reads input position q."""
    h_out = h_in + 2 * pad - dilation * (ksize - 1)
    w_out = w_in + 2 * pad - dilation * (ksize - 1)
    S = np.zeros((ksize * ksize, h_out * w_out, h_in * w_in), np.float32)
    for kh in range(ksize):
        for kw in range(ksize):
            t = kh * ksize + kw
            for i in range(h_out):
                for j in range(w_out):
                    ii = i + dilation * kh - pad
                    jj = j + dilation * kw - pad
                    if 0 <= ii < h_in and 0 <= jj < w_in:
                        S[t, i * w_out + j, ii * w_in + jj] = 1.0
    return S, h_out, w_out


def _fold_dilated(S, w_dil):
    """Fold 9 taps + weights into W[(q, c_in), (p, c_out)] = sum_t S[t,p,q]*K[t,c_in,c_out]."""
    w = np.asarray(w_dil, np.float32)                      # (Cr_out, Cr_in, 3, 3)
    cr_out, cr_in = w.shape[0], w.shape[1]
    K = np.transpose(w, (2, 3, 1, 0)).reshape(9, cr_in, cr_out)
    P, Q = S.shape[1], S.shape[2]
    W = np.einsum('tpq,tio->qipo', S, K).reshape(Q * cr_in, P * cr_out)
    return np.ascontiguousarray(W, np.float32)


def _bn_scale_shift(conv_bias, bn, eps=1e-5):
    """Per-channel scale (to fold into weights) and shift (conv bias + BN folded)."""
    gamma, beta, mean, var = (np.asarray(t, np.float32) for t in bn)
    a = gamma / np.sqrt(var + eps)
    c = (np.asarray(conv_bias, np.float32) - mean) * a + beta
    return a, c


# ---------------------------------------------------------------------------
# Parameters (inference-mode BN stats included)
# ---------------------------------------------------------------------------
def init_params(key, channel, reduction=16, num_layers=3):
    Cr = channel // reduction
    keys = iter(jax.random.split(key, 64))

    def nrm(shape, scale):
        return scale * jax.random.normal(next(keys), shape, jnp.float32)

    def bn_params():
        return (1.0 + nrm((Cr,), 0.1),                                   # gamma
                nrm((Cr,), 0.1),                                         # beta
                nrm((Cr,), 0.1),                                         # running_mean
                1.0 + 0.5 * jnp.abs(jax.random.normal(next(keys), (Cr,), jnp.float32)))  # running_var

    params = {
        'w_red': nrm((Cr, channel, 1, 1), 0.2),
        'b_red': nrm((Cr,), 0.1),
        'bn_red': bn_params(),
        'w_dil': [], 'b_dil': [], 'bn_dil': [],
        'w_last': nrm((1, Cr, 1, 1), 0.3),
        'b_last': nrm((1,), 0.1),
    }
    for _ in range(num_layers):
        params['w_dil'].append(nrm((Cr, Cr, 3, 3), 0.2))
        params['b_dil'].append(nrm((Cr,), 0.1))
        params['bn_dil'].append(bn_params())
    return params


# ---------------------------------------------------------------------------
# Forward wrapper
# ---------------------------------------------------------------------------
def spatial_attention_forward(x, params, num_layers=3,
                              compute_dtype=jnp.float32, block_batch=256):
    N, C, H, W = x.shape
    Cr = params['w_red'].shape[0]
    HW = H * W
    eps = 1e-5

    # ---- host-side weight folding ----
    a1, c1v = _bn_scale_shift(params['b_red'], params['bn_red'], eps)
    # 1x1 reduce conv as (C, Cr) matrix with BN scale folded into out-channels.
    w1_mat = np.asarray(params['w_red'], np.float32)[:, :, 0, 0].T * a1[None, :]
    # Block-diagonal per-position replication.  For C=64, Cr=4, HW=49 this is
    # ~2.5 MB (f32) / ~1.2 MB (bf16), resident in VMEM; matmul FLOPs are
    # negligible vs. the HBM stream of x.
    W1 = np.kron(np.eye(HW, dtype=np.float32), w1_mat)                    # (HW*C, HW*Cr)
    c1 = np.tile(c1v, HW).reshape(1, -1).astype(np.float32)

    folded = []
    h_cur, w_cur = H, W
    for l in range(num_layers):
        S, h_cur, w_cur = _build_selection(h_cur, w_cur)
        a, cv = _bn_scale_shift(params['b_dil'][l], params['bn_dil'][l], eps)
        # fold BN scale into the conv's output channels before folding taps
        w_scaled = np.asarray(params['w_dil'][l], np.float32) * a[:, None, None, None]
        Wd = _fold_dilated(S, w_scaled)
        c = np.tile(cv, h_cur * w_cur).reshape(1, -1).astype(np.float32)
        folded.append((Wd, c))

    # expand_as(x) is only shape-valid when the remaining spatial map is 1x1
    assert h_cur == 1 and w_cur == 1, \
        "SpatialAttention.forward requires the post-conv map to be 1x1 (H = W = 7)"

    wl = np.asarray(params['w_last'], np.float32)[:, :, 0, 0].T            # (Cr, 1)
    bl = np.asarray(params['b_last'], np.float32).reshape(1, 1)

    # ---- layout: NCHW -> (N, HW*C), position-major / channel-minor rows ----
    x_flat = jnp.transpose(x, (0, 2, 3, 1)).reshape(N, HW * C).astype(compute_dtype)

    # pad batch to a multiple of 8 (sublane alignment) and tile TM images per step
    N8 = ((N + 7) // 8) * 8
    TM = min(N8, block_batch)
    Np = ((N8 + TM - 1) // TM) * TM
    if Np != N:
        x_flat = jnp.pad(x_flat, ((0, Np - N), (0, 0)))

    operands = [x_flat]
    in_specs = [pl.BlockSpec((TM, HW * C), lambda n: (n, 0))]

    def add_operand(arr, dtype):
        operands.append(jnp.asarray(arr, dtype))
        # constant index_map -> DMA'd once, stays resident across the grid
        in_specs.append(pl.BlockSpec(arr.shape, lambda n: (0, 0)))

    add_operand(W1, compute_dtype)
    add_operand(c1, jnp.float32)
    for Wd, c in folded:
        add_operand(Wd, compute_dtype)
        add_operand(c, jnp.float32)
    add_operand(wl, compute_dtype)
    add_operand(bl, jnp.float32)

    res = pl.pallas_call(
        _make_kernel(num_layers, compute_dtype),
        out_shape=jax.ShapeDtypeStruct((Np, 1), jnp.float32),
        grid=(Np // TM,),
        in_specs=in_specs,
        out_specs=pl.BlockSpec((TM, 1), lambda n: (n, 0)),
        compiler_params=pltpu.CompilerParams(
            dimension_semantics=("parallel",)),
    )(*operands)

    # res.expand_as(x): broadcast the per-image scalar in the wrapper so the
    # kernel writes only N scalars; XLA fuses this into downstream consumers.
    return jnp.broadcast_to(res[:N].reshape(N, 1, 1, 1), x.shape)


# ---------------------------------------------------------------------------
# Pure-JAX reference (verification only)
# ---------------------------------------------------------------------------
def spatial_attention_reference(x, params, num_layers=3):
    eps = 1e-5
    dn = ('NCHW', 'OIHW', 'NCHW')

    def bn(h, bn_p):
        g, b, m, v = (t[None, :, None, None] for t in bn_p)
        return g * (h - m) * jax.lax.rsqrt(v + eps) + b

    h = jax.lax.conv_general_dilated(x, params['w_red'], (1, 1), 'VALID',
                                     dimension_numbers=dn)
    h = h + params['b_red'][None, :, None, None]
    h = jax.nn.relu(bn(h, params['bn_red']))
    for l in range(num_layers):
        h = jax.lax.conv_general_dilated(h, params['w_dil'][l], (1, 1),
                                         ((1, 1), (1, 1)), rhs_dilation=(2, 2),
                                         dimension_numbers=dn)
        h = h + params['b_dil'][l][None, :, None, None]
        h = jax.nn.relu(bn(h, params['bn_dil'][l]))
    h = jax.lax.conv_general_dilated(h, params['w_last'], (1, 1), 'VALID',
                                     dimension_numbers=dn)
    h = h + params['b_last'][None, :, None, None]
    return jnp.broadcast_to(h, x.shape)     # res.expand_as(x)


if __name__ == "__main__":
    key = jax.random.PRNGKey(0)
    k_x, k_p = jax.random.split(key)

    # channel=64, reduction=16 -> C//r = 4; 7x7 spatial -> 1x1 after 3 dilated convs
    N, C, H, W = 2, 64, 7, 7
    x = jax.random.normal(k_x, (N, C, H, W), jnp.float32)
    params = init_params(k_p, C, reduction=16, num_layers=3)

    ref = jax.block_until_ready(spatial_attention_reference(x, params))

    # f32 compute path (tight check)
    out = jax.block_until_ready(
        spatial_attention_forward(x, params, compute_dtype=jnp.float32))
    err = float(jnp.max(jnp.abs(out - ref)))
    if err > 1e-3:
        raise AssertionError(f"f32 mismatch vs reference: max abs err = {err}")

    # bf16 MXU path (native on v6e/v7x), f32 accumulation; looser tolerance
    out_bf16 = jax.block_until_ready(
        spatial_attention_forward(x, params, compute_dtype=jnp.bfloat16))
    ref_mag = float(jnp.max(jnp.abs(ref)))
    err_bf16 = float(jnp.max(jnp.abs(out_bf16 - ref)))
    if err_bf16 > 0.1 * ref_mag + 0.1:
        raise AssertionError(f"bf16 mismatch vs reference: max abs err = {err_bf16}")

    print("KERNEL_OK")
</pallas_src>

<mosaic_0001>
module attributes {stable_mosaic.version = 11 : i64} {
  func.func @kernel(%arg0: i32, %arg1: memref<8x3136xf32, #tpu.memory_space<vmem>>, %arg2: memref<3136x196xf32, #tpu.memory_space<vmem>>, %arg3: memref<1x196xf32, #tpu.memory_space<vmem>>, %arg4: memref<196x100xf32, #tpu.memory_space<vmem>>, %arg5: memref<1x100xf32, #tpu.memory_space<vmem>>, %arg6: memref<100x36xf32, #tpu.memory_space<vmem>>, %arg7: memref<1x36xf32, #tpu.memory_space<vmem>>, %arg8: memref<36x4xf32, #tpu.memory_space<vmem>>, %arg9: memref<1x4xf32, #tpu.memory_space<vmem>>, %arg10: memref<4x1xf32, #tpu.memory_space<vmem>>, %arg11: memref<1x1xf32, #tpu.memory_space<vmem>>, %arg12: memref<8x1xf32, #tpu.memory_space<vmem>>) attributes {dimension_semantics = [#tpu.dimension_semantics<parallel>], iteration_bounds = array<i64: 1>, scalar_prefetch = 0 : i64, scratch_operands = 0 : i64, tpu.core_type = #tpu.core_type<tc>, window_params = [{transform_indices = @transform_0, window_bounds = array<i64: 8, 3136>}, {pipeline_mode = #tpu.pipeline_mode<synchronous>, transform_indices = @transform_1, window_bounds = array<i64: 3136, 196>}, {pipeline_mode = #tpu.pipeline_mode<synchronous>, transform_indices = @transform_2, window_bounds = array<i64: 1, 196>}, {pipeline_mode = #tpu.pipeline_mode<synchronous>, transform_indices = @transform_3, window_bounds = array<i64: 196, 100>}, {pipeline_mode = #tpu.pipeline_mode<synchronous>, transform_indices = @transform_4, window_bounds = array<i64: 1, 100>}, {pipeline_mode = #tpu.pipeline_mode<synchronous>, transform_indices = @transform_5, window_bounds = array<i64: 100, 36>}, {pipeline_mode = #tpu.pipeline_mode<synchronous>, transform_indices = @transform_6, window_bounds = array<i64: 1, 36>}, {pipeline_mode = #tpu.pipeline_mode<synchronous>, transform_indices = @transform_7, window_bounds = array<i64: 36, 4>}, {pipeline_mode = #tpu.pipeline_mode<synchronous>, transform_indices = @transform_8, window_bounds = array<i64: 1, 4>}, {pipeline_mode = #tpu.pipeline_mode<synchronous>, transform_indices = @transform_9, window_bounds = array<i64: 4, 1>}, {pipeline_mode = #tpu.pipeline_mode<synchronous>, transform_indices = @transform_10, window_bounds = array<i64: 1, 1>}, {transform_indices = @transform_11, window_bounds = array<i64: 8, 1>}]} {
    %c0 = arith.constant 0 : index
    %c0_0 = arith.constant 0 : index
    %0 = vector.load %arg1[%c0, %c0_0] : memref<8x3136xf32, #tpu.memory_space<vmem>>, vector<8x3136xf32>
    %c0_1 = arith.constant 0 : index
    %c0_2 = arith.constant 0 : index
    %1 = vector.load %arg2[%c0_1, %c0_2] : memref<3136x196xf32, #tpu.memory_space<vmem>>, vector<3136x196xf32>
    %cst = arith.constant dense<0.000000e+00> : vector<8x196xf32>
    %2 = tpu.matmul %0, %1, %cst {dimension_numbers = #tpu.dot_dimension_numbers<[1], [0], [0], [1], [0, 0, 1, 1], [], []>} : vector<8x3136xf32>, vector<3136x196xf32>, vector<8x196xf32> -> vector<8x196xf32>
    %c0_3 = arith.constant 0 : index
    %c0_4 = arith.constant 0 : index
    %3 = vector.load %arg3[%c0_3, %c0_4] : memref<1x196xf32, #tpu.memory_space<vmem>>, vector<1x196xf32>
    %4 = vector.broadcast %3 : vector<1x196xf32> to vector<8x196xf32>
    %5 = arith.addf %2, %4 : vector<8x196xf32>
    %cst_5 = arith.constant 0.000000e+00 : f32
    %6 = vector.broadcast %cst_5 : f32 to vector<8x196xf32>
    %7 = arith.maximumf %5, %6 : vector<8x196xf32>
    %c0_6 = arith.constant 0 : index
    %c0_7 = arith.constant 0 : index
    %8 = vector.load %arg4[%c0_6, %c0_7] : memref<196x100xf32, #tpu.memory_space<vmem>>, vector<196x100xf32>
    %cst_8 = arith.constant dense<0.000000e+00> : vector<8x100xf32>
    %9 = tpu.matmul %7, %8, %cst_8 {dimension_numbers = #tpu.dot_dimension_numbers<[1], [0], [0], [1], [0, 0, 1, 1], [], []>} : vector<8x196xf32>, vector<196x100xf32>, vector<8x100xf32> -> vector<8x100xf32>
    %c0_9 = arith.constant 0 : index
    %c0_10 = arith.constant 0 : index
    %10 = vector.load %arg5[%c0_9, %c0_10] : memref<1x100xf32, #tpu.memory_space<vmem>>, vector<1x100xf32>
    %11 = vector.broadcast %10 : vector<1x100xf32> to vector<8x100xf32>
    %12 = arith.addf %9, %11 : vector<8x100xf32>
    %cst_11 = arith.constant 0.000000e+00 : f32
    %13 = vector.broadcast %cst_11 : f32 to vector<8x100xf32>
    %14 = arith.maximumf %12, %13 : vector<8x100xf32>
    %c0_12 = arith.constant 0 : index
    %c0_13 = arith.constant 0 : index
    %15 = vector.load %arg6[%c0_12, %c0_13] : memref<100x36xf32, #tpu.memory_space<vmem>>, vector<100x36xf32>
    %cst_14 = arith.constant dense<0.000000e+00> : vector<8x36xf32>
    %16 = tpu.matmul %14, %15, %cst_14 {dimension_numbers = #tpu.dot_dimension_numbers<[1], [0], [0], [1], [0, 0, 1, 1], [], []>} : vector<8x100xf32>, vector<100x36xf32>, vector<8x36xf32> -> vector<8x36xf32>
    %c0_15 = arith.constant 0 : index
    %c0_16 = arith.constant 0 : index
    %17 = vector.load %arg7[%c0_15, %c0_16] : memref<1x36xf32, #tpu.memory_space<vmem>>, vector<1x36xf32>
    %18 = vector.broadcast %17 : vector<1x36xf32> to vector<8x36xf32>
    %19 = arith.addf %16, %18 : vector<8x36xf32>
    %cst_17 = arith.constant 0.000000e+00 : f32
    %20 = vector.broadcast %cst_17 : f32 to vector<8x36xf32>
    %21 = arith.maximumf %19, %20 : vector<8x36xf32>
    %c0_18 = arith.constant 0 : index
    %c0_19 = arith.constant 0 : index
    %22 = vector.load %arg8[%c0_18, %c0_19] : memref<36x4xf32, #tpu.memory_space<vmem>>, vector<36x4xf32>
    %cst_20 = arith.constant dense<0.000000e+00> : vector<8x4xf32>
    %23 = tpu.matmul %21, %22, %cst_20 {dimension_numbers = #tpu.dot_dimension_numbers<[1], [0], [0], [1], [0, 0, 1, 1], [], []>} : vector<8x36xf32>, vector<36x4xf32>, vector<8x4xf32> -> vector<8x4xf32>
    %c0_21 = arith.constant 0 : index
    %c0_22 = arith.constant 0 : index
    %24 = vector.load %arg9[%c0_21, %c0_22] : memref<1x4xf32, #tpu.memory_space<vmem>>, vector<1x4xf32>
    %25 = vector.broadcast %24 : vector<1x4xf32> to vector<8x4xf32>
    %26 = arith.addf %23, %25 : vector<8x4xf32>
    %cst_23 = arith.constant 0.000000e+00 : f32
    %27 = vector.broadcast %cst_23 : f32 to vector<8x4xf32>
    %28 = arith.maximumf %26, %27 : vector<8x4xf32>
    %c0_24 = arith.constant 0 : index
    %c0_25 = arith.constant 0 : index
    %29 = vector.load %arg10[%c0_24, %c0_25] : memref<4x1xf32, #tpu.memory_space<vmem>>, vector<4x1xf32>
    %cst_26 = arith.constant dense<0.000000e+00> : vector<8x1xf32>
    %30 = tpu.matmul %28, %29, %cst_26 {dimension_numbers = #tpu.dot_dimension_numbers<[1], [0], [0], [1], [0, 0, 1, 1], [], []>} : vector<8x4xf32>, vector<4x1xf32>, vector<8x1xf32> -> vector<8x1xf32>
    %c0_27 = arith.constant 0 : index
    %c0_28 = arith.constant 0 : index
    %31 = vector.load %arg11[%c0_27, %c0_28] : memref<1x1xf32, #tpu.memory_space<vmem>>, vector<1x1xf32>
    %32 = vector.broadcast %31 : vector<1x1xf32> to vector<8x1xf32>
    %33 = arith.addf %30, %32 : vector<8x1xf32>
    %c0_29 = arith.constant 0 : index
    %c0_30 = arith.constant 0 : index
    %34 = vector.load %arg12[%c0_29, %c0_30] : memref<8x1xf32, #tpu.memory_space<vmem>>, vector<8x1xf32>
    tpu.vector_store %arg12[%c0_29, %c0_30], %33 {strides = array<i32>} : memref<8x1xf32, #tpu.memory_space<vmem>>, vector<8x1xf32>,
    return
  }
  func.func @transform_0(%arg0: i32) -> (i32, i32) {
    %c0_i32 = arith.constant 0 : i32
    %c0_i32_0 = arith.constant 0 : i32
    return %arg0, %c0_i32 : i32, i32
  }
  func.func @transform_1(%arg0: i32) -> (i32, i32) {
    %c0_i32 = arith.constant 0 : i32
    %c0_i32_0 = arith.constant 0 : i32
    %c0_i32_1 = arith.constant 0 : i32
    return %c0_i32, %c0_i32_0 : i32, i32
  }
  func.func @transform_2(%arg0: i32) -> (i32, i32) {
    %c0_i32 = arith.constant 0 : i32
    %c0_i32_0 = arith.constant 0 : i32
    %c0_i32_1 = arith.constant 0 : i32
    return %c0_i32, %c0_i32_0 : i32, i32
  }
  func.func @transform_3(%arg0: i32) -> (i32, i32) {
    %c0_i32 = arith.constant 0 : i32
    %c0_i32_0 = arith.constant 0 : i32
    %c0_i32_1 = arith.constant 0 : i32
    return %c0_i32, %c0_i32_0 : i32, i32
  }
  func.func @transform_4(%arg0: i32) -> (i32, i32) {
    %c0_i32 = arith.constant 0 : i32
    %c0_i32_0 = arith.constant 0 : i32
    %c0_i32_1 = arith.constant 0 : i32
    return %c0_i32, %c0_i32_0 : i32, i32
  }
  func.func @transform_5(%arg0: i32) -> (i32, i32) {
    %c0_i32 = arith.constant 0 : i32
    %c0_i32_0 = arith.constant 0 : i32
    %c0_i32_1 = arith.constant 0 : i32
    return %c0_i32, %c0_i32_0 : i32, i32
  }
  func.func @transform_6(%arg0: i32) -> (i32, i32) {
    %c0_i32 = arith.constant 0 : i32
    %c0_i32_0 = arith.constant 0 : i32
    %c0_i32_1 = arith.constant 0 : i32
    return %c0_i32, %c0_i32_0 : i32, i32
  }
  func.func @transform_7(%arg0: i32) -> (i32, i32) {
    %c0_i32 = arith.constant 0 : i32
    %c0_i32_0 = arith.constant 0 : i32
    %c0_i32_1 = arith.constant 0 : i32
    return %c0_i32, %c0_i32_0 : i32, i32
  }
  func.func @transform_8(%arg0: i32) -> (i32, i32) {
    %c0_i32 = arith.constant 0 : i32
    %c0_i32_0 = arith.constant 0 : i32
    %c0_i32_1 = arith.constant 0 : i32
    return %c0_i32, %c0_i32_0 : i32, i32
  }
  func.func @transform_9(%arg0: i32) -> (i32, i32) {
    %c0_i32 = arith.constant 0 : i32
    %c0_i32_0 = arith.constant 0 : i32
    %c0_i32_1 = arith.constant 0 : i32
    return %c0_i32, %c0_i32_0 : i32, i32
  }
  func.func @transform_10(%arg0: i32) -> (i32, i32) {
    %c0_i32 = arith.constant 0 : i32
    %c0_i32_0 = arith.constant 0 : i32
    %c0_i32_1 = arith.constant 0 : i32
    return %c0_i32, %c0_i32_0 : i32, i32
  }
  func.func @transform_11(%arg0: i32) -> (i32, i32) {
    %c0_i32 = arith.constant 0 : i32
    %c0_i32_0 = arith.constant 0 : i32
    return %arg0, %c0_i32 : i32, i32
  }
}

</mosaic_0001>

<bundles_post_ra>
// kernel: tpu_custom_call.1
= control target key start
LH: loop header
LB: loop body
LE: loop exit
PB: predicated region body
PF: predicated region fallthrough
CT: control target
= control target key end

     0   :  { %vm861_vm0 = vcmask 523264   ;;  %vm1826_vm1 = vcmask 1043456   ;;  %vm1822_vm2 = vcmask 556032   ;;  %vm3137_vm3 = vmmov 0   ;;  %s5810_s1 = inlined_call_operand.vmem [shape: f32[3136,196], index: 1, kind: input, shape index: {}]   ;;  %s5811_s0 = inlined_call_operand.vmem [shape: f32[8,3136], index: 0, kind: input, shape index: {}]   ;;  %s5812_s3 = inlined_call_operand.vmem [shape: f32[196,100], index: 3, kind: input, shape index: {}]   ;;  %s5813_s2 = inlined_call_operand.vmem [shape: f32[1,196], index: 2, kind: input, shape index: {}]   ;;  %s5814_s5 = inlined_call_operand.vmem [shape: f32[100,36], index: 5, kind: input, shape index: {}]   ;;  %s5815_s4 = inlined_call_operand.vmem [shape: f32[1,100], index: 4, kind: input, shape index: {}]   ;;  %s5816_s7 = inlined_call_operand.vmem [shape: f32[36,4], index: 7, kind: input, shape index: {}]   ;;  %s5817_s6 = inlined_call_operand.vmem [shape: f32[1,36], index: 6, kind: input, shape index: {}]   ;;  %s5818_s9 = inlined_call_operand.vmem [shape: f32[4,1], index: 9, kind: input, shape index: {}]   ;;  %s5819_s10 = inlined_call_operand.<no memory space> [shape: f32[1,1], index: 10, kind: input, shape index: {}]   ;;  %s5820_s8 = inlined_call_operand.vmem [shape: f32[1,4], index: 8, kind: input, shape index: {}]   ;;  %s5821_s11 = inlined_call_operand.vmem [shape: f32[8,1], index: 11, kind: output, shape index: {}]  }
   0x1   :  { %v66_v0 = vld [vmem:[%s5810_s1 + $0x8] sm:$0xff]  ;;  %v68_v1 = vld [vmem:[%s5810_s1 + $0x18] sm:$0xff]  ;;  %v65_v5 = vld [vmem:[%s5810_s1] sm:$0xff]  ;;  %vm1921_vm4 = vcmask 818176   ;;  %vm2011_vm5 = vcmask 293888   ;;  %vm2097_vm6 = vcmask 31744  }
   0x2   :  { %v386_v2 = vld [vmem:[%s5810_s1 + $0xa08] sm:$0xff]  ;;  %v2262_v3 = vpack.c.bf16 %v68_v1, %v66_v0  ;;  %v388_v4 = vld [vmem:[%s5810_s1 + $0xa18] sm:$0xff]  ;;  %v67_v6 = vld [vmem:[%s5810_s1 + $0x10] sm:$0xff]  ;;  %vm2174_vm7 = vcmask 7168  }
   0x3   :  { %v2582_v7 = vpack.c.bf16 %v388_v4, %v386_v2  ;;  %v2264_v8 = vpack.c.bf16 %v67_v6, %v65_v5  ;;  %v385_v9 = vld [vmem:[%s5810_s1 + $0xa00] sm:$0xff]  ;;  %v387_v10 = vld [vmem:[%s5810_s1 + $0xa10] sm:$0xff]  ;;  %v70_v11 = vld [vmem:[%s5810_s1 + $0x28] sm:$0xff] }
   0x4   :  { %2263 = vmatprep.subr.bf16.mxu1 %v2262_v3  ;;  %v2584_v12 = vpack.c.bf16 %v387_v10, %v385_v9  ;;  %v72_v13 = vld [vmem:[%s5810_s1 + $0x38] sm:$0xff]  ;;  %v390_v14 = vld [vmem:[%s5810_s1 + $0xa28] sm:$0xff]  ;;  %v69_v18 = vld [vmem:[%s5810_s1 + $0x20] sm:$0xff] }
   0x5   :  { %v392_v15 = vld [vmem:[%s5810_s1 + $0xa38] sm:$0xff]  ;;  %2583 = vmatprep.subr.bf16.mxu0 %v2582_v7  ;;  %2265 = vmatpush1.bf16.msra.mxu1 %v2264_v8  ;;  %v2266_v16 = vpack.c.bf16 %v72_v13, %v70_v11  ;;  %v71_v19 = vld [vmem:[%s5810_s1 + $0x30] sm:$0xff]  ;;  %v389_v20 = vld [vmem:[%s5810_s1 + $0xa20] sm:$0xff] }
   0x6   :  { %v2586_v17 = vpack.c.bf16 %v392_v15, %v390_v14  ;;  %2585 = vmatpush1.bf16.msra.mxu0 %v2584_v12  ;;  %v2268_v21 = vpack.c.bf16 %v71_v19, %v69_v18  ;;  %v391_v22 = vld [vmem:[%s5810_s1 + $0xa30] sm:$0xff]  ;;  %v74_v23 = vld [vmem:[%s5810_s1 + $0x48] sm:$0xff]  ;;  %v76_v24 = vld [vmem:[%s5810_s1 + $0x58] sm:$0xff] }
   0x7   :  { %2267 = vmatprep.subr.bf16.mxu1 %v2266_v16  ;;  %v2588_v25 = vpack.c.bf16 %v391_v22, %v389_v20  ;;  %v2270_v26 = vpack.c.bf16 %v76_v24, %v74_v23  ;;  %v394_v27 = vld [vmem:[%s5810_s1 + $0xa48] sm:$0xff]  ;;  %v396_v28 = vld [vmem:[%s5810_s1 + $0xa58] sm:$0xff]  ;;  %v73_v29 = vld [vmem:[%s5810_s1 + $0x40] sm:$0xff] }
   0x8   :  { %2587 = vmatprep.subr.bf16.mxu0 %v2586_v17  ;;  %v2590_v30 = vpack.c.bf16 %v396_v28, %v394_v27  ;;  %v75_v31 = vld [vmem:[%s5810_s1 + $0x50] sm:$0xff]  ;;  %v393_v32 = vld [vmem:[%s5810_s1 + $0xa40] sm:$0xff]  ;;  %v78_v35 = vld [vmem:[%s5810_s1 + $0x68] sm:$0xff] }
   0x9   :  { %v395_v33 = vld [vmem:[%s5810_s1 + $0xa50] sm:$0xff]  ;;  %2269 = vmatpush1.bf16.msra.mxu1 %v2268_v21  ;;  %v2272_v34 = vpack.c.bf16 %v75_v31, %v73_v29  ;;  %v80_v36 = vld [vmem:[%s5810_s1 + $0x78] sm:$0xff]  ;;  %v398_v37 = vld [vmem:[%s5810_s1 + $0xa68] sm:$0xff] }
   0xa   :  { %2589 = vmatpush1.bf16.msra.mxu0 %v2588_v25  ;;  %2271 = vmatprep.subr.bf16.mxu1 %v2270_v26  ;;  %v2592_v38 = vpack.c.bf16 %v395_v33, %v393_v32  ;;  %v2274_v39 = vpack.c.bf16 %v80_v36, %v78_v35  ;;  %v400_v40 = vld [vmem:[%s5810_s1 + $0xa78] sm:$0xff]  ;;  %v77_v41 = vld [vmem:[%s5810_s1 + $0x60] sm:$0xff]  ;;  %v79_v42 = vld [vmem:[%s5810_s1 + $0x70] sm:$0xff] }
   0xb   :  { %2591 = vmatprep.subr.bf16.mxu0 %v2590_v30  ;;  %v2594_v43 = vpack.c.bf16 %v400_v40, %v398_v37  ;;  %v397_v44 = vld [vmem:[%s5810_s1 + $0xa60] sm:$0xff]  ;;  %v399_v45 = vld [vmem:[%s5810_s1 + $0xa70] sm:$0xff]  ;;  %v82_v46 = vld [vmem:[%s5810_s1 + $0x88] sm:$0xff]  ;;  %v2276_v50 = vpack.c.bf16 %v79_v42, %v77_v41 }
   0xc   :  { %v84_v47 = vld [vmem:[%s5810_s1 + $0x98] sm:$0xff]  ;;  %v402_v48 = vld [vmem:[%s5810_s1 + $0xa88] sm:$0xff]  ;;  %v2596_v51 = vpack.c.bf16 %v399_v45, %v397_v44  ;;  %v81_v53 = vld [vmem:[%s5810_s1 + $0x80] sm:$0xff] }
   0xd   :  { %v404_v49 = vld [vmem:[%s5810_s1 + $0xa98] sm:$0xff]  ;;  %2273 = vmatpush1.bf16.msra.mxu1 %v2272_v34  ;;  %v2278_v52 = vpack.c.bf16 %v84_v47, %v82_v46  ;;  %v83_v54 = vld [vmem:[%s5810_s1 + $0x90] sm:$0xff]  ;;  %v401_v55 = vld [vmem:[%s5810_s1 + $0xa80] sm:$0xff] }
   0xe   :  { %2593 = vmatpush1.bf16.msra.mxu0 %v2592_v38  ;;  %2275 = vmatprep.subr.bf16.mxu1 %v2274_v39  ;;  %v2598_v56 = vpack.c.bf16 %v404_v49, %v402_v48  ;;  %v403_v57 = vld [vmem:[%s5810_s1 + $0xa90] sm:$0xff]  ;;  %v86_v58 = vld [vmem:[%s5810_s1 + $0xa8] sm:$0xff]  ;;  %v88_v59 = vld [vmem:[%s5810_s1 + $0xb8] sm:$0xff]  ;;  %v2280_v62 = vpack.c.bf16 %v83_v54, %v81_v53 }
   0xf   :  { %2595 = vmatprep.subr.bf16.mxu0 %v2594_v43  ;;  %v406_v60 = vld [vmem:[%s5810_s1 + $0xaa8] sm:$0xff]  ;;  %v408_v61 = vld [vmem:[%s5810_s1 + $0xab8] sm:$0xff]  ;;  %v2600_v63 = vpack.c.bf16 %v403_v57, %v401_v55  ;;  %v2282_v0 = vpack.c.bf16 %v88_v59, %v86_v58  ;;  %v85_v1 = vld [vmem:[%s5810_s1 + $0xa0] sm:$0xff] }
  0x10   :  { %v87_v2 = vld [vmem:[%s5810_s1 + $0xb0] sm:$0xff]  ;;  %v405_v3 = vld [vmem:[%s5810_s1 + $0xaa0] sm:$0xff]  ;;  %v2602_v4 = vpack.c.bf16 %v408_v61, %v406_v60  ;;  %v90_v6 = vld [vmem:[%s5810_s1 + $0xc8] sm:$0xff] }
  0x11   :  { %2277 = vmatpush1.bf16.msra.mxu1 %v2276_v50  ;;  %v407_v5 = vld [vmem:[%s5810_s1 + $0xab0] sm:$0xff]  ;;  %v92_v7 = vld [vmem:[%s5810_s1 + $0xd8] sm:$0xff]  ;;  %v410_v8 = vld [vmem:[%s5810_s1 + $0xac8] sm:$0xff]  ;;  %v2284_v10 = vpack.c.bf16 %v87_v2, %v85_v1 }
  0x12   :  { %2597 = vmatpush1.bf16.msra.mxu0 %v2596_v51  ;;  %2279 = vmatprep.subr.bf16.mxu1 %v2278_v52  ;;  %v412_v9 = vld [vmem:[%s5810_s1 + $0xad8] sm:$0xff]  ;;  %v2604_v11 = vpack.c.bf16 %v407_v5, %v405_v3  ;;  %v2286_v12 = vpack.c.bf16 %v92_v7, %v90_v6  ;;  %v89_v13 = vld [vmem:[%s5810_s1 + $0xc0] sm:$0xff]  ;;  %v91_v14 = vld [vmem:[%s5810_s1 + $0xd0] sm:$0xff] }
  0x13   :  { %2599 = vmatprep.subr.bf16.mxu0 %v2598_v56  ;;  %v409_v15 = vld [vmem:[%s5810_s1 + $0xac0] sm:$0xff]  ;;  %v2606_v16 = vpack.c.bf16 %v412_v9, %v410_v8  ;;  %v411_v17 = vld [vmem:[%s5810_s1 + $0xad0] sm:$0xff]  ;;  %v94_v18 = vld [vmem:[%s5810_s1 + $0xe8] sm:$0xff]  ;;  %v2288_v22 = vpack.c.bf16 %v91_v14, %v89_v13 }
  0x14   :  { %v96_v19 = vld [vmem:[%s5810_s1 + $0xf8] sm:$0xff]  ;;  %v414_v20 = vld [vmem:[%s5810_s1 + $0xae8] sm:$0xff]  ;;  %v2608_v23 = vpack.c.bf16 %v411_v17, %v409_v15  ;;  %v93_v25 = vld [vmem:[%s5810_s1 + $0xe0] sm:$0xff] }
  0x15   :  { %2281 = vmatpush1.bf16.msra.mxu1 %v2280_v62  ;;  %v416_v21 = vld [vmem:[%s5810_s1 + $0xaf8] sm:$0xff]  ;;  %v2290_v24 = vpack.c.bf16 %v96_v19, %v94_v18  ;;  %v95_v26 = vld [vmem:[%s5810_s1 + $0xf0] sm:$0xff]  ;;  %v413_v27 = vld [vmem:[%s5810_s1 + $0xae0] sm:$0xff] }
  0x16   :  { %2601 = vmatpush1.bf16.msra.mxu0 %v2600_v63  ;;  %2283 = vmatprep.subr.bf16.mxu1 %v2282_v0  ;;  %v2610_v28 = vpack.c.bf16 %v416_v21, %v414_v20  ;;  %v415_v29 = vld [vmem:[%s5810_s1 + $0xaf0] sm:$0xff]  ;;  %v98_v30 = vld [vmem:[%s5810_s1 + $0x108] sm:$0xff]  ;;  %v100_v31 = vld [vmem:[%s5810_s1 + $0x118] sm:$0xff]  ;;  %v2292_v34 = vpack.c.bf16 %v95_v26, %v93_v25 }
  0x17   :  { %2603 = vmatprep.subr.bf16.mxu0 %v2602_v4  ;;  %v418_v32 = vld [vmem:[%s5810_s1 + $0xb08] sm:$0xff]  ;;  %v420_v33 = vld [vmem:[%s5810_s1 + $0xb18] sm:$0xff]  ;;  %v2612_v35 = vpack.c.bf16 %v415_v29, %v413_v27  ;;  %v2294_v36 = vpack.c.bf16 %v100_v31, %v98_v30  ;;  %v97_v37 = vld [vmem:[%s5810_s1 + $0x100] sm:$0xff] }
  0x18   :  { %v99_v38 = vld [vmem:[%s5810_s1 + $0x110] sm:$0xff]  ;;  %v417_v39 = vld [vmem:[%s5810_s1 + $0xb00] sm:$0xff]  ;;  %v2614_v40 = vpack.c.bf16 %v420_v33, %v418_v32  ;;  %v102_v42 = vld [vmem:[%s5810_s1 + $0x128] sm:$0xff] }
  0x19   :  { %2285 = vmatpush1.bf16.msra.mxu1 %v2284_v10  ;;  %v419_v41 = vld [vmem:[%s5810_s1 + $0xb10] sm:$0xff]  ;;  %v104_v43 = vld [vmem:[%s5810_s1 + $0x138] sm:$0xff]  ;;  %v422_v44 = vld [vmem:[%s5810_s1 + $0xb28] sm:$0xff]  ;;  %v2296_v46 = vpack.c.bf16 %v99_v38, %v97_v37 }
  0x1a   :  { %2605 = vmatpush1.bf16.msra.mxu0 %v2604_v11  ;;  %2287 = vmatprep.subr.bf16.mxu1 %v2286_v12  ;;  %v424_v45 = vld [vmem:[%s5810_s1 + $0xb38] sm:$0xff]  ;;  %v2616_v47 = vpack.c.bf16 %v419_v41, %v417_v39  ;;  %v2298_v48 = vpack.c.bf16 %v104_v43, %v102_v42  ;;  %v101_v49 = vld [vmem:[%s5810_s1 + $0x120] sm:$0xff]  ;;  %v103_v50 = vld [vmem:[%s5810_s1 + $0x130] sm:$0xff] }
  0x1b   :  { %2607 = vmatprep.subr.bf16.mxu0 %v2606_v16  ;;  %v421_v51 = vld [vmem:[%s5810_s1 + $0xb20] sm:$0xff]  ;;  %v2618_v52 = vpack.c.bf16 %v424_v45, %v422_v44  ;;  %v423_v53 = vld [vmem:[%s5810_s1 + $0xb30] sm:$0xff]  ;;  %v106_v54 = vld [vmem:[%s5810_s1 + $0x148] sm:$0xff]  ;;  %v2300_v58 = vpack.c.bf16 %v103_v50, %v101_v49 }
  0x1c   :  { %v108_v55 = vld [vmem:[%s5810_s1 + $0x158] sm:$0xff]  ;;  %v426_v56 = vld [vmem:[%s5810_s1 + $0xb48] sm:$0xff]  ;;  %v2620_v59 = vpack.c.bf16 %v423_v53, %v421_v51  ;;  %v105_v61 = vld [vmem:[%s5810_s1 + $0x140] sm:$0xff] }
  0x1d   :  { %2289 = vmatpush1.bf16.msra.mxu1 %v2288_v22  ;;  %v428_v57 = vld [vmem:[%s5810_s1 + $0xb58] sm:$0xff]  ;;  %v2302_v60 = vpack.c.bf16 %v108_v55, %v106_v54  ;;  %v107_v62 = vld [vmem:[%s5810_s1 + $0x150] sm:$0xff]  ;;  %v425_v63 = vld [vmem:[%s5810_s1 + $0xb40] sm:$0xff] }
  0x1e   :  { %2609 = vmatpush1.bf16.msra.mxu0 %v2608_v23  ;;  %2291 = vmatprep.subr.bf16.mxu1 %v2290_v24  ;;  %v2622_v0 = vpack.c.bf16 %v428_v57, %v426_v56  ;;  %v427_v1 = vld [vmem:[%s5810_s1 + $0xb50] sm:$0xff]  ;;  %v110_v2 = vld [vmem:[%s5810_s1 + $0x168] sm:$0xff]  ;;  %v112_v3 = vld [vmem:[%s5810_s1 + $0x178] sm:$0xff]  ;;  %v2304_v6 = vpack.c.bf16 %v107_v62, %v105_v61 }
  0x1f   :  { %2611 = vmatprep.subr.bf16.mxu0 %v2610_v28  ;;  %v430_v4 = vld [vmem:[%s5810_s1 + $0xb68] sm:$0xff]  ;;  %v432_v5 = vld [vmem:[%s5810_s1 + $0xb78] sm:$0xff]  ;;  %v109_v7 = vld [vmem:[%s5810_s1 + $0x160] sm:$0xff]  ;;  %v2624_v8 = vpack.c.bf16 %v427_v1, %v425_v63  ;;  %v2306_v9 = vpack.c.bf16 %v112_v3, %v110_v2 }
  0x20   :  { %v111_v10 = vld [vmem:[%s5810_s1 + $0x170] sm:$0xff]  ;;  %v429_v11 = vld [vmem:[%s5810_s1 + $0xb60] sm:$0xff]  ;;  %v2626_v13 = vpack.c.bf16 %v432_v5, %v430_v4  ;;  %v114_v14 = vld [vmem:[%s5810_s1 + $0x188] sm:$0xff] }
  0x21   :  { %2293 = vmatpush1.bf16.msra.mxu1 %v2292_v34  ;;  %v431_v12 = vld [vmem:[%s5810_s1 + $0xb70] sm:$0xff]  ;;  %v116_v15 = vld [vmem:[%s5810_s1 + $0x198] sm:$0xff]  ;;  %v41_v16 = vld [vmem:[%s5811_s0 + $0x8] sm:$0xff]  ;;  %v2308_v20 = vpack.c.bf16 %v111_v10, %v109_v7 }
  0x22   :  { %2613 = vmatpush1.bf16.msra.mxu0 %v2612_v35  ;;  %2295 = vmatprep.subr.bf16.mxu1 %v2294_v36  ;;  %v434_v17 = vld [vmem:[%s5810_s1 + $0xb88] sm:$0xff]  ;;  %v436_v18 = vld [vmem:[%s5810_s1 + $0xb98] sm:$0xff]  ;;  %v2628_v21 = vpack.c.bf16 %v431_v12, %v429_v11  ;;  %v2310_v22 = vpack.c.bf16 %v116_v15, %v114_v14  ;;  %v113_v23 = vld [vmem:[%s5810_s1 + $0x180] sm:$0xff] }
  0x23   :  { %2615 = vmatprep.subr.bf16.mxu0 %v2614_v40  ;;  %929 = vmatprep.mubr.f32.mxu1 %v41_v16  ;;  %v51_v19 = vld [vmem:[%s5811_s0 + $0x58] sm:$0xff]  ;;  %v115_v24 = vld [vmem:[%s5810_s1 + $0x190] sm:$0xff]  ;;  %v433_v25 = vld [vmem:[%s5810_s1 + $0xb80] sm:$0xff]  ;;  %v2630_v26 = vpack.c.bf16 %v436_v18, %v434_v17 }
  0x24   :  { %1284 = vmatprep.mubr.f32.mxu0 %v51_v19  ;;  %v435_v27 = vld [vmem:[%s5810_s1 + $0xb90] sm:$0xff]  ;;  %v118_v28 = vld [vmem:[%s5810_s1 + $0x1a8] sm:$0xff]  ;;  %v120_v29 = vld [vmem:[%s5810_s1 + $0x1b8] sm:$0xff]  ;;  %v2312_v32 = vpack.c.bf16 %v115_v24, %v113_v23 }
  0x25   :  { %2297 = vmatpush1.bf16.msra.mxu1 %v2296_v46  ;;  %v438_v30 = vld [vmem:[%s5810_s1 + $0xba8] sm:$0xff]  ;;  %v440_v31 = vld [vmem:[%s5810_s1 + $0xbb8] sm:$0xff]  ;;  %v2632_v33 = vpack.c.bf16 %v435_v27, %v433_v25  ;;  %v2314_v34 = vpack.c.bf16 %v120_v29, %v118_v28  ;;  %v117_v35 = vld [vmem:[%s5810_s1 + $0x1a0] sm:$0xff] }
  0x26   :  { %2617 = vmatpush1.bf16.msra.mxu0 %v2616_v47  ;;  %2299 = vmatprep.subr.bf16.mxu1 %v2298_v48  ;;  %v119_v36 = vld [vmem:[%s5810_s1 + $0x1b0] sm:$0xff]  ;;  %v437_v37 = vld [vmem:[%s5810_s1 + $0xba0] sm:$0xff]  ;;  %v2634_v38 = vpack.c.bf16 %v440_v31, %v438_v30  ;;  %v122_v40 = vld [vmem:[%s5810_s1 + $0x1c8] sm:$0xff] }
  0x27   :  { %2619 = vmatprep.subr.bf16.mxu0 %v2618_v52  ;;  %v439_v39 = vld [vmem:[%s5810_s1 + $0xbb0] sm:$0xff]  ;;  %v124_v41 = vld [vmem:[%s5810_s1 + $0x1d8] sm:$0xff]  ;;  %v442_v42 = vld [vmem:[%s5810_s1 + $0xbc8] sm:$0xff]  ;;  %v2316_v44 = vpack.c.bf16 %v119_v36, %v117_v35 }
  0x28   :  { %v444_v43 = vld [vmem:[%s5810_s1 + $0xbd8] sm:$0xff]  ;;  %v2636_v45 = vpack.c.bf16 %v439_v39, %v437_v37  ;;  %v2318_v46 = vpack.c.bf16 %v124_v41, %v122_v40  ;;  %v121_v47 = vld [vmem:[%s5810_s1 + $0x1c0] sm:$0xff]  ;;  %v123_v48 = vld [vmem:[%s5810_s1 + $0x1d0] sm:$0xff] }
  0x29   :  { %2301 = vmatpush1.bf16.msra.mxu1 %v2300_v58  ;;  %v441_v49 = vld [vmem:[%s5810_s1 + $0xbc0] sm:$0xff]  ;;  %v2638_v50 = vpack.c.bf16 %v444_v43, %v442_v42  ;;  %v443_v51 = vld [vmem:[%s5810_s1 + $0xbd0] sm:$0xff]  ;;  %v126_v52 = vld [vmem:[%s5810_s1 + $0x1e8] sm:$0xff]  ;;  %v2320_v56 = vpack.c.bf16 %v123_v48, %v121_v47 }
  0x2a   :  { %2621 = vmatpush1.bf16.msra.mxu0 %v2620_v59  ;;  %2303 = vmatprep.subr.bf16.mxu1 %v2302_v60  ;;  %v128_v53 = vld [vmem:[%s5810_s1 + $0x1f8] sm:$0xff]  ;;  %v446_v54 = vld [vmem:[%s5810_s1 + $0xbe8] sm:$0xff]  ;;  %v2640_v57 = vpack.c.bf16 %v443_v51, %v441_v49  ;;  %v125_v59 = vld [vmem:[%s5810_s1 + $0x1e0] sm:$0xff] }
  0x2b   :  { %2623 = vmatprep.subr.bf16.mxu0 %v2622_v0  ;;  %v448_v55 = vld [vmem:[%s5810_s1 + $0xbf8] sm:$0xff]  ;;  %v2322_v58 = vpack.c.bf16 %v128_v53, %v126_v52  ;;  %v127_v60 = vld [vmem:[%s5810_s1 + $0x1f0] sm:$0xff]  ;;  %v445_v61 = vld [vmem:[%s5810_s1 + $0xbe0] sm:$0xff] }
  0x2c   :  { %v2642_v62 = vpack.c.bf16 %v448_v55, %v446_v54  ;;  %v447_v63 = vld [vmem:[%s5810_s1 + $0xbf0] sm:$0xff]  ;;  %v130_v0 = vld [vmem:[%s5810_s1 + $0x208] sm:$0xff]  ;;  %v132_v1 = vld [vmem:[%s5810_s1 + $0x218] sm:$0xff]  ;;  %v2324_v4 = vpack.c.bf16 %v127_v60, %v125_v59 }
  0x2d   :  { %2305 = vmatpush1.bf16.msra.mxu1 %v2304_v6  ;;  %v450_v2 = vld [vmem:[%s5810_s1 + $0xc08] sm:$0xff]  ;;  %v452_v3 = vld [vmem:[%s5810_s1 + $0xc18] sm:$0xff]  ;;  %v2644_v5 = vpack.c.bf16 %v447_v63, %v445_v61  ;;  %v2326_v6 = vpack.c.bf16 %v132_v1, %v130_v0  ;;  %v129_v7 = vld [vmem:[%s5810_s1 + $0x200] sm:$0xff] }
  0x2e   :  { %2625 = vmatpush1.bf16.msra.mxu0 %v2624_v8  ;;  %2307 = vmatprep.subr.bf16.mxu1 %v2306_v9  ;;  %v131_v8 = vld [vmem:[%s5810_s1 + $0x210] sm:$0xff]  ;;  %v449_v9 = vld [vmem:[%s5810_s1 + $0xc00] sm:$0xff]  ;;  %v2646_v10 = vpack.c.bf16 %v452_v3, %v450_v2  ;;  %v134_v12 = vld [vmem:[%s5810_s1 + $0x228] sm:$0xff] }
  0x2f   :  { %2627 = vmatprep.subr.bf16.mxu0 %v2626_v13  ;;  %v451_v11 = vld [vmem:[%s5810_s1 + $0xc10] sm:$0xff]  ;;  %v136_v13 = vld [vmem:[%s5810_s1 + $0x238] sm:$0xff]  ;;  %v454_v14 = vld [vmem:[%s5810_s1 + $0xc28] sm:$0xff]  ;;  %v2328_v17 = vpack.c.bf16 %v131_v8, %v129_v7 }
  0x30   :  { %v456_v15 = vld [vmem:[%s5810_s1 + $0xc38] sm:$0xff]  ;;  %v40_v16 = vld [vmem:[%s5811_s0] sm:$0xff]  ;;  %v50_v18 = vld [vmem:[%s5811_s0 + $0x50] sm:$0xff]  ;;  %v2648_v19 = vpack.c.bf16 %v451_v11, %v449_v9 }
  0x31   :  { %2309 = vmatpush1.bf16.msra.mxu1 %v2308_v20  ;;  %v2330_v20 = vpack.c.bf16 %v136_v13, %v134_v12  ;;  %v453_v23 = vld [vmem:[%s5810_s1 + $0xc20] sm:$0xff]  ;;  %v2650_v24 = vpack.c.bf16 %v456_v15, %v454_v14  ;;  %v455_v25 = vld [vmem:[%s5810_s1 + $0xc30] sm:$0xff]  ;;  %v140_v27 = vld [vmem:[%s5810_s1 + $0x258] sm:$0xff] }
  0x32   :  { %2629 = vmatpush1.bf16.msra.mxu0 %v2628_v21  ;;  %2311 = vmatprep.subr.bf16.mxu1 %v2310_v22  ;;  %v133_v21 = vld [vmem:[%s5810_s1 + $0x220] sm:$0xff]  ;;  %v135_v22 = vld [vmem:[%s5810_s1 + $0x230] sm:$0xff]  ;;  %v458_v28 = vld [vmem:[%s5810_s1 + $0xc48] sm:$0xff]  ;;  %v2652_v31 = vpack.c.bf16 %v455_v25, %v453_v23 }
  0x33   :  { %2631 = vmatprep.subr.bf16.mxu0 %v2630_v26  ;;  %v138_v26 = vld [vmem:[%s5810_s1 + $0x248] sm:$0xff]  ;;  %v460_v29 = vld [vmem:[%s5810_s1 + $0xc58] sm:$0xff]  ;;  %v2332_v30 = vpack.c.bf16 %v135_v22, %v133_v21  ;;  %v457_v35 = vld [vmem:[%s5810_s1 + $0xc40] sm:$0xff] }
  0x34   :  { %v2654_v36 = vpack.c.bf16 %v460_v29, %v458_v28  ;;  %v459_v37 = vld [vmem:[%s5810_s1 + $0xc50] sm:$0xff]  ;;  %v144_v39 = vld [vmem:[%s5810_s1 + $0x278] sm:$0xff]  ;;  %v462_v40 = vld [vmem:[%s5810_s1 + $0xc68] sm:$0xff] }
  0x35   :  { %2313 = vmatpush1.bf16.msra.mxu1 %v2312_v32  ;;  %v2334_v32 = vpack.c.bf16 %v140_v27, %v138_v26  ;;  %v464_v41 = vld [vmem:[%s5810_s1 + $0xc78] sm:$0xff]  ;;  %v2656_v43 = vpack.c.bf16 %v459_v37, %v457_v35  ;;  %v461_v47 = vld [vmem:[%s5810_s1 + $0xc60] sm:$0xff]  ;;  %v463_v49 = vld [vmem:[%s5810_s1 + $0xc70] sm:$0xff] }
  0x36   :  { %2633 = vmatpush1.bf16.msra.mxu0 %v2632_v33  ;;  %2315 = vmatprep.subr.bf16.mxu1 %v2314_v34  ;;  %v137_v33 = vld [vmem:[%s5810_s1 + $0x240] sm:$0xff]  ;;  %v139_v34 = vld [vmem:[%s5810_s1 + $0x250] sm:$0xff]  ;;  %v2658_v48 = vpack.c.bf16 %v464_v41, %v462_v40  ;;  %v148_v51 = vld [vmem:[%s5810_s1 + $0x298] sm:$0xff]  ;;  %v2660_v55 = vpack.c.bf16 %v463_v49, %v461_v47 }
  0x37   :  { %2635 = vmatprep.subr.bf16.mxu0 %v2634_v38  ;;  %v142_v38 = vld [vmem:[%s5810_s1 + $0x268] sm:$0xff]  ;;  %v2336_v42 = vpack.c.bf16 %v139_v34, %v137_v33  ;;  %v468_v53 = vld [vmem:[%s5810_s1 + $0xc98] sm:$0xff]  ;;  %v465_v59 = vld [vmem:[%s5810_s1 + $0xc80] sm:$0xff] }
  0x38   :  { %v466_v52 = vld [vmem:[%s5810_s1 + $0xc88] sm:$0xff]  ;;  %v467_v61 = vld [vmem:[%s5810_s1 + $0xc90] sm:$0xff]  ;;  %v152_v63 = vld [vmem:[%s5810_s1 + $0x2b8] sm:$0xff] }
  0x39   :  { %2317 = vmatpush1.bf16.msra.mxu1 %v2316_v44  ;;  %v2338_v44 = vpack.c.bf16 %v144_v39, %v142_v38  ;;  %v2662_v60 = vpack.c.bf16 %v468_v53, %v466_v52  ;;  %v470_v0 = vld [vmem:[%s5810_s1 + $0xca8] sm:$0xff]  ;;  %v472_v1 = vld [vmem:[%s5810_s1 + $0xcb8] sm:$0xff]  ;;  %v2664_v3 = vpack.c.bf16 %v467_v61, %v465_v59  ;;  %v469_v7 = vld [vmem:[%s5810_s1 + $0xca0] sm:$0xff] }
  0x3a   :  { %2637 = vmatpush1.bf16.msra.mxu0 %v2636_v45  ;;  %2319 = vmatprep.subr.bf16.mxu1 %v2318_v46  ;;  %v141_v45 = vld [vmem:[%s5810_s1 + $0x260] sm:$0xff]  ;;  %v143_v46 = vld [vmem:[%s5810_s1 + $0x270] sm:$0xff]  ;;  %v2666_v8 = vpack.c.bf16 %v472_v1, %v470_v0  ;;  %v156_v11 = vld [vmem:[%s5810_s1 + $0x2d8] sm:$0xff] }
  0x3b   :  { %2639 = vmatprep.subr.bf16.mxu0 %v2638_v50  ;;  %v146_v50 = vld [vmem:[%s5810_s1 + $0x288] sm:$0xff]  ;;  %v2340_v54 = vpack.c.bf16 %v143_v46, %v141_v45  ;;  %v471_v9 = vld [vmem:[%s5810_s1 + $0xcb0] sm:$0xff]  ;;  %v476_v13 = vld [vmem:[%s5810_s1 + $0xcd8] sm:$0xff] }
  0x3c   :  { %v474_v12 = vld [vmem:[%s5810_s1 + $0xcc8] sm:$0xff]  ;;  %v153_v15 = vld [vmem:[%s5810_s1 + $0x2c0] sm:$0xff]  ;;  %v160_v23 = vld [vmem:[%s5810_s1 + $0x2f8] sm:$0xff] }
  0x3d   :  { %2321 = vmatpush1.bf16.msra.mxu1 %v2320_v56  ;;  %v2342_v56 = vpack.c.bf16 %v148_v51, %v146_v50  ;;  %v2670_v21 = vpack.c.bf16 %v476_v13, %v474_v12  ;;  %v158_v22 = vld [vmem:[%s5810_s1 + $0x2e8] sm:$0xff]  ;;  %v480_v26 = vld [vmem:[%s5810_s1 + $0xcf8] sm:$0xff]  ;;  %v477_v33 = vld [vmem:[%s5810_s1 + $0xce0] sm:$0xff] }
  0x3e   :  { %2641 = vmatpush1.bf16.msra.mxu0 %v2640_v57  ;;  %2323 = vmatprep.subr.bf16.mxu1 %v2322_v58  ;;  %v145_v57 = vld [vmem:[%s5810_s1 + $0x280] sm:$0xff]  ;;  %v147_v58 = vld [vmem:[%s5810_s1 + $0x290] sm:$0xff]  ;;  %v478_v25 = vld [vmem:[%s5810_s1 + $0xce8] sm:$0xff] }
  0x3f   :  { %2643 = vmatprep.subr.bf16.mxu0 %v2642_v62  ;;  %v150_v62 = vld [vmem:[%s5810_s1 + $0x2a8] sm:$0xff]  ;;  %v2344_v2 = vpack.c.bf16 %v147_v58, %v145_v57  ;;  %v2674_v34 = vpack.c.bf16 %v480_v26, %v478_v25  ;;  %v479_v35 = vld [vmem:[%s5810_s1 + $0xcf0] sm:$0xff]  ;;  %v164_v37 = vld [vmem:[%s5810_s1 + $0x318] sm:$0xff] }
  0x40   :  { %v53_v27 = vld [vmem:[%s5811_s0 + $0x68] sm:$0xff]  ;;  %v484_v39 = vld [vmem:[%s5810_s1 + $0xd18] sm:$0xff]  ;;  %v2676_v41 = vpack.c.bf16 %v479_v35, %v477_v33  ;;  %v481_v45 = vld [vmem:[%s5810_s1 + $0xd00] sm:$0xff] }
  0x41   :  { %2325 = vmatpush1.bf16.msra.mxu1 %v2324_v4  ;;  %v2346_v4 = vpack.c.bf16 %v152_v63, %v150_v62  ;;  %v482_v38 = vld [vmem:[%s5810_s1 + $0xd08] sm:$0xff]  ;;  %v483_v47 = vld [vmem:[%s5810_s1 + $0xd10] sm:$0xff]  ;;  %v168_v49 = vld [vmem:[%s5810_s1 + $0x338] sm:$0xff] }
  0x42   :  { %2645 = vmatpush1.bf16.msra.mxu0 %v2644_v5  ;;  %2327 = vmatprep.subr.bf16.mxu1 %v2326_v6  ;;  %v149_v5 = vld [vmem:[%s5810_s1 + $0x2a0] sm:$0xff]  ;;  %v151_v6 = vld [vmem:[%s5810_s1 + $0x2b0] sm:$0xff]  ;;  %v2678_v46 = vpack.c.bf16 %v484_v39, %v482_v38  ;;  %v486_v50 = vld [vmem:[%s5810_s1 + $0xd28] sm:$0xff]  ;;  %v2680_v53 = vpack.c.bf16 %v483_v47, %v481_v45 }
  0x43   :  { %2647 = vmatprep.subr.bf16.mxu0 %v2646_v10  ;;  %v154_v10 = vld [vmem:[%s5810_s1 + $0x2c8] sm:$0xff]  ;;  %v2348_v14 = vpack.c.bf16 %v151_v6, %v149_v5  ;;  %v488_v51 = vld [vmem:[%s5810_s1 + $0xd38] sm:$0xff]  ;;  %v485_v57 = vld [vmem:[%s5810_s1 + $0xd20] sm:$0xff] }
  0x44   :  { %930 = vmatmul.mubr.f32.vlgmr.msra.gmra.mrb[0].mxu1 %v40_v16  ;;  %v2668_v16 = vpack.c.bf16 %v471_v9, %v469_v7  ;;  %v2682_v58 = vpack.c.bf16 %v488_v51, %v486_v50  ;;  %v487_v59 = vld [vmem:[%s5810_s1 + $0xd30] sm:$0xff]  ;;  %v172_v61 = vld [vmem:[%s5810_s1 + $0x358] sm:$0xff]  ;;  %v490_v62 = vld [vmem:[%s5810_s1 + $0xd48] sm:$0xff] }
  0x45   :  { %2329 = vmatpush1.bf16.msra.mxu1 %v2328_v17  ;;  %1285 = vmatmul.mubr.f32.vlgmr.msra.gmra.mrb[0].mxu0 %v50_v18  ;;  %v2350_v17 = vpack.c.bf16 %v156_v11, %v154_v10  ;;  %v155_v18 = vld [vmem:[%s5810_s1 + $0x2d0] sm:$0xff]  ;;  %v492_v63 = vld [vmem:[%s5810_s1 + $0xd58] sm:$0xff]  ;;  %v2684_v1 = vpack.c.bf16 %v487_v59, %v485_v57  ;;  %v489_v5 = vld [vmem:[%s5810_s1 + $0xd40] sm:$0xff] }
  0x46   :  { %2649 = vmatpush1.bf16.msra.mxu0 %v2648_v19  ;;  %2331 = vmatprep.subr.bf16.mxu1 %v2330_v20  ;;  %v473_v19 = vld [vmem:[%s5810_s1 + $0xcc0] sm:$0xff]  ;;  %v475_v20 = vld [vmem:[%s5810_s1 + $0xcd0] sm:$0xff]  ;;  %v2352_v28 = vpack.c.bf16 %v155_v18, %v153_v15  ;;  %v2686_v6 = vpack.c.bf16 %v492_v63, %v490_v62  ;;  %v176_v9 = vld [vmem:[%s5810_s1 + $0x378] sm:$0xff] }
  0x47   :  { %2651 = vmatprep.subr.bf16.mxu0 %v2650_v24  ;;  %v43_v24 = vld [vmem:[%s5811_s0 + $0x18] sm:$0xff]  ;;  %1355 = vmatprep.mubr.f32.mxu0 %v53_v27  ;;  %v2672_v29 = vpack.c.bf16 %v475_v20, %v473_v19  ;;  %v491_v7 = vld [vmem:[%s5810_s1 + $0xd50] sm:$0xff]  ;;  %v494_v10 = vld [vmem:[%s5810_s1 + $0xd68] sm:$0xff] }
  0x48   :  { %1000 = vmatprep.mubr.f32.mxu1 %v43_v24  ;;  %v496_v11 = vld [vmem:[%s5810_s1 + $0xd78] sm:$0xff]  ;;  %v2688_v13 = vpack.c.bf16 %v491_v7, %v489_v5  ;;  %v173_v15 = vld [vmem:[%s5810_s1 + $0x360] sm:$0xff]  ;;  %v495_v19 = vld [vmem:[%s5810_s1 + $0xd70] sm:$0xff] }
  0x49   :  { %2333 = vmatpush1.bf16.msra.mxu1 %v2332_v30  ;;  %v2354_v30 = vpack.c.bf16 %v160_v23, %v158_v22  ;;  %v2690_v18 = vpack.c.bf16 %v496_v11, %v494_v10  ;;  %v178_v20 = vld [vmem:[%s5810_s1 + $0x388] sm:$0xff]  ;;  %v500_v23 = vld [vmem:[%s5810_s1 + $0xd98] sm:$0xff]  ;;  %v177_v27 = vld [vmem:[%s5810_s1 + $0x380] sm:$0xff] }
  0x4a   :  { %2653 = vmatpush1.bf16.msra.mxu0 %v2652_v31  ;;  %2335 = vmatprep.subr.bf16.mxu1 %v2334_v32  ;;  %v157_v31 = vld [vmem:[%s5810_s1 + $0x2e0] sm:$0xff]  ;;  %v159_v32 = vld [vmem:[%s5810_s1 + $0x2f0] sm:$0xff]  ;;  %v498_v22 = vld [vmem:[%s5810_s1 + $0xd88] sm:$0xff] }
  0x4b   :  { %2655 = vmatprep.subr.bf16.mxu0 %v2654_v36  ;;  %v162_v36 = vld [vmem:[%s5810_s1 + $0x308] sm:$0xff]  ;;  %v2356_v40 = vpack.c.bf16 %v159_v32, %v157_v31  ;;  %v499_v31 = vld [vmem:[%s5810_s1 + $0xd90] sm:$0xff]  ;;  %v184_v33 = vld [vmem:[%s5810_s1 + $0x3b8] sm:$0xff] }
  0x4c   :  { %v182_v32 = vld [vmem:[%s5810_s1 + $0x3a8] sm:$0xff]  ;;  %v504_v35 = vld [vmem:[%s5810_s1 + $0xdb8] sm:$0xff]  ;;  %v181_v39 = vld [vmem:[%s5810_s1 + $0x3a0] sm:$0xff] }
  0x4d   :  { %2337 = vmatpush1.bf16.msra.mxu1 %v2336_v42  ;;  %v2358_v42 = vpack.c.bf16 %v164_v37, %v162_v36  ;;  %v2378_v38 = vpack.c.bf16 %v184_v33, %v182_v32  ;;  %v188_v45 = vld [vmem:[%s5810_s1 + $0x3d8] sm:$0xff]  ;;  %v185_v51 = vld [vmem:[%s5810_s1 + $0x3c0] sm:$0xff]  ;;  %v522_v32 = vld [vmem:[%s5810_s1 + $0xe48] sm:$0xff] }
  0x4e   :  { %2657 = vmatpush1.bf16.msra.mxu0 %v2656_v43  ;;  %2339 = vmatprep.subr.bf16.mxu1 %v2338_v44  ;;  %v161_v43 = vld [vmem:[%s5810_s1 + $0x300] sm:$0xff]  ;;  %v163_v44 = vld [vmem:[%s5810_s1 + $0x310] sm:$0xff]  ;;  %v508_v47 = vld [vmem:[%s5810_s1 + $0xdd8] sm:$0xff] }
  0x4f   :  { %2659 = vmatprep.subr.bf16.mxu0 %v2658_v48  ;;  %v166_v48 = vld [vmem:[%s5810_s1 + $0x328] sm:$0xff]  ;;  %v2360_v52 = vpack.c.bf16 %v163_v44, %v161_v43  ;;  %v503_v43 = vld [vmem:[%s5810_s1 + $0xdb0] sm:$0xff]  ;;  %v192_v57 = vld [vmem:[%s5810_s1 + $0x3f8] sm:$0xff] }
  0x50   :  { %v186_v44 = vld [vmem:[%s5810_s1 + $0x3c8] sm:$0xff]  ;;  %v512_v59 = vld [vmem:[%s5810_s1 + $0xdf8] sm:$0xff]  ;;  %v189_v63 = vld [vmem:[%s5810_s1 + $0x3e0] sm:$0xff] }
  0x51   :  { %2341 = vmatpush1.bf16.msra.mxu1 %v2340_v54  ;;  %v2362_v54 = vpack.c.bf16 %v168_v49, %v166_v48  ;;  %v2382_v50 = vpack.c.bf16 %v188_v45, %v186_v44  ;;  %v196_v5 = vld [vmem:[%s5810_s1 + $0x418] sm:$0xff]  ;;  %v193_v11 = vld [vmem:[%s5810_s1 + $0x400] sm:$0xff]  ;;  %v206_v44 = vld [vmem:[%s5810_s1 + $0x468] sm:$0xff] }
  0x52   :  { %2661 = vmatpush1.bf16.msra.mxu0 %v2660_v55  ;;  %2343 = vmatprep.subr.bf16.mxu1 %v2342_v56  ;;  %v165_v55 = vld [vmem:[%s5810_s1 + $0x320] sm:$0xff]  ;;  %v167_v56 = vld [vmem:[%s5810_s1 + $0x330] sm:$0xff]  ;;  %v516_v7 = vld [vmem:[%s5810_s1 + $0xe18] sm:$0xff] }
  0x53   :  { %2663 = vmatprep.subr.bf16.mxu0 %v2662_v60  ;;  %v170_v60 = vld [vmem:[%s5810_s1 + $0x348] sm:$0xff]  ;;  %v2364_v0 = vpack.c.bf16 %v167_v56, %v165_v55  ;;  %v507_v55 = vld [vmem:[%s5810_s1 + $0xdd0] sm:$0xff]  ;;  %v524_v33 = vld [vmem:[%s5810_s1 + $0xe58] sm:$0xff] }
  0x54   :  { %v190_v56 = vld [vmem:[%s5810_s1 + $0x3e8] sm:$0xff]  ;;  %v208_v45 = vld [vmem:[%s5810_s1 + $0x478] sm:$0xff] }
  0x55   :  { %2345 = vmatpush1.bf16.msra.mxu1 %v2344_v2  ;;  %v2366_v2 = vpack.c.bf16 %v172_v61, %v170_v60  ;;  %v2386_v62 = vpack.c.bf16 %v192_v57, %v190_v56  ;;  %v210_v56 = vld [vmem:[%s5810_s1 + $0x488] sm:$0xff]  ;;  %v212_v57 = vld [vmem:[%s5810_s1 + $0x498] sm:$0xff] }
  0x56   :  { %2665 = vmatpush1.bf16.msra.mxu0 %v2664_v3  ;;  %2347 = vmatprep.subr.bf16.mxu1 %v2346_v4  ;;  %v169_v3 = vld [vmem:[%s5810_s1 + $0x340] sm:$0xff]  ;;  %v171_v4 = vld [vmem:[%s5810_s1 + $0x350] sm:$0xff] }
  0x57   :  { %2667 = vmatprep.subr.bf16.mxu0 %v2666_v8  ;;  %v174_v8 = vld [vmem:[%s5810_s1 + $0x368] sm:$0xff]  ;;  %v2368_v12 = vpack.c.bf16 %v171_v4, %v169_v3  ;;  %v511_v3 = vld [vmem:[%s5810_s1 + $0xdf0] sm:$0xff] }
  0x58   :  { %v194_v4 = vld [vmem:[%s5810_s1 + $0x408] sm:$0xff] }
  0x59   :  { %2349 = vmatpush1.bf16.msra.mxu1 %v2348_v14  ;;  %v2370_v14 = vpack.c.bf16 %v176_v9, %v174_v8  ;;  %v2390_v10 = vpack.c.bf16 %v196_v5, %v194_v4  ;;  %v214_v4 = vld [vmem:[%s5810_s1 + $0x4a8] sm:$0xff]  ;;  %v216_v5 = vld [vmem:[%s5810_s1 + $0x4b8] sm:$0xff] }
  0x5a   :  { %2669 = vmatpush1.bf16.msra.mxu0 %v2668_v16  ;;  %2351 = vmatprep.subr.bf16.mxu1 %v2350_v17  ;;  %v175_v16 = vld [vmem:[%s5810_s1 + $0x370] sm:$0xff]  ;;  %v493_v17 = vld [vmem:[%s5810_s1 + $0xd60] sm:$0xff] }
  0x5b   :  { %2671 = vmatprep.subr.bf16.mxu0 %v2670_v21  ;;  %v180_v21 = vld [vmem:[%s5810_s1 + $0x398] sm:$0xff]  ;;  %v2372_v24 = vpack.c.bf16 %v175_v16, %v173_v15  ;;  %v2692_v25 = vpack.c.bf16 %v495_v19, %v493_v17  ;;  %v515_v15 = vld [vmem:[%s5810_s1 + $0xe10] sm:$0xff]  ;;  %v198_v16 = vld [vmem:[%s5810_s1 + $0x428] sm:$0xff] }
  0x5c   :  { %v2374_v26 = vpack.c.bf16 %v180_v21, %v178_v20  ;;  %v200_v17 = vld [vmem:[%s5810_s1 + $0x438] sm:$0xff]  ;;  %v42_v20 = vld [vmem:[%s5811_s0 + $0x10] sm:$0xff] }
  0x5d   :  { %2353 = vmatpush1.bf16.msra.mxu1 %v2352_v28  ;;  %v179_v28 = vld [vmem:[%s5810_s1 + $0x390] sm:$0xff]  ;;  %v520_v19 = vld [vmem:[%s5810_s1 + $0xe38] sm:$0xff] }
  0x5e   :  { %2673 = vmatpush1.bf16.msra.mxu0 %v2672_v29  ;;  %2355 = vmatprep.subr.bf16.mxu1 %v2354_v30  ;;  %v497_v29 = vld [vmem:[%s5810_s1 + $0xd80] sm:$0xff]  ;;  %v2694_v30 = vpack.c.bf16 %v500_v23, %v498_v22  ;;  %v2376_v36 = vpack.c.bf16 %v179_v28, %v177_v27 }
  0x5f   :  { %2675 = vmatprep.subr.bf16.mxu0 %v2674_v34  ;;  %v502_v34 = vld [vmem:[%s5810_s1 + $0xda8] sm:$0xff]  ;;  %v2696_v37 = vpack.c.bf16 %v499_v31, %v497_v29  ;;  %v52_v22 = vld [vmem:[%s5811_s0 + $0x60] sm:$0xff]  ;;  %v519_v29 = vld [vmem:[%s5810_s1 + $0xe30] sm:$0xff] }
  0x60   :  { %v517_v27 = vld [vmem:[%s5810_s1 + $0xe20] sm:$0xff]  ;;  %v204_v31 = vld [vmem:[%s5810_s1 + $0x458] sm:$0xff] }
  0x61   :  { %2357 = vmatpush1.bf16.msra.mxu1 %v2356_v40  ;;  %v183_v40 = vld [vmem:[%s5810_s1 + $0x3b0] sm:$0xff] }
  0x62   :  { %2677 = vmatpush1.bf16.msra.mxu0 %v2676_v41  ;;  %2359 = vmatprep.subr.bf16.mxu1 %v2358_v42  ;;  %v501_v41 = vld [vmem:[%s5810_s1 + $0xda0] sm:$0xff]  ;;  %v2698_v42 = vpack.c.bf16 %v504_v35, %v502_v34  ;;  %v2380_v48 = vpack.c.bf16 %v183_v40, %v181_v39  ;;  %v45_v34 = vld [vmem:[%s5811_s0 + $0x28] sm:$0xff]  ;;  %v203_v40 = vld [vmem:[%s5810_s1 + $0x450] sm:$0xff] }
  0x63   :  { %2679 = vmatprep.subr.bf16.mxu0 %v2678_v46  ;;  %v506_v46 = vld [vmem:[%s5810_s1 + $0xdc8] sm:$0xff]  ;;  %v2700_v49 = vpack.c.bf16 %v503_v43, %v501_v41  ;;  %v201_v39 = vld [vmem:[%s5810_s1 + $0x440] sm:$0xff]  ;;  %v523_v43 = vld [vmem:[%s5810_s1 + $0xe50] sm:$0xff] }
  0x64   :  { %v521_v41 = vld [vmem:[%s5810_s1 + $0xe40] sm:$0xff] }
  0x65   :  { %2361 = vmatpush1.bf16.msra.mxu1 %v2360_v52  ;;  %v187_v52 = vld [vmem:[%s5810_s1 + $0x3d0] sm:$0xff] }
  0x66   :  { %2681 = vmatpush1.bf16.msra.mxu0 %v2680_v53  ;;  %2363 = vmatprep.subr.bf16.mxu1 %v2362_v54  ;;  %v505_v53 = vld [vmem:[%s5810_s1 + $0xdc0] sm:$0xff]  ;;  %v2702_v54 = vpack.c.bf16 %v508_v47, %v506_v46  ;;  %v2384_v60 = vpack.c.bf16 %v187_v52, %v185_v51  ;;  %v526_v46 = vld [vmem:[%s5810_s1 + $0xe68] sm:$0xff]  ;;  %v528_v47 = vld [vmem:[%s5810_s1 + $0xe78] sm:$0xff] }
  0x67   :  { %2683 = vmatprep.subr.bf16.mxu0 %v2682_v58  ;;  %v510_v58 = vld [vmem:[%s5810_s1 + $0xde8] sm:$0xff]  ;;  %v2704_v61 = vpack.c.bf16 %v507_v55, %v505_v53  ;;  %v205_v51 = vld [vmem:[%s5810_s1 + $0x460] sm:$0xff]  ;;  %v207_v52 = vld [vmem:[%s5810_s1 + $0x470] sm:$0xff] }
  0x68   :  { %v525_v53 = vld [vmem:[%s5810_s1 + $0xe60] sm:$0xff]  ;;  %v527_v55 = vld [vmem:[%s5810_s1 + $0xe70] sm:$0xff] }
  0x69   :  { %2365 = vmatpush1.bf16.msra.mxu1 %v2364_v0  ;;  %v191_v0 = vld [vmem:[%s5810_s1 + $0x3f0] sm:$0xff] }
  0x6a   :  { %2685 = vmatpush1.bf16.msra.mxu0 %v2684_v1  ;;  %2367 = vmatprep.subr.bf16.mxu1 %v2366_v2  ;;  %v509_v1 = vld [vmem:[%s5810_s1 + $0xde0] sm:$0xff]  ;;  %v2706_v2 = vpack.c.bf16 %v512_v59, %v510_v58  ;;  %v2388_v8 = vpack.c.bf16 %v191_v0, %v189_v63  ;;  %v530_v58 = vld [vmem:[%s5810_s1 + $0xe88] sm:$0xff]  ;;  %v532_v59 = vld [vmem:[%s5810_s1 + $0xe98] sm:$0xff] }
  0x6b   :  { %2687 = vmatprep.subr.bf16.mxu0 %v2686_v6  ;;  %v514_v6 = vld [vmem:[%s5810_s1 + $0xe08] sm:$0xff]  ;;  %v2708_v9 = vpack.c.bf16 %v511_v3, %v509_v1  ;;  %v209_v63 = vld [vmem:[%s5810_s1 + $0x480] sm:$0xff]  ;;  %v211_v0 = vld [vmem:[%s5810_s1 + $0x490] sm:$0xff] }
  0x6c   :  { %v529_v1 = vld [vmem:[%s5810_s1 + $0xe80] sm:$0xff]  ;;  %v531_v3 = vld [vmem:[%s5810_s1 + $0xe90] sm:$0xff] }
  0x6d   :  { %2369 = vmatpush1.bf16.msra.mxu1 %v2368_v12  ;;  %v195_v12 = vld [vmem:[%s5810_s1 + $0x410] sm:$0xff] }
  0x6e   :  { %2689 = vmatpush1.bf16.msra.mxu0 %v2688_v13  ;;  %2371 = vmatprep.subr.bf16.mxu1 %v2370_v14  ;;  %v513_v13 = vld [vmem:[%s5810_s1 + $0xe00] sm:$0xff]  ;;  %v2710_v14 = vpack.c.bf16 %v516_v7, %v514_v6  ;;  %v2392_v21 = vpack.c.bf16 %v195_v12, %v193_v11  ;;  %v534_v6 = vld [vmem:[%s5810_s1 + $0xea8] sm:$0xff]  ;;  %v536_v7 = vld [vmem:[%s5810_s1 + $0xeb8] sm:$0xff] }
  0x6f   :  { %2691 = vmatprep.subr.bf16.mxu0 %v2690_v18  ;;  %v518_v18 = vld [vmem:[%s5810_s1 + $0xe28] sm:$0xff]  ;;  %v2712_v23 = vpack.c.bf16 %v515_v15, %v513_v13  ;;  %v213_v11 = vld [vmem:[%s5810_s1 + $0x4a0] sm:$0xff]  ;;  %v215_v12 = vld [vmem:[%s5810_s1 + $0x4b0] sm:$0xff] }
  0x70   :  { %v2714_v28 = vpack.c.bf16 %v520_v19, %v518_v18  ;;  %v533_v13 = vld [vmem:[%s5810_s1 + $0xea0] sm:$0xff]  ;;  %v535_v15 = vld [vmem:[%s5810_s1 + $0xeb0] sm:$0xff]  ;;  %v538_v18 = vld [vmem:[%s5810_s1 + $0xec8] sm:$0xff] }
  0x71   :  { %2373 = vmatpush1.bf16.msra.mxu1 %v2372_v24  ;;  %v2394_v24 = vpack.c.bf16 %v200_v17, %v198_v16  ;;  %v218_v16 = vld [vmem:[%s5810_s1 + $0x4c8] sm:$0xff]  ;;  %v220_v17 = vld [vmem:[%s5810_s1 + $0x4d8] sm:$0xff] }
  0x72   :  { %2693 = vmatpush1.bf16.msra.mxu0 %v2692_v25  ;;  %2375 = vmatprep.subr.bf16.mxu1 %v2374_v26  ;;  %v197_v25 = vld [vmem:[%s5810_s1 + $0x420] sm:$0xff]  ;;  %v199_v26 = vld [vmem:[%s5810_s1 + $0x430] sm:$0xff]  ;;  %v540_v19 = vld [vmem:[%s5810_s1 + $0xed8] sm:$0xff] }
  0x73   :  { %2695 = vmatprep.subr.bf16.mxu0 %v2694_v30  ;;  %v202_v30 = vld [vmem:[%s5810_s1 + $0x448] sm:$0xff]  ;;  %v2396_v35 = vpack.c.bf16 %v199_v26, %v197_v25  ;;  %v537_v25 = vld [vmem:[%s5810_s1 + $0xec0] sm:$0xff]  ;;  %v2734_v26 = vpack.c.bf16 %v540_v19, %v538_v18 }
  0x74   :  { %v237_v19 = vld [vmem:[%s5810_s1 + $0x560] sm:$0xff] }
  0x75   :  { %2377 = vmatpush1.bf16.msra.mxu1 %v2376_v36  ;;  %v55_v36 = vld [vmem:[%s5811_s0 + $0x78] sm:$0xff] }
  0x76   :  { %2697 = vmatpush1.bf16.msra.mxu0 %v2696_v37  ;;  %2379 = vmatprep.subr.bf16.mxu1 %v2378_v38  ;;  %v2716_v37 = vpack.c.bf16 %v519_v29, %v517_v27  ;;  %v2398_v38 = vpack.c.bf16 %v204_v31, %v202_v30  ;;  %v539_v27 = vld [vmem:[%s5810_s1 + $0xed0] sm:$0xff]  ;;  %v224_v29 = vld [vmem:[%s5810_s1 + $0x4f8] sm:$0xff]  ;;  %v542_v30 = vld [vmem:[%s5810_s1 + $0xee8] sm:$0xff] }
  0x77   :  { %2699 = vmatprep.subr.bf16.mxu0 %v2698_v42  ;;  %v2718_v42 = vpack.c.bf16 %v524_v33, %v522_v32  ;;  %v544_v31 = vld [vmem:[%s5810_s1 + $0xef8] sm:$0xff]  ;;  %v2736_v33 = vpack.c.bf16 %v539_v27, %v537_v25 }
  0x78   :  { %v244_v25 = vld [vmem:[%s5810_s1 + $0x598] sm:$0xff] }
  0x79   :  { %2381 = vmatpush1.bf16.msra.mxu1 %v2380_v48  ;;  %v2400_v48 = vpack.c.bf16 %v203_v40, %v201_v39  ;;  %v543_v39 = vld [vmem:[%s5810_s1 + $0xef0] sm:$0xff]  ;;  %v226_v40 = vld [vmem:[%s5810_s1 + $0x508] sm:$0xff]  ;;  %v564_v27 = vld [vmem:[%s5810_s1 + $0xf98] sm:$0xff] }
  0x7a   :  { %2701 = vmatpush1.bf16.msra.mxu0 %v2700_v49  ;;  %2383 = vmatprep.subr.bf16.mxu1 %v2382_v50  ;;  %v2720_v49 = vpack.c.bf16 %v523_v43, %v521_v41  ;;  %v2402_v50 = vpack.c.bf16 %v208_v45, %v206_v44  ;;  %v228_v41 = vld [vmem:[%s5810_s1 + $0x518] sm:$0xff] }
  0x7b   :  { %2703 = vmatprep.subr.bf16.mxu0 %v2702_v54  ;;  %v2722_v54 = vpack.c.bf16 %v528_v47, %v526_v46  ;;  %v548_v43 = vld [vmem:[%s5810_s1 + $0xf18] sm:$0xff]  ;;  %v2422_v46 = vpack.c.bf16 %v228_v41, %v226_v40  ;;  %v225_v47 = vld [vmem:[%s5810_s1 + $0x500] sm:$0xff] }
  0x7d   :  { %2385 = vmatpush1.bf16.msra.mxu1 %v2384_v60  ;;  %v2404_v60 = vpack.c.bf16 %v207_v52, %v205_v51  ;;  %v547_v51 = vld [vmem:[%s5810_s1 + $0xf10] sm:$0xff]  ;;  %v230_v52 = vld [vmem:[%s5810_s1 + $0x528] sm:$0xff] }
  0x7e   :  { %2705 = vmatpush1.bf16.msra.mxu0 %v2704_v61  ;;  %2387 = vmatprep.subr.bf16.mxu1 %v2386_v62  ;;  %v2724_v61 = vpack.c.bf16 %v527_v55, %v525_v53  ;;  %v2406_v62 = vpack.c.bf16 %v212_v57, %v210_v56  ;;  %v232_v53 = vld [vmem:[%s5810_s1 + $0x538] sm:$0xff] }
  0x7f   :  { %2707 = vmatprep.subr.bf16.mxu0 %v2706_v2  ;;  %v2726_v2 = vpack.c.bf16 %v532_v59, %v530_v58  ;;  %v552_v55 = vld [vmem:[%s5810_s1 + $0xf38] sm:$0xff]  ;;  %v2426_v58 = vpack.c.bf16 %v232_v53, %v230_v52  ;;  %v229_v59 = vld [vmem:[%s5810_s1 + $0x520] sm:$0xff] }
  0x81   :  { %2389 = vmatpush1.bf16.msra.mxu1 %v2388_v8  ;;  %v2408_v8 = vpack.c.bf16 %v211_v0, %v209_v63  ;;  %v551_v63 = vld [vmem:[%s5810_s1 + $0xf30] sm:$0xff]  ;;  %v234_v0 = vld [vmem:[%s5810_s1 + $0x548] sm:$0xff] }
  0x82   :  { %2709 = vmatpush1.bf16.msra.mxu0 %v2708_v9  ;;  %2391 = vmatprep.subr.bf16.mxu1 %v2390_v10  ;;  %v2728_v9 = vpack.c.bf16 %v531_v3, %v529_v1  ;;  %v2410_v10 = vpack.c.bf16 %v216_v5, %v214_v4  ;;  %v236_v1 = vld [vmem:[%s5810_s1 + $0x558] sm:$0xff] }
  0x83   :  { %2711 = vmatprep.subr.bf16.mxu0 %v2710_v14  ;;  %v2730_v14 = vpack.c.bf16 %v536_v7, %v534_v6  ;;  %v556_v3 = vld [vmem:[%s5810_s1 + $0xf58] sm:$0xff]  ;;  %v2430_v6 = vpack.c.bf16 %v236_v1, %v234_v0  ;;  %v233_v7 = vld [vmem:[%s5810_s1 + $0x540] sm:$0xff] }
  0x84   :  { %1001 = vmatmul.mubr.f32.vlgmr.msra.gmra.mrb[0].mxu1 %v42_v20  ;;  %v2412_v20 = vpack.c.bf16 %v215_v12, %v213_v11  ;;  %v555_v11 = vld [vmem:[%s5810_s1 + $0xf50] sm:$0xff]  ;;  %v238_v12 = vld [vmem:[%s5810_s1 + $0x568] sm:$0xff] }
  0x85   :  { %2393 = vmatpush1.bf16.msra.mxu1 %v2392_v21  ;;  %1356 = vmatmul.mubr.f32.vlgmr.msra.gmra.mrb[0].mxu0 %v52_v22  ;;  %v2732_v21 = vpack.c.bf16 %v535_v15, %v533_v13  ;;  %v2414_v22 = vpack.c.bf16 %v220_v17, %v218_v16  ;;  %v240_v13 = vld [vmem:[%s5810_s1 + $0x578] sm:$0xff] }
  0x86   :  { %2713 = vmatpush1.bf16.msra.mxu0 %v2712_v23  ;;  %2395 = vmatprep.subr.bf16.mxu1 %v2394_v24  ;;  %v217_v23 = vld [vmem:[%s5810_s1 + $0x4c0] sm:$0xff]  ;;  %v219_v24 = vld [vmem:[%s5810_s1 + $0x4d0] sm:$0xff]  ;;  %v560_v15 = vld [vmem:[%s5810_s1 + $0xf78] sm:$0xff]  ;;  %v2434_v18 = vpack.c.bf16 %v240_v13, %v238_v12 }
  0x87   :  { %2715 = vmatprep.subr.bf16.mxu0 %v2714_v28  ;;  %1071 = vmatprep.mubr.f32.mxu1 %v45_v34  ;;  %v222_v28 = vld [vmem:[%s5810_s1 + $0x4e8] sm:$0xff]  ;;  %v2416_v32 = vpack.c.bf16 %v219_v24, %v217_v23  ;;  %v559_v23 = vld [vmem:[%s5810_s1 + $0xf70] sm:$0xff] }
  0x88   :  { %1426 = vmatprep.mubr.f32.mxu0 %v55_v36  ;;  %v2418_v34 = vpack.c.bf16 %v224_v29, %v222_v28  ;;  %v223_v36 = vld [vmem:[%s5810_s1 + $0x4f0] sm:$0xff]  ;;  %v242_v24 = vld [vmem:[%s5810_s1 + $0x588] sm:$0xff] }
  0x89   :  { %2397 = vmatpush1.bf16.msra.mxu1 %v2396_v35  ;;  %v221_v35 = vld [vmem:[%s5810_s1 + $0x4e0] sm:$0xff] }
  0x8a   :  { %2717 = vmatpush1.bf16.msra.mxu0 %v2716_v37  ;;  %2399 = vmatprep.subr.bf16.mxu1 %v2398_v38  ;;  %v541_v37 = vld [vmem:[%s5810_s1 + $0xee0] sm:$0xff]  ;;  %v2738_v38 = vpack.c.bf16 %v544_v31, %v542_v30  ;;  %v2420_v44 = vpack.c.bf16 %v223_v36, %v221_v35  ;;  %v2438_v30 = vpack.c.bf16 %v244_v25, %v242_v24  ;;  %v563_v35 = vld [vmem:[%s5810_s1 + $0xf90] sm:$0xff]  ;;  %v246_v36 = vld [vmem:[%s5810_s1 + $0x5a8] sm:$0xff] }
  0x8b   :  { %2719 = vmatprep.subr.bf16.mxu0 %v2718_v42  ;;  %v546_v42 = vld [vmem:[%s5810_s1 + $0xf08] sm:$0xff]  ;;  %v2740_v45 = vpack.c.bf16 %v543_v39, %v541_v37  ;;  %v241_v31 = vld [vmem:[%s5810_s1 + $0x580] sm:$0xff]  ;;  %v248_v37 = vld [vmem:[%s5810_s1 + $0x5b8] sm:$0xff] }
  0x8c   :  { %v568_v39 = vld [vmem:[%s5810_s1 + $0xfb8] sm:$0xff]  ;;  %v44_v24 = vld [vmem:[%s5811_s0 + $0x20] sm:$0xff] }
  0x8d   :  { %2401 = vmatpush1.bf16.msra.mxu1 %v2400_v48  ;;  %v227_v48 = vld [vmem:[%s5810_s1 + $0x510] sm:$0xff] }
  0x8e   :  { %2721 = vmatpush1.bf16.msra.mxu0 %v2720_v49  ;;  %2403 = vmatprep.subr.bf16.mxu1 %v2402_v50  ;;  %v545_v49 = vld [vmem:[%s5810_s1 + $0xf00] sm:$0xff]  ;;  %v2742_v50 = vpack.c.bf16 %v548_v43, %v546_v42  ;;  %v2424_v56 = vpack.c.bf16 %v227_v48, %v225_v47  ;;  %v2442_v42 = vpack.c.bf16 %v248_v37, %v246_v36  ;;  %v567_v47 = vld [vmem:[%s5810_s1 + $0xfb0] sm:$0xff]  ;;  %v250_v48 = vld [vmem:[%s5810_s1 + $0x5c8] sm:$0xff] }
  0x8f   :  { %2723 = vmatprep.subr.bf16.mxu0 %v2722_v54  ;;  %v550_v54 = vld [vmem:[%s5810_s1 + $0xf28] sm:$0xff]  ;;  %v2744_v57 = vpack.c.bf16 %v547_v51, %v545_v49  ;;  %v245_v43 = vld [vmem:[%s5810_s1 + $0x5a0] sm:$0xff]  ;;  %v252_v49 = vld [vmem:[%s5810_s1 + $0x5d8] sm:$0xff] }
  0x90   :  { %v572_v51 = vld [vmem:[%s5810_s1 + $0xfd8] sm:$0xff]  ;;  %v586_v36 = vld [vmem:[%s5810_s1 + $0x1048] sm:$0xff] }
  0x91   :  { %2405 = vmatpush1.bf16.msra.mxu1 %v2404_v60  ;;  %v231_v60 = vld [vmem:[%s5810_s1 + $0x530] sm:$0xff]  ;;  %v588_v37 = vld [vmem:[%s5810_s1 + $0x1058] sm:$0xff] }
  0x92   :  { %2725 = vmatpush1.bf16.msra.mxu0 %v2724_v61  ;;  %2407 = vmatprep.subr.bf16.mxu1 %v2406_v62  ;;  %v549_v61 = vld [vmem:[%s5810_s1 + $0xf20] sm:$0xff]  ;;  %v2746_v62 = vpack.c.bf16 %v552_v55, %v550_v54  ;;  %v2428_v4 = vpack.c.bf16 %v231_v60, %v229_v59  ;;  %v2446_v54 = vpack.c.bf16 %v252_v49, %v250_v48  ;;  %v571_v59 = vld [vmem:[%s5810_s1 + $0xfd0] sm:$0xff]  ;;  %v254_v60 = vld [vmem:[%s5810_s1 + $0x5e8] sm:$0xff] }
  0x93   :  { %2727 = vmatprep.subr.bf16.mxu0 %v2726_v2  ;;  %v554_v2 = vld [vmem:[%s5810_s1 + $0xf48] sm:$0xff]  ;;  %v2748_v5 = vpack.c.bf16 %v551_v63, %v549_v61  ;;  %v249_v55 = vld [vmem:[%s5810_s1 + $0x5c0] sm:$0xff]  ;;  %v256_v61 = vld [vmem:[%s5810_s1 + $0x5f8] sm:$0xff] }
  0x94   :  { %v576_v63 = vld [vmem:[%s5810_s1 + $0xff8] sm:$0xff]  ;;  %v270_v48 = vld [vmem:[%s5810_s1 + $0x668] sm:$0xff] }
  0x95   :  { %2409 = vmatpush1.bf16.msra.mxu1 %v2408_v8  ;;  %v235_v8 = vld [vmem:[%s5810_s1 + $0x550] sm:$0xff]  ;;  %v272_v49 = vld [vmem:[%s5810_s1 + $0x678] sm:$0xff] }
  0x96   :  { %2729 = vmatpush1.bf16.msra.mxu0 %v2728_v9  ;;  %2411 = vmatprep.subr.bf16.mxu1 %v2410_v10  ;;  %v553_v9 = vld [vmem:[%s5810_s1 + $0xf40] sm:$0xff]  ;;  %v2750_v10 = vpack.c.bf16 %v556_v3, %v554_v2  ;;  %v2432_v16 = vpack.c.bf16 %v235_v8, %v233_v7  ;;  %v2450_v2 = vpack.c.bf16 %v256_v61, %v254_v60  ;;  %v575_v7 = vld [vmem:[%s5810_s1 + $0xff0] sm:$0xff]  ;;  %v258_v8 = vld [vmem:[%s5810_s1 + $0x608] sm:$0xff] }
  0x97   :  { %2731 = vmatprep.subr.bf16.mxu0 %v2730_v14  ;;  %v558_v14 = vld [vmem:[%s5810_s1 + $0xf68] sm:$0xff]  ;;  %v2752_v17 = vpack.c.bf16 %v555_v11, %v553_v9  ;;  %v253_v3 = vld [vmem:[%s5810_s1 + $0x5e0] sm:$0xff]  ;;  %v260_v9 = vld [vmem:[%s5810_s1 + $0x618] sm:$0xff] }
  0x98   :  { %v580_v11 = vld [vmem:[%s5810_s1 + $0x1018] sm:$0xff]  ;;  %v274_v60 = vld [vmem:[%s5810_s1 + $0x688] sm:$0xff] }
  0x99   :  { %2413 = vmatpush1.bf16.msra.mxu1 %v2412_v20  ;;  %v239_v20 = vld [vmem:[%s5810_s1 + $0x570] sm:$0xff]  ;;  %v276_v61 = vld [vmem:[%s5810_s1 + $0x698] sm:$0xff] }
  0x9a   :  { %2733 = vmatpush1.bf16.msra.mxu0 %v2732_v21  ;;  %2415 = vmatprep.subr.bf16.mxu1 %v2414_v22  ;;  %v557_v21 = vld [vmem:[%s5810_s1 + $0xf60] sm:$0xff]  ;;  %v2754_v22 = vpack.c.bf16 %v560_v15, %v558_v14  ;;  %v2436_v28 = vpack.c.bf16 %v239_v20, %v237_v19  ;;  %v2454_v14 = vpack.c.bf16 %v260_v9, %v258_v8  ;;  %v579_v19 = vld [vmem:[%s5810_s1 + $0x1010] sm:$0xff]  ;;  %v262_v20 = vld [vmem:[%s5810_s1 + $0x628] sm:$0xff] }
  0x9b   :  { %2735 = vmatprep.subr.bf16.mxu0 %v2734_v26  ;;  %v562_v26 = vld [vmem:[%s5810_s1 + $0xf88] sm:$0xff]  ;;  %v2756_v29 = vpack.c.bf16 %v559_v23, %v557_v21  ;;  %v257_v15 = vld [vmem:[%s5810_s1 + $0x600] sm:$0xff]  ;;  %v264_v21 = vld [vmem:[%s5810_s1 + $0x638] sm:$0xff] }
  0x9c   :  { %v584_v23 = vld [vmem:[%s5810_s1 + $0x1038] sm:$0xff]  ;;  %v278_v8 = vld [vmem:[%s5810_s1 + $0x6a8] sm:$0xff] }
  0x9d   :  { %2417 = vmatpush1.bf16.msra.mxu1 %v2416_v32  ;;  %v243_v32 = vld [vmem:[%s5810_s1 + $0x590] sm:$0xff]  ;;  %v280_v9 = vld [vmem:[%s5810_s1 + $0x6b8] sm:$0xff] }
  0x9e   :  { %2737 = vmatpush1.bf16.msra.mxu0 %v2736_v33  ;;  %2419 = vmatprep.subr.bf16.mxu1 %v2418_v34  ;;  %v561_v33 = vld [vmem:[%s5810_s1 + $0xf80] sm:$0xff]  ;;  %v2758_v34 = vpack.c.bf16 %v564_v27, %v562_v26  ;;  %v2440_v40 = vpack.c.bf16 %v243_v32, %v241_v31  ;;  %v54_v26 = vld [vmem:[%s5811_s0 + $0x70] sm:$0xff] }
  0x9f   :  { %2739 = vmatprep.subr.bf16.mxu0 %v2738_v38  ;;  %v566_v38 = vld [vmem:[%s5810_s1 + $0xfa8] sm:$0xff]  ;;  %v2760_v41 = vpack.c.bf16 %v563_v35, %v561_v33  ;;  %v581_v31 = vld [vmem:[%s5810_s1 + $0x1020] sm:$0xff]  ;;  %v583_v33 = vld [vmem:[%s5810_s1 + $0x1030] sm:$0xff] }
  0xa0   :  { %v268_v35 = vld [vmem:[%s5810_s1 + $0x658] sm:$0xff] }
  0xa1   :  { %2421 = vmatpush1.bf16.msra.mxu1 %v2420_v44  ;;  %v247_v44 = vld [vmem:[%s5810_s1 + $0x5b0] sm:$0xff] }
  0xa2   :  { %2741 = vmatpush1.bf16.msra.mxu0 %v2740_v45  ;;  %2423 = vmatprep.subr.bf16.mxu1 %v2422_v46  ;;  %v565_v45 = vld [vmem:[%s5810_s1 + $0xfa0] sm:$0xff]  ;;  %v2762_v46 = vpack.c.bf16 %v568_v39, %v566_v38  ;;  %v2444_v52 = vpack.c.bf16 %v247_v44, %v245_v43  ;;  %v47_v38 = vld [vmem:[%s5811_s0 + $0x38] sm:$0xff]  ;;  %v267_v44 = vld [vmem:[%s5810_s1 + $0x650] sm:$0xff] }
  0xa3   :  { %2743 = vmatprep.subr.bf16.mxu0 %v2742_v50  ;;  %v570_v50 = vld [vmem:[%s5810_s1 + $0xfc8] sm:$0xff]  ;;  %v2764_v53 = vpack.c.bf16 %v567_v47, %v565_v45  ;;  %v265_v43 = vld [vmem:[%s5810_s1 + $0x640] sm:$0xff]  ;;  %v587_v47 = vld [vmem:[%s5810_s1 + $0x1050] sm:$0xff] }
  0xa4   :  { %v585_v45 = vld [vmem:[%s5810_s1 + $0x1040] sm:$0xff] }
  0xa5   :  { %2425 = vmatpush1.bf16.msra.mxu1 %v2424_v56  ;;  %v251_v56 = vld [vmem:[%s5810_s1 + $0x5d0] sm:$0xff] }
  0xa6   :  { %2745 = vmatpush1.bf16.msra.mxu0 %v2744_v57  ;;  %2427 = vmatprep.subr.bf16.mxu1 %v2426_v58  ;;  %v569_v57 = vld [vmem:[%s5810_s1 + $0xfc0] sm:$0xff]  ;;  %v2766_v58 = vpack.c.bf16 %v572_v51, %v570_v50  ;;  %v2448_v0 = vpack.c.bf16 %v251_v56, %v249_v55  ;;  %v590_v50 = vld [vmem:[%s5810_s1 + $0x1068] sm:$0xff]  ;;  %v592_v51 = vld [vmem:[%s5810_s1 + $0x1078] sm:$0xff] }
  0xa7   :  { %2747 = vmatprep.subr.bf16.mxu0 %v2746_v62  ;;  %v574_v62 = vld [vmem:[%s5810_s1 + $0xfe8] sm:$0xff]  ;;  %v2768_v1 = vpack.c.bf16 %v571_v59, %v569_v57  ;;  %v269_v55 = vld [vmem:[%s5810_s1 + $0x660] sm:$0xff]  ;;  %v271_v56 = vld [vmem:[%s5810_s1 + $0x670] sm:$0xff] }
  0xa8   :  { %v589_v57 = vld [vmem:[%s5810_s1 + $0x1060] sm:$0xff]  ;;  %v591_v59 = vld [vmem:[%s5810_s1 + $0x1070] sm:$0xff] }
  0xa9   :  { %2429 = vmatpush1.bf16.msra.mxu1 %v2428_v4  ;;  %v255_v4 = vld [vmem:[%s5810_s1 + $0x5f0] sm:$0xff] }
  0xaa   :  { %2749 = vmatpush1.bf16.msra.mxu0 %v2748_v5  ;;  %2431 = vmatprep.subr.bf16.mxu1 %v2430_v6  ;;  %v573_v5 = vld [vmem:[%s5810_s1 + $0xfe0] sm:$0xff]  ;;  %v2770_v6 = vpack.c.bf16 %v576_v63, %v574_v62  ;;  %v2452_v12 = vpack.c.bf16 %v255_v4, %v253_v3  ;;  %v594_v62 = vld [vmem:[%s5810_s1 + $0x1088] sm:$0xff]  ;;  %v596_v63 = vld [vmem:[%s5810_s1 + $0x1098] sm:$0xff] }
  0xab   :  { %2751 = vmatprep.subr.bf16.mxu0 %v2750_v10  ;;  %v578_v10 = vld [vmem:[%s5810_s1 + $0x1008] sm:$0xff]  ;;  %v2772_v13 = vpack.c.bf16 %v575_v7, %v573_v5  ;;  %v273_v3 = vld [vmem:[%s5810_s1 + $0x680] sm:$0xff]  ;;  %v275_v4 = vld [vmem:[%s5810_s1 + $0x690] sm:$0xff] }
  0xac   :  { %v593_v5 = vld [vmem:[%s5810_s1 + $0x1080] sm:$0xff]  ;;  %v595_v7 = vld [vmem:[%s5810_s1 + $0x1090] sm:$0xff] }
  0xad   :  { %2433 = vmatpush1.bf16.msra.mxu1 %v2432_v16  ;;  %v259_v16 = vld [vmem:[%s5810_s1 + $0x610] sm:$0xff] }
  0xae   :  { %2753 = vmatpush1.bf16.msra.mxu0 %v2752_v17  ;;  %2435 = vmatprep.subr.bf16.mxu1 %v2434_v18  ;;  %v577_v17 = vld [vmem:[%s5810_s1 + $0x1000] sm:$0xff]  ;;  %v2774_v18 = vpack.c.bf16 %v580_v11, %v578_v10  ;;  %v2456_v25 = vpack.c.bf16 %v259_v16, %v257_v15  ;;  %v598_v10 = vld [vmem:[%s5810_s1 + $0x10a8] sm:$0xff]  ;;  %v600_v11 = vld [vmem:[%s5810_s1 + $0x10b8] sm:$0xff] }
  0xaf   :  { %2755 = vmatprep.subr.bf16.mxu0 %v2754_v22  ;;  %v582_v22 = vld [vmem:[%s5810_s1 + $0x1028] sm:$0xff]  ;;  %v2776_v27 = vpack.c.bf16 %v579_v19, %v577_v17  ;;  %v277_v15 = vld [vmem:[%s5810_s1 + $0x6a0] sm:$0xff]  ;;  %v279_v16 = vld [vmem:[%s5810_s1 + $0x6b0] sm:$0xff] }
  0xb0   :  { %v2778_v32 = vpack.c.bf16 %v584_v23, %v582_v22  ;;  %v597_v17 = vld [vmem:[%s5810_s1 + $0x10a0] sm:$0xff]  ;;  %v599_v19 = vld [vmem:[%s5810_s1 + $0x10b0] sm:$0xff]  ;;  %v602_v22 = vld [vmem:[%s5810_s1 + $0x10c8] sm:$0xff] }
  0xb1   :  { %2437 = vmatpush1.bf16.msra.mxu1 %v2436_v28  ;;  %v2458_v28 = vpack.c.bf16 %v264_v21, %v262_v20  ;;  %v282_v20 = vld [vmem:[%s5810_s1 + $0x6c8] sm:$0xff]  ;;  %v284_v21 = vld [vmem:[%s5810_s1 + $0x6d8] sm:$0xff] }
  0xb2   :  { %2757 = vmatpush1.bf16.msra.mxu0 %v2756_v29  ;;  %2439 = vmatprep.subr.bf16.mxu1 %v2438_v30  ;;  %v261_v29 = vld [vmem:[%s5810_s1 + $0x620] sm:$0xff]  ;;  %v263_v30 = vld [vmem:[%s5810_s1 + $0x630] sm:$0xff]  ;;  %v604_v23 = vld [vmem:[%s5810_s1 + $0x10d8] sm:$0xff] }
  0xb3   :  { %2759 = vmatprep.subr.bf16.mxu0 %v2758_v34  ;;  %v266_v34 = vld [vmem:[%s5810_s1 + $0x648] sm:$0xff]  ;;  %v2460_v39 = vpack.c.bf16 %v263_v30, %v261_v29  ;;  %v601_v29 = vld [vmem:[%s5810_s1 + $0x10c0] sm:$0xff]  ;;  %v2798_v30 = vpack.c.bf16 %v604_v23, %v602_v22 }
  0xb4   :  { %v301_v23 = vld [vmem:[%s5810_s1 + $0x760] sm:$0xff] }
  0xb5   :  { %2441 = vmatpush1.bf16.msra.mxu1 %v2440_v40  ;;  %v57_v40 = vld [vmem:[%s5811_s0 + $0x88] sm:$0xff] }
  0xb6   :  { %2761 = vmatpush1.bf16.msra.mxu0 %v2760_v41  ;;  %2443 = vmatprep.subr.bf16.mxu1 %v2442_v42  ;;  %v2780_v41 = vpack.c.bf16 %v583_v33, %v581_v31  ;;  %v2462_v42 = vpack.c.bf16 %v268_v35, %v266_v34  ;;  %v603_v31 = vld [vmem:[%s5810_s1 + $0x10d0] sm:$0xff]  ;;  %v288_v33 = vld [vmem:[%s5810_s1 + $0x6f8] sm:$0xff]  ;;  %v606_v34 = vld [vmem:[%s5810_s1 + $0x10e8] sm:$0xff] }
  0xb7   :  { %2763 = vmatprep.subr.bf16.mxu0 %v2762_v46  ;;  %v2782_v46 = vpack.c.bf16 %v588_v37, %v586_v36  ;;  %v608_v35 = vld [vmem:[%s5810_s1 + $0x10f8] sm:$0xff]  ;;  %v2800_v37 = vpack.c.bf16 %v603_v31, %v601_v29 }
  0xb8   :  { %v308_v29 = vld [vmem:[%s5810_s1 + $0x798] sm:$0xff] }
  0xb9   :  { %2445 = vmatpush1.bf16.msra.mxu1 %v2444_v52  ;;  %v2464_v52 = vpack.c.bf16 %v267_v44, %v265_v43  ;;  %v607_v43 = vld [vmem:[%s5810_s1 + $0x10f0] sm:$0xff]  ;;  %v290_v44 = vld [vmem:[%s5810_s1 + $0x708] sm:$0xff]  ;;  %v628_v31 = vld [vmem:[%s5810_s1 + $0x1198] sm:$0xff] }
  0xba   :  { %2765 = vmatpush1.bf16.msra.mxu0 %v2764_v53  ;;  %2447 = vmatprep.subr.bf16.mxu1 %v2446_v54  ;;  %v2784_v53 = vpack.c.bf16 %v587_v47, %v585_v45  ;;  %v2466_v54 = vpack.c.bf16 %v272_v49, %v270_v48  ;;  %v292_v45 = vld [vmem:[%s5810_s1 + $0x718] sm:$0xff] }
  0xbb   :  { %2767 = vmatprep.subr.bf16.mxu0 %v2766_v58  ;;  %v2786_v58 = vpack.c.bf16 %v592_v51, %v590_v50  ;;  %v612_v47 = vld [vmem:[%s5810_s1 + $0x1118] sm:$0xff]  ;;  %v2486_v50 = vpack.c.bf16 %v292_v45, %v290_v44  ;;  %v289_v51 = vld [vmem:[%s5810_s1 + $0x700] sm:$0xff] }
  0xbd   :  { %2449 = vmatpush1.bf16.msra.mxu1 %v2448_v0  ;;  %v2468_v0 = vpack.c.bf16 %v271_v56, %v269_v55  ;;  %v611_v55 = vld [vmem:[%s5810_s1 + $0x1110] sm:$0xff]  ;;  %v294_v56 = vld [vmem:[%s5810_s1 + $0x728] sm:$0xff] }
  0xbe   :  { %2769 = vmatpush1.bf16.msra.mxu0 %v2768_v1  ;;  %2451 = vmatprep.subr.bf16.mxu1 %v2450_v2  ;;  %v2788_v1 = vpack.c.bf16 %v591_v59, %v589_v57  ;;  %v2470_v2 = vpack.c.bf16 %v276_v61, %v274_v60  ;;  %v296_v57 = vld [vmem:[%s5810_s1 + $0x738] sm:$0xff] }
  0xbf   :  { %2771 = vmatprep.subr.bf16.mxu0 %v2770_v6  ;;  %v2790_v6 = vpack.c.bf16 %v596_v63, %v594_v62  ;;  %v616_v59 = vld [vmem:[%s5810_s1 + $0x1138] sm:$0xff]  ;;  %v2490_v62 = vpack.c.bf16 %v296_v57, %v294_v56  ;;  %v293_v63 = vld [vmem:[%s5810_s1 + $0x720] sm:$0xff] }
  0xc1   :  { %2453 = vmatpush1.bf16.msra.mxu1 %v2452_v12  ;;  %v2472_v12 = vpack.c.bf16 %v275_v4, %v273_v3  ;;  %v615_v3 = vld [vmem:[%s5810_s1 + $0x1130] sm:$0xff]  ;;  %v298_v4 = vld [vmem:[%s5810_s1 + $0x748] sm:$0xff] }
  0xc2   :  { %2773 = vmatpush1.bf16.msra.mxu0 %v2772_v13  ;;  %2455 = vmatprep.subr.bf16.mxu1 %v2454_v14  ;;  %v2792_v13 = vpack.c.bf16 %v595_v7, %v593_v5  ;;  %v2474_v14 = vpack.c.bf16 %v280_v9, %v278_v8  ;;  %v300_v5 = vld [vmem:[%s5810_s1 + $0x758] sm:$0xff] }
  0xc3   :  { %2775 = vmatprep.subr.bf16.mxu0 %v2774_v18  ;;  %v2794_v18 = vpack.c.bf16 %v600_v11, %v598_v10  ;;  %v620_v7 = vld [vmem:[%s5810_s1 + $0x1158] sm:$0xff]  ;;  %v2494_v10 = vpack.c.bf16 %v300_v5, %v298_v4  ;;  %v297_v11 = vld [vmem:[%s5810_s1 + $0x740] sm:$0xff] }
  0xc4   :  { %1072 = vmatmul.mubr.f32.vlgmr.msra.gmra.mrb[0].mxu1 %v44_v24  ;;  %v2476_v24 = vpack.c.bf16 %v279_v16, %v277_v15  ;;  %v619_v15 = vld [vmem:[%s5810_s1 + $0x1150] sm:$0xff]  ;;  %v302_v16 = vld [vmem:[%s5810_s1 + $0x768] sm:$0xff] }
  0xc5   :  { %2457 = vmatpush1.bf16.msra.mxu1 %v2456_v25  ;;  %1427 = vmatmul.mubr.f32.vlgmr.msra.gmra.mrb[0].mxu0 %v54_v26  ;;  %v2796_v25 = vpack.c.bf16 %v599_v19, %v597_v17  ;;  %v2478_v26 = vpack.c.bf16 %v284_v21, %v282_v20  ;;  %v304_v17 = vld [vmem:[%s5810_s1 + $0x778] sm:$0xff] }
  0xc6   :  { %2777 = vmatpush1.bf16.msra.mxu0 %v2776_v27  ;;  %2459 = vmatprep.subr.bf16.mxu1 %v2458_v28  ;;  %v281_v27 = vld [vmem:[%s5810_s1 + $0x6c0] sm:$0xff]  ;;  %v283_v28 = vld [vmem:[%s5810_s1 + $0x6d0] sm:$0xff]  ;;  %v624_v19 = vld [vmem:[%s5810_s1 + $0x1178] sm:$0xff]  ;;  %v2498_v22 = vpack.c.bf16 %v304_v17, %v302_v16 }
  0xc7   :  { %2779 = vmatprep.subr.bf16.mxu0 %v2778_v32  ;;  %1142 = vmatprep.mubr.f32.mxu1 %v47_v38  ;;  %v286_v32 = vld [vmem:[%s5810_s1 + $0x6e8] sm:$0xff]  ;;  %v2480_v36 = vpack.c.bf16 %v283_v28, %v281_v27  ;;  %v623_v27 = vld [vmem:[%s5810_s1 + $0x1170] sm:$0xff] }
  0xc8   :  { %1497 = vmatprep.mubr.f32.mxu0 %v57_v40  ;;  %v2482_v38 = vpack.c.bf16 %v288_v33, %v286_v32  ;;  %v287_v40 = vld [vmem:[%s5810_s1 + $0x6f0] sm:$0xff]  ;;  %v306_v28 = vld [vmem:[%s5810_s1 + $0x788] sm:$0xff] }
  0xc9   :  { %2461 = vmatpush1.bf16.msra.mxu1 %v2460_v39  ;;  %v285_v39 = vld [vmem:[%s5810_s1 + $0x6e0] sm:$0xff] }
  0xca   :  { %2781 = vmatpush1.bf16.msra.mxu0 %v2780_v41  ;;  %2463 = vmatprep.subr.bf16.mxu1 %v2462_v42  ;;  %v605_v41 = vld [vmem:[%s5810_s1 + $0x10e0] sm:$0xff]  ;;  %v2802_v42 = vpack.c.bf16 %v608_v35, %v606_v34  ;;  %v2484_v48 = vpack.c.bf16 %v287_v40, %v285_v39  ;;  %v2502_v34 = vpack.c.bf16 %v308_v29, %v306_v28  ;;  %v627_v39 = vld [vmem:[%s5810_s1 + $0x1190] sm:$0xff]  ;;  %v310_v40 = vld [vmem:[%s5810_s1 + $0x7a8] sm:$0xff] }
  0xcb   :  { %2783 = vmatprep.subr.bf16.mxu0 %v2782_v46  ;;  %v610_v46 = vld [vmem:[%s5810_s1 + $0x1108] sm:$0xff]  ;;  %v2804_v49 = vpack.c.bf16 %v607_v43, %v605_v41  ;;  %v305_v35 = vld [vmem:[%s5810_s1 + $0x780] sm:$0xff]  ;;  %v312_v41 = vld [vmem:[%s5810_s1 + $0x7b8] sm:$0xff] }
  0xcc   :  { %v632_v43 = vld [vmem:[%s5810_s1 + $0x11b8] sm:$0xff]  ;;  %v46_v28 = vld [vmem:[%s5811_s0 + $0x30] sm:$0xff] }
  0xcd   :  { %2465 = vmatpush1.bf16.msra.mxu1 %v2464_v52  ;;  %v291_v52 = vld [vmem:[%s5810_s1 + $0x710] sm:$0xff] }
  0xce   :  { %2785 = vmatpush1.bf16.msra.mxu0 %v2784_v53  ;;  %2467 = vmatprep.subr.bf16.mxu1 %v2466_v54  ;;  %v609_v53 = vld [vmem:[%s5810_s1 + $0x1100] sm:$0xff]  ;;  %v2806_v54 = vpack.c.bf16 %v612_v47, %v610_v46  ;;  %v2488_v60 = vpack.c.bf16 %v291_v52, %v289_v51  ;;  %v2506_v46 = vpack.c.bf16 %v312_v41, %v310_v40  ;;  %v631_v51 = vld [vmem:[%s5810_s1 + $0x11b0] sm:$0xff]  ;;  %v314_v52 = vld [vmem:[%s5810_s1 + $0x7c8] sm:$0xff] }
  0xcf   :  { %2787 = vmatprep.subr.bf16.mxu0 %v2786_v58  ;;  %v614_v58 = vld [vmem:[%s5810_s1 + $0x1128] sm:$0xff]  ;;  %v2808_v61 = vpack.c.bf16 %v611_v55, %v609_v53  ;;  %v309_v47 = vld [vmem:[%s5810_s1 + $0x7a0] sm:$0xff]  ;;  %v316_v53 = vld [vmem:[%s5810_s1 + $0x7d8] sm:$0xff] }
  0xd0   :  { %v636_v55 = vld [vmem:[%s5810_s1 + $0x11d8] sm:$0xff]  ;;  %v650_v40 = vld [vmem:[%s5810_s1 + $0x1248] sm:$0xff] }
  0xd1   :  { %2469 = vmatpush1.bf16.msra.mxu1 %v2468_v0  ;;  %v295_v0 = vld [vmem:[%s5810_s1 + $0x730] sm:$0xff]  ;;  %v652_v41 = vld [vmem:[%s5810_s1 + $0x1258] sm:$0xff] }
  0xd2   :  { %2789 = vmatpush1.bf16.msra.mxu0 %v2788_v1  ;;  %2471 = vmatprep.subr.bf16.mxu1 %v2470_v2  ;;  %v613_v1 = vld [vmem:[%s5810_s1 + $0x1120] sm:$0xff]  ;;  %v2810_v2 = vpack.c.bf16 %v616_v59, %v614_v58  ;;  %v2492_v8 = vpack.c.bf16 %v295_v0, %v293_v63  ;;  %v2510_v58 = vpack.c.bf16 %v316_v53, %v314_v52  ;;  %v635_v63 = vld [vmem:[%s5810_s1 + $0x11d0] sm:$0xff]  ;;  %v318_v0 = vld [vmem:[%s5810_s1 + $0x7e8] sm:$0xff] }
  0xd3   :  { %2791 = vmatprep.subr.bf16.mxu0 %v2790_v6  ;;  %v618_v6 = vld [vmem:[%s5810_s1 + $0x1148] sm:$0xff]  ;;  %v2812_v9 = vpack.c.bf16 %v615_v3, %v613_v1  ;;  %v313_v59 = vld [vmem:[%s5810_s1 + $0x7c0] sm:$0xff]  ;;  %v320_v1 = vld [vmem:[%s5810_s1 + $0x7f8] sm:$0xff] }
  0xd4   :  { %v640_v3 = vld [vmem:[%s5810_s1 + $0x11f8] sm:$0xff]  ;;  %v334_v52 = vld [vmem:[%s5810_s1 + $0x868] sm:$0xff] }
  0xd5   :  { %2473 = vmatpush1.bf16.msra.mxu1 %v2472_v12  ;;  %v299_v12 = vld [vmem:[%s5810_s1 + $0x750] sm:$0xff]  ;;  %v336_v53 = vld [vmem:[%s5810_s1 + $0x878] sm:$0xff] }
  0xd6   :  { %2793 = vmatpush1.bf16.msra.mxu0 %v2792_v13  ;;  %2475 = vmatprep.subr.bf16.mxu1 %v2474_v14  ;;  %v617_v13 = vld [vmem:[%s5810_s1 + $0x1140] sm:$0xff]  ;;  %v2814_v14 = vpack.c.bf16 %v620_v7, %v618_v6  ;;  %v2496_v20 = vpack.c.bf16 %v299_v12, %v297_v11  ;;  %v2514_v6 = vpack.c.bf16 %v320_v1, %v318_v0  ;;  %v639_v11 = vld [vmem:[%s5810_s1 + $0x11f0] sm:$0xff]  ;;  %v322_v12 = vld [vmem:[%s5810_s1 + $0x808] sm:$0xff] }
  0xd7   :  { %2795 = vmatprep.subr.bf16.mxu0 %v2794_v18  ;;  %v622_v18 = vld [vmem:[%s5810_s1 + $0x1168] sm:$0xff]  ;;  %v2816_v21 = vpack.c.bf16 %v619_v15, %v617_v13  ;;  %v317_v7 = vld [vmem:[%s5810_s1 + $0x7e0] sm:$0xff]  ;;  %v324_v13 = vld [vmem:[%s5810_s1 + $0x818] sm:$0xff] }
  0xd8   :  { %v644_v15 = vld [vmem:[%s5810_s1 + $0x1218] sm:$0xff]  ;;  %v338_v0 = vld [vmem:[%s5810_s1 + $0x888] sm:$0xff] }
  0xd9   :  { %2477 = vmatpush1.bf16.msra.mxu1 %v2476_v24  ;;  %v303_v24 = vld [vmem:[%s5810_s1 + $0x770] sm:$0xff]  ;;  %v340_v1 = vld [vmem:[%s5810_s1 + $0x898] sm:$0xff] }
  0xda   :  { %2797 = vmatpush1.bf16.msra.mxu0 %v2796_v25  ;;  %2479 = vmatprep.subr.bf16.mxu1 %v2478_v26  ;;  %v621_v25 = vld [vmem:[%s5810_s1 + $0x1160] sm:$0xff]  ;;  %v2818_v26 = vpack.c.bf16 %v624_v19, %v622_v18  ;;  %v2500_v32 = vpack.c.bf16 %v303_v24, %v301_v23  ;;  %v2518_v18 = vpack.c.bf16 %v324_v13, %v322_v12  ;;  %v643_v23 = vld [vmem:[%s5810_s1 + $0x1210] sm:$0xff]  ;;  %v326_v24 = vld [vmem:[%s5810_s1 + $0x828] sm:$0xff] }
  0xdb   :  { %2799 = vmatprep.subr.bf16.mxu0 %v2798_v30  ;;  %v626_v30 = vld [vmem:[%s5810_s1 + $0x1188] sm:$0xff]  ;;  %v2820_v33 = vpack.c.bf16 %v623_v27, %v621_v25  ;;  %v321_v19 = vld [vmem:[%s5810_s1 + $0x800] sm:$0xff]  ;;  %v328_v25 = vld [vmem:[%s5810_s1 + $0x838] sm:$0xff] }
  0xdc   :  { %v648_v27 = vld [vmem:[%s5810_s1 + $0x1238] sm:$0xff]  ;;  %v342_v12 = vld [vmem:[%s5810_s1 + $0x8a8] sm:$0xff] }
  0xdd   :  { %2481 = vmatpush1.bf16.msra.mxu1 %v2480_v36  ;;  %v307_v36 = vld [vmem:[%s5810_s1 + $0x790] sm:$0xff]  ;;  %v344_v13 = vld [vmem:[%s5810_s1 + $0x8b8] sm:$0xff] }
  0xde   :  { %2801 = vmatpush1.bf16.msra.mxu0 %v2800_v37  ;;  %2483 = vmatprep.subr.bf16.mxu1 %v2482_v38  ;;  %v625_v37 = vld [vmem:[%s5810_s1 + $0x1180] sm:$0xff]  ;;  %v2822_v38 = vpack.c.bf16 %v628_v31, %v626_v30  ;;  %v2504_v44 = vpack.c.bf16 %v307_v36, %v305_v35 }
  0xdf   :  { %2803 = vmatprep.subr.bf16.mxu0 %v2802_v42  ;;  %v630_v42 = vld [vmem:[%s5810_s1 + $0x11a8] sm:$0xff]  ;;  %v2824_v45 = vpack.c.bf16 %v627_v39, %v625_v37  ;;  %v56_v30 = vld [vmem:[%s5811_s0 + $0x80] sm:$0xff]  ;;  %v647_v37 = vld [vmem:[%s5810_s1 + $0x1230] sm:$0xff] }
  0xe0   :  { %v645_v35 = vld [vmem:[%s5810_s1 + $0x1220] sm:$0xff]  ;;  %v332_v39 = vld [vmem:[%s5810_s1 + $0x858] sm:$0xff] }
  0xe1   :  { %2485 = vmatpush1.bf16.msra.mxu1 %v2484_v48  ;;  %v311_v48 = vld [vmem:[%s5810_s1 + $0x7b0] sm:$0xff] }
  0xe2   :  { %2805 = vmatpush1.bf16.msra.mxu0 %v2804_v49  ;;  %2487 = vmatprep.subr.bf16.mxu1 %v2486_v50  ;;  %v629_v49 = vld [vmem:[%s5810_s1 + $0x11a0] sm:$0xff]  ;;  %v2826_v50 = vpack.c.bf16 %v632_v43, %v630_v42  ;;  %v2508_v56 = vpack.c.bf16 %v311_v48, %v309_v47  ;;  %v49_v42 = vld [vmem:[%s5811_s0 + $0x48] sm:$0xff]  ;;  %v331_v48 = vld [vmem:[%s5810_s1 + $0x850] sm:$0xff] }
  0xe3   :  { %2807 = vmatprep.subr.bf16.mxu0 %v2806_v54  ;;  %v634_v54 = vld [vmem:[%s5810_s1 + $0x11c8] sm:$0xff]  ;;  %v2828_v57 = vpack.c.bf16 %v631_v51, %v629_v49  ;;  %v329_v47 = vld [vmem:[%s5810_s1 + $0x840] sm:$0xff]  ;;  %v651_v51 = vld [vmem:[%s5810_s1 + $0x1250] sm:$0xff] }
  0xe4   :  { %v649_v49 = vld [vmem:[%s5810_s1 + $0x1240] sm:$0xff] }
  0xe5   :  { %2489 = vmatpush1.bf16.msra.mxu1 %v2488_v60  ;;  %v315_v60 = vld [vmem:[%s5810_s1 + $0x7d0] sm:$0xff] }
  0xe6   :  { %2809 = vmatpush1.bf16.msra.mxu0 %v2808_v61  ;;  %2491 = vmatprep.subr.bf16.mxu1 %v2490_v62  ;;  %v633_v61 = vld [vmem:[%s5810_s1 + $0x11c0] sm:$0xff]  ;;  %v2830_v62 = vpack.c.bf16 %v636_v55, %v634_v54  ;;  %v2512_v4 = vpack.c.bf16 %v315_v60, %v313_v59  ;;  %v654_v54 = vld [vmem:[%s5810_s1 + $0x1268] sm:$0xff]  ;;  %v656_v55 = vld [vmem:[%s5810_s1 + $0x1278] sm:$0xff] }
  0xe7   :  { %2811 = vmatprep.subr.bf16.mxu0 %v2810_v2  ;;  %v638_v2 = vld [vmem:[%s5810_s1 + $0x11e8] sm:$0xff]  ;;  %v2832_v5 = vpack.c.bf16 %v635_v63, %v633_v61  ;;  %v333_v59 = vld [vmem:[%s5810_s1 + $0x860] sm:$0xff]  ;;  %v335_v60 = vld [vmem:[%s5810_s1 + $0x870] sm:$0xff] }
  0xe8   :  { %v653_v61 = vld [vmem:[%s5810_s1 + $0x1260] sm:$0xff]  ;;  %v655_v63 = vld [vmem:[%s5810_s1 + $0x1270] sm:$0xff] }
  0xe9   :  { %2493 = vmatpush1.bf16.msra.mxu1 %v2492_v8  ;;  %v319_v8 = vld [vmem:[%s5810_s1 + $0x7f0] sm:$0xff] }
  0xea   :  { %2813 = vmatpush1.bf16.msra.mxu0 %v2812_v9  ;;  %2495 = vmatprep.subr.bf16.mxu1 %v2494_v10  ;;  %v637_v9 = vld [vmem:[%s5810_s1 + $0x11e0] sm:$0xff]  ;;  %v2834_v10 = vpack.c.bf16 %v640_v3, %v638_v2  ;;  %v2516_v16 = vpack.c.bf16 %v319_v8, %v317_v7  ;;  %v658_v2 = vld [vmem:[%s5810_s1 + $0x1288] sm:$0xff]  ;;  %v660_v3 = vld [vmem:[%s5810_s1 + $0x1298] sm:$0xff] }
  0xeb   :  { %2815 = vmatprep.subr.bf16.mxu0 %v2814_v14  ;;  %v642_v14 = vld [vmem:[%s5810_s1 + $0x1208] sm:$0xff]  ;;  %v2836_v17 = vpack.c.bf16 %v639_v11, %v637_v9  ;;  %v337_v7 = vld [vmem:[%s5810_s1 + $0x880] sm:$0xff]  ;;  %v339_v8 = vld [vmem:[%s5810_s1 + $0x890] sm:$0xff] }
  0xec   :  { %v657_v9 = vld [vmem:[%s5810_s1 + $0x1280] sm:$0xff]  ;;  %v659_v11 = vld [vmem:[%s5810_s1 + $0x1290] sm:$0xff] }
  0xed   :  { %2497 = vmatpush1.bf16.msra.mxu1 %v2496_v20  ;;  %v323_v20 = vld [vmem:[%s5810_s1 + $0x810] sm:$0xff] }
  0xee   :  { %2817 = vmatpush1.bf16.msra.mxu0 %v2816_v21  ;;  %2499 = vmatprep.subr.bf16.mxu1 %v2498_v22  ;;  %v641_v21 = vld [vmem:[%s5810_s1 + $0x1200] sm:$0xff]  ;;  %v2838_v22 = vpack.c.bf16 %v644_v15, %v642_v14  ;;  %v2520_v29 = vpack.c.bf16 %v323_v20, %v321_v19  ;;  %v662_v14 = vld [vmem:[%s5810_s1 + $0x12a8] sm:$0xff]  ;;  %v664_v15 = vld [vmem:[%s5810_s1 + $0x12b8] sm:$0xff] }
  0xef   :  { %2819 = vmatprep.subr.bf16.mxu0 %v2818_v26  ;;  %v646_v26 = vld [vmem:[%s5810_s1 + $0x1228] sm:$0xff]  ;;  %v2840_v31 = vpack.c.bf16 %v643_v23, %v641_v21  ;;  %v341_v19 = vld [vmem:[%s5810_s1 + $0x8a0] sm:$0xff]  ;;  %v343_v20 = vld [vmem:[%s5810_s1 + $0x8b0] sm:$0xff] }
  0xf0   :  { %v2842_v36 = vpack.c.bf16 %v648_v27, %v646_v26  ;;  %v661_v21 = vld [vmem:[%s5810_s1 + $0x12a0] sm:$0xff]  ;;  %v663_v23 = vld [vmem:[%s5810_s1 + $0x12b0] sm:$0xff]  ;;  %v666_v26 = vld [vmem:[%s5810_s1 + $0x12c8] sm:$0xff] }
  0xf1   :  { %2501 = vmatpush1.bf16.msra.mxu1 %v2500_v32  ;;  %v2522_v32 = vpack.c.bf16 %v328_v25, %v326_v24  ;;  %v346_v24 = vld [vmem:[%s5810_s1 + $0x8c8] sm:$0xff]  ;;  %v348_v25 = vld [vmem:[%s5810_s1 + $0x8d8] sm:$0xff] }
  0xf2   :  { %2821 = vmatpush1.bf16.msra.mxu0 %v2820_v33  ;;  %2503 = vmatprep.subr.bf16.mxu1 %v2502_v34  ;;  %v325_v33 = vld [vmem:[%s5810_s1 + $0x820] sm:$0xff]  ;;  %v327_v34 = vld [vmem:[%s5810_s1 + $0x830] sm:$0xff]  ;;  %v668_v27 = vld [vmem:[%s5810_s1 + $0x12d8] sm:$0xff] }
  0xf3   :  { %2823 = vmatprep.subr.bf16.mxu0 %v2822_v38  ;;  %v330_v38 = vld [vmem:[%s5810_s1 + $0x848] sm:$0xff]  ;;  %v2524_v43 = vpack.c.bf16 %v327_v34, %v325_v33  ;;  %v665_v33 = vld [vmem:[%s5810_s1 + $0x12c0] sm:$0xff]  ;;  %v2862_v34 = vpack.c.bf16 %v668_v27, %v666_v26 }
  0xf4   :  { %v365_v27 = vld [vmem:[%s5810_s1 + $0x960] sm:$0xff] }
  0xf5   :  { %2505 = vmatpush1.bf16.msra.mxu1 %v2504_v44  ;;  %v59_v44 = vld [vmem:[%s5811_s0 + $0x98] sm:$0xff] }
  0xf6   :  { %2825 = vmatpush1.bf16.msra.mxu0 %v2824_v45  ;;  %2507 = vmatprep.subr.bf16.mxu1 %v2506_v46  ;;  %v2844_v45 = vpack.c.bf16 %v647_v37, %v645_v35  ;;  %v2526_v46 = vpack.c.bf16 %v332_v39, %v330_v38  ;;  %v667_v35 = vld [vmem:[%s5810_s1 + $0x12d0] sm:$0xff]  ;;  %v352_v37 = vld [vmem:[%s5810_s1 + $0x8f8] sm:$0xff]  ;;  %v670_v38 = vld [vmem:[%s5810_s1 + $0x12e8] sm:$0xff] }
  0xf7   :  { %2827 = vmatprep.subr.bf16.mxu0 %v2826_v50  ;;  %v2846_v50 = vpack.c.bf16 %v652_v41, %v650_v40  ;;  %v672_v39 = vld [vmem:[%s5810_s1 + $0x12f8] sm:$0xff]  ;;  %v2864_v41 = vpack.c.bf16 %v667_v35, %v665_v33 }
  0xf8   :  { %v372_v33 = vld [vmem:[%s5810_s1 + $0x998] sm:$0xff] }
  0xf9   :  { %2509 = vmatpush1.bf16.msra.mxu1 %v2508_v56  ;;  %v2528_v56 = vpack.c.bf16 %v331_v48, %v329_v47  ;;  %v671_v47 = vld [vmem:[%s5810_s1 + $0x12f0] sm:$0xff]  ;;  %v354_v48 = vld [vmem:[%s5810_s1 + $0x908] sm:$0xff]  ;;  %v692_v35 = vld [vmem:[%s5810_s1 + $0x1398] sm:$0xff] }
  0xfa   :  { %2829 = vmatpush1.bf16.msra.mxu0 %v2828_v57  ;;  %2511 = vmatprep.subr.bf16.mxu1 %v2510_v58  ;;  %v2848_v57 = vpack.c.bf16 %v651_v51, %v649_v49  ;;  %v2530_v58 = vpack.c.bf16 %v336_v53, %v334_v52  ;;  %v356_v49 = vld [vmem:[%s5810_s1 + $0x918] sm:$0xff] }
  0xfb   :  { %2831 = vmatprep.subr.bf16.mxu0 %v2830_v62  ;;  %v2850_v62 = vpack.c.bf16 %v656_v55, %v654_v54  ;;  %v676_v51 = vld [vmem:[%s5810_s1 + $0x1318] sm:$0xff]  ;;  %v2550_v54 = vpack.c.bf16 %v356_v49, %v354_v48  ;;  %v353_v55 = vld [vmem:[%s5810_s1 + $0x900] sm:$0xff] }
  0xfd   :  { %2513 = vmatpush1.bf16.msra.mxu1 %v2512_v4  ;;  %v2532_v4 = vpack.c.bf16 %v335_v60, %v333_v59  ;;  %v675_v59 = vld [vmem:[%s5810_s1 + $0x1310] sm:$0xff]  ;;  %v358_v60 = vld [vmem:[%s5810_s1 + $0x928] sm:$0xff] }
  0xfe   :  { %2833 = vmatpush1.bf16.msra.mxu0 %v2832_v5  ;;  %2515 = vmatprep.subr.bf16.mxu1 %v2514_v6  ;;  %v2852_v5 = vpack.c.bf16 %v655_v63, %v653_v61  ;;  %v2534_v6 = vpack.c.bf16 %v340_v1, %v338_v0  ;;  %v360_v61 = vld [vmem:[%s5810_s1 + $0x938] sm:$0xff] }
  0xff   :  { %2835 = vmatprep.subr.bf16.mxu0 %v2834_v10  ;;  %v2854_v10 = vpack.c.bf16 %v660_v3, %v658_v2  ;;  %v680_v63 = vld [vmem:[%s5810_s1 + $0x1338] sm:$0xff]  ;;  %v2554_v2 = vpack.c.bf16 %v360_v61, %v358_v60  ;;  %v357_v3 = vld [vmem:[%s5810_s1 + $0x920] sm:$0xff] }
 0x101   :  { %2517 = vmatpush1.bf16.msra.mxu1 %v2516_v16  ;;  %v2536_v16 = vpack.c.bf16 %v339_v8, %v337_v7  ;;  %v679_v7 = vld [vmem:[%s5810_s1 + $0x1330] sm:$0xff]  ;;  %v362_v8 = vld [vmem:[%s5810_s1 + $0x948] sm:$0xff] }
 0x102   :  { %2837 = vmatpush1.bf16.msra.mxu0 %v2836_v17  ;;  %2519 = vmatprep.subr.bf16.mxu1 %v2518_v18  ;;  %v2856_v17 = vpack.c.bf16 %v659_v11, %v657_v9  ;;  %v2538_v18 = vpack.c.bf16 %v344_v13, %v342_v12  ;;  %v364_v9 = vld [vmem:[%s5810_s1 + $0x958] sm:$0xff] }
 0x103   :  { %2839 = vmatprep.subr.bf16.mxu0 %v2838_v22  ;;  %v2858_v22 = vpack.c.bf16 %v664_v15, %v662_v14  ;;  %v684_v11 = vld [vmem:[%s5810_s1 + $0x1358] sm:$0xff]  ;;  %v2558_v14 = vpack.c.bf16 %v364_v9, %v362_v8  ;;  %v361_v15 = vld [vmem:[%s5810_s1 + $0x940] sm:$0xff] }
 0x104   :  { %1143 = vmatmul.mubr.f32.vlgmr.msra.gmra.mrb[0].mxu1 %v46_v28  ;;  %v2540_v28 = vpack.c.bf16 %v343_v20, %v341_v19  ;;  %v683_v19 = vld [vmem:[%s5810_s1 + $0x1350] sm:$0xff]  ;;  %v366_v20 = vld [vmem:[%s5810_s1 + $0x968] sm:$0xff] }
 0x105   :  { %2521 = vmatpush1.bf16.msra.mxu1 %v2520_v29  ;;  %1498 = vmatmul.mubr.f32.vlgmr.msra.gmra.mrb[0].mxu0 %v56_v30  ;;  %v2860_v29 = vpack.c.bf16 %v663_v23, %v661_v21  ;;  %v2542_v30 = vpack.c.bf16 %v348_v25, %v346_v24  ;;  %v368_v21 = vld [vmem:[%s5810_s1 + $0x978] sm:$0xff] }
 0x106   :  { %2841 = vmatpush1.bf16.msra.mxu0 %v2840_v31  ;;  %2523 = vmatprep.subr.bf16.mxu1 %v2522_v32  ;;  %v345_v31 = vld [vmem:[%s5810_s1 + $0x8c0] sm:$0xff]  ;;  %v347_v32 = vld [vmem:[%s5810_s1 + $0x8d0] sm:$0xff]  ;;  %v688_v23 = vld [vmem:[%s5810_s1 + $0x1378] sm:$0xff]  ;;  %v2562_v26 = vpack.c.bf16 %v368_v21, %v366_v20 }
 0x107   :  { %2843 = vmatprep.subr.bf16.mxu0 %v2842_v36  ;;  %1213 = vmatprep.mubr.f32.mxu1 %v49_v42  ;;  %v350_v36 = vld [vmem:[%s5810_s1 + $0x8e8] sm:$0xff]  ;;  %v2544_v40 = vpack.c.bf16 %v347_v32, %v345_v31  ;;  %v687_v31 = vld [vmem:[%s5810_s1 + $0x1370] sm:$0xff] }
 0x108   :  { %1568 = vmatprep.mubr.f32.mxu0 %v59_v44  ;;  %v2546_v42 = vpack.c.bf16 %v352_v37, %v350_v36  ;;  %v351_v44 = vld [vmem:[%s5810_s1 + $0x8f0] sm:$0xff]  ;;  %v370_v32 = vld [vmem:[%s5810_s1 + $0x988] sm:$0xff] }
 0x109   :  { %2525 = vmatpush1.bf16.msra.mxu1 %v2524_v43  ;;  %v349_v43 = vld [vmem:[%s5810_s1 + $0x8e0] sm:$0xff] }
 0x10a   :  { %2845 = vmatpush1.bf16.msra.mxu0 %v2844_v45  ;;  %2527 = vmatprep.subr.bf16.mxu1 %v2526_v46  ;;  %v669_v45 = vld [vmem:[%s5810_s1 + $0x12e0] sm:$0xff]  ;;  %v2866_v46 = vpack.c.bf16 %v672_v39, %v670_v38  ;;  %v2548_v52 = vpack.c.bf16 %v351_v44, %v349_v43  ;;  %v2566_v38 = vpack.c.bf16 %v372_v33, %v370_v32  ;;  %v691_v43 = vld [vmem:[%s5810_s1 + $0x1390] sm:$0xff]  ;;  %v374_v44 = vld [vmem:[%s5810_s1 + $0x9a8] sm:$0xff] }
 0x10b   :  { %2847 = vmatprep.subr.bf16.mxu0 %v2846_v50  ;;  %v674_v50 = vld [vmem:[%s5810_s1 + $0x1308] sm:$0xff]  ;;  %v2868_v53 = vpack.c.bf16 %v671_v47, %v669_v45  ;;  %v369_v39 = vld [vmem:[%s5810_s1 + $0x980] sm:$0xff]  ;;  %v376_v45 = vld [vmem:[%s5810_s1 + $0x9b8] sm:$0xff] }
 0x10c   :  { %v696_v47 = vld [vmem:[%s5810_s1 + $0x13b8] sm:$0xff]  ;;  %v48_v32 = vld [vmem:[%s5811_s0 + $0x40] sm:$0xff]  ;;  %v58_v33 = vld [vmem:[%s5811_s0 + $0x90] sm:$0xff] }
 0x10d   :  { %2529 = vmatpush1.bf16.msra.mxu1 %v2528_v56  ;;  %v355_v56 = vld [vmem:[%s5810_s1 + $0x910] sm:$0xff] }
 0x10e   :  { %2849 = vmatpush1.bf16.msra.mxu0 %v2848_v57  ;;  %2531 = vmatprep.subr.bf16.mxu1 %v2530_v58  ;;  %v673_v57 = vld [vmem:[%s5810_s1 + $0x1300] sm:$0xff]  ;;  %v2870_v58 = vpack.c.bf16 %v676_v51, %v674_v50  ;;  %v2552_v0 = vpack.c.bf16 %v355_v56, %v353_v55  ;;  %v2570_v50 = vpack.c.bf16 %v376_v45, %v374_v44  ;;  %v695_v55 = vld [vmem:[%s5810_s1 + $0x13b0] sm:$0xff]  ;;  %v378_v56 = vld [vmem:[%s5810_s1 + $0x9c8] sm:$0xff] }
 0x10f   :  { %2851 = vmatprep.subr.bf16.mxu0 %v2850_v62  ;;  %v678_v62 = vld [vmem:[%s5810_s1 + $0x1328] sm:$0xff]  ;;  %v2872_v1 = vpack.c.bf16 %v675_v59, %v673_v57  ;;  %v373_v51 = vld [vmem:[%s5810_s1 + $0x9a0] sm:$0xff]  ;;  %v380_v57 = vld [vmem:[%s5810_s1 + $0x9d8] sm:$0xff] }
 0x110   :  { %v700_v59 = vld [vmem:[%s5810_s1 + $0x13d8] sm:$0xff]  ;;  %v714_v45 = vld [vmem:[%s5810_s1 + $0x1448] sm:$0xff] }
 0x111   :  { %2533 = vmatpush1.bf16.msra.mxu1 %v2532_v4  ;;  %v359_v4 = vld [vmem:[%s5810_s1 + $0x930] sm:$0xff]  ;;  %v844_v44 = vld [vmem:[%s5810_s1 + $0x1858] sm:$0xff] }
 0x112   :  { %2853 = vmatpush1.bf16.msra.mxu0 %v2852_v5  ;;  %2535 = vmatprep.subr.bf16.mxu1 %v2534_v6  ;;  %v677_v5 = vld [vmem:[%s5810_s1 + $0x1320] sm:$0xff]  ;;  %v2874_v6 = vpack.c.bf16 %v680_v63, %v678_v62  ;;  %v2556_v12 = vpack.c.bf16 %v359_v4, %v357_v3  ;;  %v2574_v62 = vpack.c.bf16 %v380_v57, %v378_v56  ;;  %v699_v3 = vld [vmem:[%s5810_s1 + $0x13d0] sm:$0xff]  ;;  %v382_v4 = vld [vmem:[%s5810_s1 + $0x9e8] sm:$0xff] }
 0x113   :  { %2855 = vmatprep.subr.bf16.mxu0 %v2854_v10  ;;  %v682_v10 = vld [vmem:[%s5810_s1 + $0x1348] sm:$0xff]  ;;  %v2876_v13 = vpack.c.bf16 %v679_v7, %v677_v5  ;;  %v377_v63 = vld [vmem:[%s5810_s1 + $0x9c0] sm:$0xff]  ;;  %v384_v5 = vld [vmem:[%s5810_s1 + $0x9f8] sm:$0xff] }
 0x114   :  { %v704_v7 = vld [vmem:[%s5810_s1 + $0x13f8] sm:$0xff]  ;;  %v718_v57 = vld [vmem:[%s5810_s1 + $0x1468] sm:$0xff] }
 0x115   :  { %2537 = vmatpush1.bf16.msra.mxu1 %v2536_v16  ;;  %v363_v16 = vld [vmem:[%s5810_s1 + $0x950] sm:$0xff]  ;;  %v848_v56 = vld [vmem:[%s5810_s1 + $0x1878] sm:$0xff] }
 0x116   :  { %2857 = vmatpush1.bf16.msra.mxu0 %v2856_v17  ;;  %2539 = vmatprep.subr.bf16.mxu1 %v2538_v18  ;;  %v681_v17 = vld [vmem:[%s5810_s1 + $0x1340] sm:$0xff]  ;;  %v2878_v18 = vpack.c.bf16 %v684_v11, %v682_v10  ;;  %v2560_v24 = vpack.c.bf16 %v363_v16, %v361_v15  ;;  %v2578_v10 = vpack.c.bf16 %v384_v5, %v382_v4  ;;  %v703_v15 = vld [vmem:[%s5810_s1 + $0x13f0] sm:$0xff]  ;;  %v834_v16 = vld [vmem:[%s5810_s1 + $0x1808] sm:$0xff] }
 0x117   :  { %2859 = vmatprep.subr.bf16.mxu0 %v2858_v22  ;;  %v686_v22 = vld [vmem:[%s5810_s1 + $0x1368] sm:$0xff]  ;;  %v2880_v25 = vpack.c.bf16 %v683_v19, %v681_v17  ;;  %v381_v11 = vld [vmem:[%s5810_s1 + $0x9e0] sm:$0xff]  ;;  %v836_v17 = vld [vmem:[%s5810_s1 + $0x1818] sm:$0xff] }
 0x118   :  { %v708_v19 = vld [vmem:[%s5810_s1 + $0x1418] sm:$0xff]  ;;  %v722_v4 = vld [vmem:[%s5810_s1 + $0x1488] sm:$0xff] }
 0x119   :  { %2541 = vmatpush1.bf16.msra.mxu1 %v2540_v28  ;;  %v367_v28 = vld [vmem:[%s5810_s1 + $0x970] sm:$0xff]  ;;  %v724_v5 = vld [vmem:[%s5810_s1 + $0x1498] sm:$0xff] }
 0x11a   :  { %2861 = vmatpush1.bf16.msra.mxu0 %v2860_v29  ;;  %2543 = vmatprep.subr.bf16.mxu1 %v2542_v30  ;;  %v685_v29 = vld [vmem:[%s5810_s1 + $0x1360] sm:$0xff]  ;;  %v2882_v30 = vpack.c.bf16 %v688_v23, %v686_v22  ;;  %v2564_v36 = vpack.c.bf16 %v367_v28, %v365_v27  ;;  %v3030_v22 = vpack.c.bf16 %v836_v17, %v834_v16  ;;  %v707_v27 = vld [vmem:[%s5810_s1 + $0x1410] sm:$0xff]  ;;  %v710_v28 = vld [vmem:[%s5810_s1 + $0x1428] sm:$0xff] }
 0x11b   :  { %2863 = vmatprep.subr.bf16.mxu0 %v2862_v34  ;;  %v690_v34 = vld [vmem:[%s5810_s1 + $0x1388] sm:$0xff]  ;;  %v2884_v37 = vpack.c.bf16 %v687_v31, %v685_v29  ;;  %v833_v23 = vld [vmem:[%s5810_s1 + $0x1800] sm:$0xff]  ;;  %v712_v29 = vld [vmem:[%s5810_s1 + $0x1438] sm:$0xff] }
 0x11c   :  { %v840_v31 = vld [vmem:[%s5810_s1 + $0x1838] sm:$0xff]  ;;  %v725_v16 = vld [vmem:[%s5810_s1 + $0x14a0] sm:$0xff]  ;;  %v727_v17 = vld [vmem:[%s5810_s1 + $0x14b0] sm:$0xff] }
 0x11d   :  { %2545 = vmatpush1.bf16.msra.mxu1 %v2544_v40  ;;  %v371_v40 = vld [vmem:[%s5810_s1 + $0x990] sm:$0xff] }
 0x11e   :  { %2865 = vmatpush1.bf16.msra.mxu0 %v2864_v41  ;;  %2547 = vmatprep.subr.bf16.mxu1 %v2546_v42  ;;  %v689_v41 = vld [vmem:[%s5810_s1 + $0x1380] sm:$0xff]  ;;  %v2886_v42 = vpack.c.bf16 %v692_v35, %v690_v34  ;;  %v2568_v48 = vpack.c.bf16 %v371_v40, %v369_v39  ;;  %v839_v39 = vld [vmem:[%s5810_s1 + $0x1830] sm:$0xff]  ;;  %v2906_v40 = vpack.c.bf16 %v712_v29, %v710_v28 }
 0x11f   :  { %2867 = vmatprep.subr.bf16.mxu0 %v2866_v46  ;;  %v694_v46 = vld [vmem:[%s5810_s1 + $0x13a8] sm:$0xff]  ;;  %v2888_v49 = vpack.c.bf16 %v691_v43, %v689_v41  ;;  %v709_v34 = vld [vmem:[%s5810_s1 + $0x1420] sm:$0xff]  ;;  %v735_v29 = vld [vmem:[%s5810_s1 + $0x14f0] sm:$0xff] }
 0x120   :  { %v61_v41 = vld [vmem:[%s5811_s0 + $0xa8] sm:$0xff]  ;;  %v733_v28 = vld [vmem:[%s5810_s1 + $0x14e0] sm:$0xff] }
 0x121   :  { %2549 = vmatpush1.bf16.msra.mxu1 %v2548_v52  ;;  %v375_v52 = vld [vmem:[%s5810_s1 + $0x9b0] sm:$0xff]  ;;  %v842_v43 = vld [vmem:[%s5810_s1 + $0x1848] sm:$0xff] }
 0x122   :  { %2869 = vmatpush1.bf16.msra.mxu0 %v2868_v53  ;;  %2551 = vmatprep.subr.bf16.mxu1 %v2550_v54  ;;  %v693_v53 = vld [vmem:[%s5810_s1 + $0x13a0] sm:$0xff]  ;;  %v2890_v54 = vpack.c.bf16 %v696_v47, %v694_v46  ;;  %v2572_v60 = vpack.c.bf16 %v375_v52, %v373_v51  ;;  %v716_v46 = vld [vmem:[%s5810_s1 + $0x1458] sm:$0xff]  ;;  %v843_v52 = vld [vmem:[%s5810_s1 + $0x1850] sm:$0xff] }
 0x123   :  { %2871 = vmatprep.subr.bf16.mxu0 %v2870_v58  ;;  %v698_v58 = vld [vmem:[%s5810_s1 + $0x13c8] sm:$0xff]  ;;  %v2892_v61 = vpack.c.bf16 %v695_v55, %v693_v53  ;;  %v841_v51 = vld [vmem:[%s5810_s1 + $0x1840] sm:$0xff]  ;;  %v2910_v53 = vpack.c.bf16 %v716_v46, %v714_v45 }
 0x124   :  { %v846_v55 = vld [vmem:[%s5810_s1 + $0x1868] sm:$0xff]  ;;  %v745_v46 = vld [vmem:[%s5810_s1 + $0x1540] sm:$0xff] }
 0x125   :  { %2553 = vmatpush1.bf16.msra.mxu1 %v2552_v0  ;;  %v379_v0 = vld [vmem:[%s5810_s1 + $0x9d0] sm:$0xff] }
 0x126   :  { %2873 = vmatpush1.bf16.msra.mxu0 %v2872_v1  ;;  %2555 = vmatprep.subr.bf16.mxu1 %v2554_v2  ;;  %v697_v1 = vld [vmem:[%s5810_s1 + $0x13c0] sm:$0xff]  ;;  %v2894_v2 = vpack.c.bf16 %v700_v59, %v698_v58  ;;  %v2576_v8 = vpack.c.bf16 %v379_v0, %v377_v63  ;;  %v720_v58 = vld [vmem:[%s5810_s1 + $0x1478] sm:$0xff]  ;;  %v3135_v59 = vmov 0.0   ;;  %v847_v0 = vld [vmem:[%s5810_s1 + $0x1870] sm:$0xff] }
 0x127   :  { %2875 = vmatprep.subr.bf16.mxu0 %v2874_v6  ;;  %v702_v6 = vld [vmem:[%s5810_s1 + $0x13e8] sm:$0xff]  ;;  %v2896_v9 = vpack.c.bf16 %v699_v3, %v697_v1  ;;  %v845_v63 = vld [vmem:[%s5810_s1 + $0x1860] sm:$0xff]  ;;  %v2914_v1 = vpack.c.bf16 %v720_v58, %v718_v57  ;;  %v719_v3 = vld [vmem:[%s5810_s1 + $0x1470] sm:$0xff] }
 0x128   :  { %v753_v58 = vld [vmem:[%s5810_s1 + $0x1580] sm:$0xff] }
 0x129   :  { %2557 = vmatpush1.bf16.msra.mxu1 %v2556_v12  ;;  %v383_v12 = vld [vmem:[%s5810_s1 + $0x9f0] sm:$0xff] }
 0x12a   :  { %2877 = vmatpush1.bf16.msra.mxu0 %v2876_v13  ;;  %2559 = vmatprep.subr.bf16.mxu1 %v2558_v14  ;;  %v701_v13 = vld [vmem:[%s5810_s1 + $0x13e0] sm:$0xff]  ;;  %v2898_v14 = vpack.c.bf16 %v704_v7, %v702_v6  ;;  %v2580_v20 = vpack.c.bf16 %v383_v12, %v381_v11  ;;  %v3044_v6 = vpack.c.bf16 %v847_v0, %v845_v63  ;;  %v726_v11 = vld [vmem:[%s5810_s1 + $0x14a8] sm:$0xff]  ;;  %v728_v12 = vld [vmem:[%s5810_s1 + $0x14b8] sm:$0xff] }
 0x12b   :  { %2879 = vmatprep.subr.bf16.mxu0 %v2878_v18  ;;  %v706_v18 = vld [vmem:[%s5810_s1 + $0x1408] sm:$0xff]  ;;  %v2900_v21 = vpack.c.bf16 %v703_v15, %v701_v13  ;;  %v64_v13 = vld [vmem:[%s5811_s0 + $0xc0] sm:$0xff]  ;;  %v2922_v15 = vpack.c.bf16 %v728_v12, %v726_v11 }
 0x12d   :  { %2561 = vmatpush1.bf16.msra.mxu1 %v2560_v24  ;;  %v835_v24 = vld [vmem:[%s5810_s1 + $0x1810] sm:$0xff] }
 0x12e   :  { %2881 = vmatpush1.bf16.msra.mxu0 %v2880_v25  ;;  %2563 = vmatprep.subr.bf16.mxu1 %v2562_v26  ;;  %v2902_v25 = vpack.c.bf16 %v708_v19, %v706_v18  ;;  %v705_v26 = vld [vmem:[%s5810_s1 + $0x1400] sm:$0xff]  ;;  %v3032_v35 = vpack.c.bf16 %v835_v24, %v833_v23  ;;  %v730_v18 = vld [vmem:[%s5810_s1 + $0x14c8] sm:$0xff]  ;;  %v732_v19 = vld [vmem:[%s5810_s1 + $0x14d8] sm:$0xff] }
 0x12f   :  { %2883 = vmatprep.subr.bf16.mxu0 %v2882_v30  ;;  %v838_v30 = vld [vmem:[%s5810_s1 + $0x1828] sm:$0xff]  ;;  %v731_v23 = vld [vmem:[%s5810_s1 + $0x14d0] sm:$0xff] }
 0x130   :  { %v734_v24 = vld [vmem:[%s5810_s1 + $0x14e8] sm:$0xff] }
 0x131   :  { %2565 = vmatpush1.bf16.msra.mxu1 %v2564_v36  ;;  %v2904_v36 = vpack.c.bf16 %v707_v27, %v705_v26 }
 0x132   :  { %2885 = vmatpush1.bf16.msra.mxu0 %v2884_v37  ;;  %2567 = vmatprep.subr.bf16.mxu1 %v2566_v38  ;;  %v711_v37 = vld [vmem:[%s5810_s1 + $0x1430] sm:$0xff]  ;;  %v837_v38 = vld [vmem:[%s5810_s1 + $0x1820] sm:$0xff] }
 0x133   :  { %2887 = vmatprep.subr.bf16.mxu0 %v2886_v42  ;;  %v3034_v42 = vpack.c.bf16 %v840_v31, %v838_v30  ;;  %v3036_v47 = vpack.c.bf16 %v839_v39, %v837_v38  ;;  %v738_v30 = vld [vmem:[%s5810_s1 + $0x1508] sm:$0xff]  ;;  %v740_v31 = vld [vmem:[%s5810_s1 + $0x1518] sm:$0xff] }
 0x135   :  { %2569 = vmatpush1.bf16.msra.mxu1 %v2568_v48  ;;  %v2908_v48 = vpack.c.bf16 %v711_v37, %v709_v34  ;;  %v737_v34 = vld [vmem:[%s5810_s1 + $0x1500] sm:$0xff]  ;;  %v744_v37 = vld [vmem:[%s5810_s1 + $0x1538] sm:$0xff] }
 0x136   :  { %2889 = vmatpush1.bf16.msra.mxu0 %v2888_v49  ;;  %2571 = vmatprep.subr.bf16.mxu1 %v2570_v50  ;;  %v713_v49 = vld [vmem:[%s5810_s1 + $0x1440] sm:$0xff]  ;;  %v3038_v50 = vpack.c.bf16 %v844_v44, %v842_v43  ;;  %v748_v43 = vld [vmem:[%s5810_s1 + $0x1558] sm:$0xff] }
 0x137   :  { %2891 = vmatprep.subr.bf16.mxu0 %v2890_v54  ;;  %v715_v54 = vld [vmem:[%s5810_s1 + $0x1450] sm:$0xff] }
 0x139   :  { %2573 = vmatpush1.bf16.msra.mxu1 %v2572_v60  ;;  %v3040_v60 = vpack.c.bf16 %v843_v52, %v841_v51  ;;  %v749_v52 = vld [vmem:[%s5810_s1 + $0x1560] sm:$0xff] }
 0x13a   :  { %2893 = vmatpush1.bf16.msra.mxu0 %v2892_v61  ;;  %2575 = vmatprep.subr.bf16.mxu1 %v2574_v62  ;;  %v2912_v61 = vpack.c.bf16 %v715_v54, %v713_v49  ;;  %v3042_v62 = vpack.c.bf16 %v848_v56, %v846_v55  ;;  %v752_v49 = vld [vmem:[%s5810_s1 + $0x1578] sm:$0xff]  ;;  %v754_v54 = vld [vmem:[%s5810_s1 + $0x1588] sm:$0xff] }
 0x13b   :  { %2895 = vmatprep.subr.bf16.mxu0 %v2894_v2  ;;  %v717_v2 = vld [vmem:[%s5810_s1 + $0x1460] sm:$0xff]  ;;  %v756_v55 = vld [vmem:[%s5810_s1 + $0x1598] sm:$0xff] }
 0x13c   :  { %v2916_v7 = vpack.c.bf16 %v719_v3, %v717_v2  ;;  %v2950_v57 = vpack.c.bf16 %v756_v55, %v754_v54  ;;  %v759_v2 = vld [vmem:[%s5810_s1 + $0x15b0] sm:$0xff]  ;;  %v762_v3 = vld [vmem:[%s5810_s1 + $0x15c8] sm:$0xff]  ;;  %v796_v54 = vld [vmem:[%s5810_s1 + $0x16d8] sm:$0xff] }
 0x13d   :  { %2577 = vmatpush1.bf16.msra.mxu1 %v2576_v8  ;;  %v2918_v8 = vpack.c.bf16 %v724_v5, %v722_v4  ;;  %v764_v4 = vld [vmem:[%s5810_s1 + $0x15d8] sm:$0xff] }
 0x13e   :  { %2897 = vmatpush1.bf16.msra.mxu0 %v2896_v9  ;;  %2579 = vmatprep.subr.bf16.mxu1 %v2578_v10  ;;  %v721_v9 = vld [vmem:[%s5810_s1 + $0x1480] sm:$0xff]  ;;  %v723_v10 = vld [vmem:[%s5810_s1 + $0x1490] sm:$0xff] }
 0x13f   :  { %2899 = vmatprep.subr.bf16.mxu0 %v2898_v14  ;;  %v2920_v14 = vpack.c.bf16 %v723_v10, %v721_v9  ;;  %v766_v9 = vld [vmem:[%s5810_s1 + $0x15e8] sm:$0xff]  ;;  %v768_v10 = vld [vmem:[%s5810_s1 + $0x15f8] sm:$0xff] }
 0x140   :  { %v2962_v12 = vpack.c.bf16 %v768_v10, %v766_v9  ;;  %v804_v9 = vld [vmem:[%s5810_s1 + $0x1718] sm:$0xff] }
 0x141   :  { %2581 = vmatpush1.bf16.msra.mxu1 %v2580_v20  ;;  %v2924_v20 = vpack.c.bf16 %v727_v17, %v725_v16  ;;  %v772_v16 = vld [vmem:[%s5810_s1 + $0x1618] sm:$0xff] }
 0x142   :  { %2901 = vmatpush1.bf16.msra.mxu0 %v2900_v21  ;;  %3031 = vmatprep.subr.bf16.mxu1 %v3030_v22  ;;  %v2926_v21 = vpack.c.bf16 %v732_v19, %v730_v18  ;;  %v729_v22 = vld [vmem:[%s5810_s1 + $0x14c0] sm:$0xff] }
 0x143   :  { %2903 = vmatprep.subr.bf16.mxu0 %v2902_v25  ;;  %v736_v25 = vld [vmem:[%s5810_s1 + $0x14f8] sm:$0xff]  ;;  %v2928_v26 = vpack.c.bf16 %v731_v23, %v729_v22  ;;  %v769_v19 = vld [vmem:[%s5810_s1 + $0x1600] sm:$0xff] }
 0x144   :  { %1214 = vmatmul.mubr.f32.vlgmr.msra.gmra.mrb[0].mxu1 %v48_v32  ;;  %v2930_v27 = vpack.c.bf16 %v736_v25, %v734_v24  ;;  %v2932_v32 = vpack.c.bf16 %v735_v29, %v733_v28  ;;  %v776_v22 = vld [vmem:[%s5810_s1 + $0x1638] sm:$0xff]  ;;  %v60_v23 = vld [vmem:[%s5811_s0 + $0xa0] sm:$0xff]  ;;  %v778_v29 = vld [vmem:[%s5810_s1 + $0x1648] sm:$0xff] }
 0x145   :  { %1569 = vmatmul.mubr.f32.vlgmr.msra.gmra.mrb[0].mxu0 %v58_v33  ;;  %3033 = vmatpush1.bf16.msra.mxu1 %v3032_v35  ;;  %v2934_v33 = vpack.c.bf16 %v740_v31, %v738_v30  ;;  %v739_v35 = vld [vmem:[%s5810_s1 + $0x1510] sm:$0xff]  ;;  %v63_v28 = vld [vmem:[%s5811_s0 + $0xb8] sm:$0xff] }
 0x146   :  { %2905 = vmatpush1.bf16.msra.mxu0 %v2904_v36  ;;  %1639 = vmatprep.mubr.f32.mxu0 %v61_v41  ;;  %v742_v36 = vld [vmem:[%s5810_s1 + $0x1528] sm:$0xff]  ;;  %v2936_v38 = vpack.c.bf16 %v739_v35, %v737_v34  ;;  %v743_v41 = vld [vmem:[%s5810_s1 + $0x1530] sm:$0xff]  ;;  %v780_v30 = vld [vmem:[%s5810_s1 + $0x1658] sm:$0xff] }
 0x147   :  { %2907 = vmatprep.subr.bf16.mxu0 %v2906_v40  ;;  %3035 = vmatprep.subr.bf16.mxu1 %v3034_v42  ;;  %v2938_v39 = vpack.c.bf16 %v744_v37, %v742_v36  ;;  %v741_v40 = vld [vmem:[%s5810_s1 + $0x1520] sm:$0xff]  ;;  %v746_v42 = vld [vmem:[%s5810_s1 + $0x1548] sm:$0xff]  ;;  %v779_v34 = vld [vmem:[%s5810_s1 + $0x1650] sm:$0xff] }
 0x148   :  { %1781 = vmatprep.mubr.f32.mxu1 %v3135_v59  ;;  %v2940_v44 = vpack.c.bf16 %v743_v41, %v741_v40  ;;  %v2942_v45 = vpack.c.bf16 %v748_v43, %v746_v42  ;;  %v782_v35 = vld [vmem:[%s5810_s1 + $0x1668] sm:$0xff]  ;;  %v784_v36 = vld [vmem:[%s5810_s1 + $0x1678] sm:$0xff]  ;;  %v783_v40 = vld [vmem:[%s5810_s1 + $0x1670] sm:$0xff] }
 0x149   :  { %3037 = vmatpush1.bf16.msra.mxu1 %v3036_v47  ;;  %v747_v47 = vld [vmem:[%s5810_s1 + $0x1550] sm:$0xff]  ;;  %v786_v41 = vld [vmem:[%s5810_s1 + $0x1688] sm:$0xff]  ;;  %v788_v42 = vld [vmem:[%s5810_s1 + $0x1698] sm:$0xff] }
 0x14a   :  { %2909 = vmatpush1.bf16.msra.mxu0 %v2908_v48  ;;  %3039 = vmatprep.subr.bf16.mxu1 %v3038_v50  ;;  %v750_v48 = vld [vmem:[%s5810_s1 + $0x1568] sm:$0xff]  ;;  %v2944_v50 = vpack.c.bf16 %v747_v47, %v745_v46  ;;  %v787_v46 = vld [vmem:[%s5810_s1 + $0x1690] sm:$0xff] }
 0x14b   :  { %2911 = vmatprep.subr.bf16.mxu0 %v2910_v53  ;;  %v2946_v51 = vpack.c.bf16 %v752_v49, %v750_v48  ;;  %v751_v53 = vld [vmem:[%s5810_s1 + $0x1570] sm:$0xff]  ;;  %v790_v47 = vld [vmem:[%s5810_s1 + $0x16a8] sm:$0xff]  ;;  %v792_v48 = vld [vmem:[%s5810_s1 + $0x16b8] sm:$0xff] }
 0x14c   :  { %v2948_v56 = vpack.c.bf16 %v751_v53, %v749_v52  ;;  %v791_v52 = vld [vmem:[%s5810_s1 + $0x16b0] sm:$0xff]  ;;  %v794_v53 = vld [vmem:[%s5810_s1 + $0x16c8] sm:$0xff] }
 0x14d   :  { %3041 = vmatpush1.bf16.msra.mxu1 %v3040_v60  ;;  %v755_v60 = vld [vmem:[%s5810_s1 + $0x1590] sm:$0xff] }
 0x14e   :  { %2913 = vmatpush1.bf16.msra.mxu0 %v2912_v61  ;;  %3043 = vmatprep.subr.bf16.mxu1 %v3042_v62  ;;  %v758_v61 = vld [vmem:[%s5810_s1 + $0x15a8] sm:$0xff]  ;;  %v760_v62 = vld [vmem:[%s5810_s1 + $0x15b8] sm:$0xff]  ;;  %v2952_v63 = vpack.c.bf16 %v755_v60, %v753_v58  ;;  %v795_v58 = vld [vmem:[%s5810_s1 + $0x16d0] sm:$0xff] }
 0x14f   :  { %2915 = vmatprep.subr.bf16.mxu0 %v2914_v1  ;;  %v2954_v0 = vpack.c.bf16 %v760_v62, %v758_v61  ;;  %v757_v1 = vld [vmem:[%s5810_s1 + $0x15a0] sm:$0xff]  ;;  %v798_v60 = vld [vmem:[%s5810_s1 + $0x16e8] sm:$0xff]  ;;  %v800_v61 = vld [vmem:[%s5810_s1 + $0x16f8] sm:$0xff] }
 0x150   :  { %v2956_v5 = vpack.c.bf16 %v759_v2, %v757_v1  ;;  %v1791_v1 = vld [vmem:[%s5812_s3 + $0x8] sm:$0xff]  ;;  %v1792_v2 = vld [vmem:[%s5812_s3 + $0x10] sm:$0xff] }
 0x151   :  { %3045 = vmatpush1.bf16.msra.mxu1 %v3044_v6  ;;  %v2958_v6 = vpack.c.bf16 %v764_v4, %v762_v3  ;;  %v2994_v3 = vpack.c.bf16 %v800_v61, %v798_v60  ;;  %v797_v4 = vld [vmem:[%s5810_s1 + $0x16e0] sm:$0xff] }
 0x152   :  { %2917 = vmatpush1.bf16.msra.mxu0 %v2916_v7  ;;  %v761_v7 = vld [vmem:[%s5810_s1 + $0x15c0] sm:$0xff] }
 0x153   :  { %2919 = vmatprep.subr.bf16.mxu0 %v2918_v8  ;;  %v763_v8 = vld [vmem:[%s5810_s1 + $0x15d0] sm:$0xff]  ;;  %v821_v61 = vld [vmem:[%s5810_s1 + $0x17a0] sm:$0xff] }
 0x154   :  { %2180 = vmatmul.mubr.msk.f32.vlgmr.msra.gmra.mrb[2].mxu1 %vm861_vm0, %v64_v13  ;;  %v2960_v11 = vpack.c.bf16 %v763_v8, %v761_v7  ;;  %v765_v13 = vld [vmem:[%s5810_s1 + $0x15e0] sm:$0xff]  ;;  %v1793_v7 = vld [vmem:[%s5812_s3 + $0x18] sm:$0xff]  ;;  %v802_v8 = vld [vmem:[%s5810_s1 + $0x1708] sm:$0xff] }
 0x155   :  { %v3050_v10 = vpack.c.bf16 %v1793_v7, %v1792_v2  ;;  %v825_v7 = vld [vmem:[%s5810_s1 + $0x17c0] sm:$0xff] }
 0x156   :  { %2921 = vmatpush1.bf16.msra.mxu0 %v2920_v14  ;;  %v767_v14 = vld [vmem:[%s5810_s1 + $0x15f0] sm:$0xff] }
 0x157   :  { %2923 = vmatprep.subr.bf16.mxu0 %v2922_v15  ;;  %v770_v15 = vld [vmem:[%s5810_s1 + $0x1608] sm:$0xff]  ;;  %v2964_v17 = vpack.c.bf16 %v767_v14, %v765_v13  ;;  %v2998_v14 = vpack.c.bf16 %v804_v9, %v802_v8  ;;  %v827_v8 = vld [vmem:[%s5810_s1 + $0x17d0] sm:$0xff] }
 0x158   :  { %v2966_v18 = vpack.c.bf16 %v772_v16, %v770_v15  ;;  %v1795_v13 = vld [vmem:[%s5812_s3 + $0x28] sm:$0xff]  ;;  %v801_v15 = vld [vmem:[%s5810_s1 + $0x1700] sm:$0xff]  ;;  %v803_v16 = vld [vmem:[%s5810_s1 + $0x1710] sm:$0xff] }
 0x159   :  { %v830_v9 = vld [vmem:[%s5810_s1 + $0x17e8] sm:$0xff] }
 0x15a   :  { %2925 = vmatpush1.bf16.msra.mxu0 %v2924_v20  ;;  %v771_v20 = vld [vmem:[%s5810_s1 + $0x1610] sm:$0xff] }
 0x15b   :  { %2927 = vmatprep.subr.bf16.mxu0 %v2926_v21  ;;  %v774_v21 = vld [vmem:[%s5810_s1 + $0x1628] sm:$0xff]  ;;  %v2968_v24 = vpack.c.bf16 %v771_v20, %v769_v19  ;;  %v3000_v20 = vpack.c.bf16 %v803_v16, %v801_v15  ;;  %v829_v16 = vld [vmem:[%s5810_s1 + $0x17e0] sm:$0xff] }
 0x15c   :  { %v2970_v25 = vpack.c.bf16 %v776_v22, %v774_v21  ;;  %v1796_v21 = vld [vmem:[%s5812_s3 + $0x30] sm:$0xff]  ;;  %v1797_v22 = vld [vmem:[%s5812_s3 + $0x38] sm:$0xff] }
 0x15e   :  { %2929 = vmatpush1.bf16.msra.mxu0 %v2928_v26  ;;  %v773_v26 = vld [vmem:[%s5810_s1 + $0x1620] sm:$0xff] }
 0x15f   :  { %2931 = vmatprep.subr.bf16.mxu0 %v2930_v27  ;;  %v775_v27 = vld [vmem:[%s5810_s1 + $0x1630] sm:$0xff] }
 0x160   :  { %v2972_v31 = vpack.c.bf16 %v775_v27, %v773_v26  ;;  %v810_v26 = vld [vmem:[%s5810_s1 + $0x1748] sm:$0xff]  ;;  %v812_v27 = vld [vmem:[%s5810_s1 + $0x1758] sm:$0xff] }
 0x162   :  { %2933 = vmatpush1.bf16.msra.mxu0 %v2932_v32  ;;  %v2974_v32 = vpack.c.bf16 %v780_v30, %v778_v29  ;;  %v1798_v30 = vld [vmem:[%s5812_s3 + $0x40] sm:$0xff] }
 0x163   :  { %2935 = vmatprep.subr.bf16.mxu0 %v2934_v33  ;;  %v777_v33 = vld [vmem:[%s5810_s1 + $0x1640] sm:$0xff] }
 0x164   :  { %v2976_v37 = vpack.c.bf16 %v779_v34, %v777_v33  ;;  %v809_v33 = vld [vmem:[%s5810_s1 + $0x1740] sm:$0xff]  ;;  %v811_v34 = vld [vmem:[%s5810_s1 + $0x1750] sm:$0xff] }
 0x166   :  { %2937 = vmatpush1.bf16.msra.mxu0 %v2936_v38  ;;  %v2978_v38 = vpack.c.bf16 %v784_v36, %v782_v35  ;;  %v814_v35 = vld [vmem:[%s5810_s1 + $0x1768] sm:$0xff]  ;;  %v816_v36 = vld [vmem:[%s5810_s1 + $0x1778] sm:$0xff] }
 0x167   :  { %2939 = vmatprep.subr.bf16.mxu0 %v2938_v39  ;;  %v781_v39 = vld [vmem:[%s5810_s1 + $0x1660] sm:$0xff] }
 0x168   :  { %v2980_v43 = vpack.c.bf16 %v783_v40, %v781_v39  ;;  %v1800_v39 = vld [vmem:[%s5812_s3 + $0x50] sm:$0xff]  ;;  %v1801_v40 = vld [vmem:[%s5812_s3 + $0x58] sm:$0xff] }
 0x16a   :  { %2941 = vmatpush1.bf16.msra.mxu0 %v2940_v44  ;;  %v2982_v44 = vpack.c.bf16 %v788_v42, %v786_v41  ;;  %v3010_v41 = vpack.c.bf16 %v816_v36, %v814_v35  ;;  %v813_v42 = vld [vmem:[%s5810_s1 + $0x1760] sm:$0xff] }
 0x16b   :  { %2943 = vmatprep.subr.bf16.mxu0 %v2942_v45  ;;  %v785_v45 = vld [vmem:[%s5810_s1 + $0x1680] sm:$0xff] }
 0x16c   :  { %v2984_v49 = vpack.c.bf16 %v787_v46, %v785_v45  ;;  %v820_v45 = vld [vmem:[%s5810_s1 + $0x1798] sm:$0xff]  ;;  %v3062_v46 = vpack.c.bf16 %v1801_v40, %v1800_v39  ;;  %v849_v35 = vld [vmem:[%s5813_s2] sm:$0x3] }
 0x16e   :  { %2945 = vmatpush1.bf16.msra.mxu0 %v2944_v50  ;;  %v2986_v50 = vpack.c.bf16 %v792_v48, %v790_v47  ;;  %v1802_v48 = vld [vmem:[%s5812_s3 + $0x60] sm:$0xff] }
 0x16f   :  { %2947 = vmatprep.subr.bf16.mxu0 %v2946_v51  ;;  %v789_v51 = vld [vmem:[%s5810_s1 + $0x16a0] sm:$0xff] }
 0x170   :  { %v2988_v55 = vpack.c.bf16 %v791_v52, %v789_v51  ;;  %v817_v51 = vld [vmem:[%s5810_s1 + $0x1780] sm:$0xff]  ;;  %v819_v52 = vld [vmem:[%s5810_s1 + $0x1790] sm:$0xff] }
 0x172   :  { %2949 = vmatpush1.bf16.msra.mxu0 %v2948_v56  ;;  %v2990_v56 = vpack.c.bf16 %v796_v54, %v794_v53  ;;  %v822_v53 = vld [vmem:[%s5810_s1 + $0x17a8] sm:$0xff]  ;;  %v824_v54 = vld [vmem:[%s5810_s1 + $0x17b8] sm:$0xff] }
 0x173   :  { %2951 = vmatprep.subr.bf16.mxu0 %v2950_v57  ;;  %v793_v57 = vld [vmem:[%s5810_s1 + $0x16c0] sm:$0xff]  ;;  %v3018_v60 = vpack.c.bf16 %v824_v54, %v822_v53  ;;  %v1904_v53 = vld [vmem:[%s5814_s5 + $0x18] sm:$0xff] }
 0x174   :  { %v2992_v62 = vpack.c.bf16 %v795_v58, %v793_v57  ;;  %v1804_v57 = vld [vmem:[%s5812_s3 + $0x70] sm:$0xff]  ;;  %v1805_v58 = vld [vmem:[%s5812_s3 + $0x78] sm:$0xff] }
 0x175   :  { %v3068_v2 = vpack.c.bf16 %v1805_v58, %v1804_v57  ;;  %v1907_v58 = vld [vmem:[%s5814_s5 + $0x30] sm:$0xff] }
 0x176   :  { %2953 = vmatpush1.bf16.msra.mxu0 %v2952_v63  ;;  %v3136_v63 = vmov 0.0|0.0  }
 0x177   :  { %2955 = vmatprep.subr.bf16.mxu0 %v2954_v0  ;;  %3046 = vmatprep.subr.bf16.mxu1 %v3136_v63  ;;  %v1790_v0 = vld [vmem:[%s5812_s3] sm:$0xff] }
 0x17a   :  { %2957 = vmatpush1.bf16.msra.mxu0 %v2956_v5  ;;  %v799_v5 = vld [vmem:[%s5810_s1 + $0x16f0] sm:$0xff] }
 0x17b   :  { %2959 = vmatprep.subr.bf16.mxu0 %v2958_v6  ;;  %v3047_v6 = vpack.c.bf16 %v1791_v1, %v1790_v0  ;;  %v826_v0 = vld [vmem:[%s5810_s1 + $0x17c8] sm:$0xff]  ;;  %v828_v1 = vld [vmem:[%s5810_s1 + $0x17d8] sm:$0xff] }
 0x17d   :  { %3048 = vmatpush1.bf16.msra.mxu1 %v3047_v6  ;;  %v3022_v6 = vpack.c.bf16 %v828_v1, %v826_v0  ;;  %v1910_v0 = vld [vmem:[%s5814_s5 + $0x48] sm:$0xff] }
 0x17e   :  { %2961 = vmatpush1.bf16.msra.mxu0 %v2960_v11  ;;  %v2996_v11 = vpack.c.bf16 %v799_v5, %v797_v4  ;;  %3049 = vmatprep.subr.bf16.mxu1 %v3136_v63  ;;  %v1806_v4 = vld [vmem:[%s5812_s3 + $0x80] sm:$0xff]  ;;  %v1807_v5 = vld [vmem:[%s5812_s3 + $0x88] sm:$0xff] }
 0x17f   :  { %2963 = vmatprep.subr.bf16.mxu0 %v2962_v12  ;;  %v1794_v12 = vld [vmem:[%s5812_s3 + $0x20] sm:$0xff] }
 0x180   :  { %v3053_v19 = vpack.c.bf16 %v1795_v13, %v1794_v12  ;;  %v3024_v12 = vpack.c.bf16 %v827_v8, %v825_v7  ;;  %v1808_v13 = vld [vmem:[%s5812_s3 + $0x90] sm:$0xff]  ;;  %v1999_v7 = vld [vmem:[%s5816_s7] sm:$0xff]  ;;  %v2000_v8 = vld [vmem:[%s5816_s7 + $0x8] sm:$0xff] }
 0x181   :  { %3051 = vmatpush1.bf16.msra.mxu1 %v3050_v10  ;;  %v832_v10 = vld [vmem:[%s5810_s1 + $0x17f8] sm:$0xff] }
 0x182   :  { %2965 = vmatpush1.bf16.msra.mxu0 %v2964_v17  ;;  %v806_v17 = vld [vmem:[%s5810_s1 + $0x1728] sm:$0xff]  ;;  %3052 = vmatprep.subr.bf16.mxu1 %v3136_v63  ;;  %v3026_v15 = vpack.c.bf16 %v832_v10, %v830_v9 }
 0x183   :  { %2967 = vmatprep.subr.bf16.mxu0 %v2966_v18  ;;  %v808_v18 = vld [vmem:[%s5810_s1 + $0x1738] sm:$0xff] }
 0x185   :  { %1640 = vmatmul.mubr.f32.vlgmr.msra.gmra.mrb[0].mxu0 %v60_v23  ;;  %v3002_v23 = vpack.c.bf16 %v808_v18, %v806_v17  ;;  %3054 = vmatpush1.bf16.msra.mxu1 %v3053_v19  ;;  %v831_v17 = vld [vmem:[%s5810_s1 + $0x17f0] sm:$0xff] }
 0x186   :  { %2969 = vmatpush1.bf16.msra.mxu0 %v2968_v24  ;;  %1710 = vmatprep.mubr.f32.mxu0 %v63_v28  ;;  %v805_v24 = vld [vmem:[%s5810_s1 + $0x1720] sm:$0xff]  ;;  %v3056_v28 = vpack.c.bf16 %v1797_v22, %v1796_v21  ;;  %v3028_v19 = vpack.c.bf16 %v831_v17, %v829_v16  ;;  %v1811_v22 = vld [vmem:[%s5812_s3 + $0xa8] sm:$0xff] }
 0x187   :  { %2971 = vmatprep.subr.bf16.mxu0 %v2970_v25  ;;  %v807_v25 = vld [vmem:[%s5810_s1 + $0x1730] sm:$0xff]  ;;  %3055 = vmatprep.subr.bf16.mxu1 %v3136_v63  ;;  %v1810_v21 = vld [vmem:[%s5812_s3 + $0xa0] sm:$0xff] }
 0x188   :  { %v3004_v29 = vpack.c.bf16 %v807_v25, %v805_v24  ;;  %v2003_v17 = vld [vmem:[%s5816_s7 + $0x20] sm:$0xf] }
 0x189   :  { %3057 = vmatpush1.bf16.msra.mxu1 %v3056_v28 }
 0x18a   :  { %2973 = vmatpush1.bf16.msra.mxu0 %v2972_v31  ;;  %v1799_v31 = vld [vmem:[%s5812_s3 + $0x48] sm:$0xff]  ;;  %3058 = vmatprep.subr.bf16.mxu1 %v3136_v63 }
 0x18b   :  { %2975 = vmatprep.subr.bf16.mxu0 %v2974_v32  ;;  %v3006_v32 = vpack.c.bf16 %v812_v27, %v810_v26  ;;  %v1812_v26 = vld [vmem:[%s5812_s3 + $0xb0] sm:$0xff]  ;;  %v1813_v27 = vld [vmem:[%s5812_s3 + $0xb8] sm:$0xff] }
 0x18c   :  { %v3080_v28 = vpack.c.bf16 %v1813_v27, %v1812_v26 }
 0x18e   :  { %2977 = vmatpush1.bf16.msra.mxu0 %v2976_v37  ;;  %v3059_v37 = vpack.c.bf16 %v1799_v31, %v1798_v30 }
 0x18f   :  { %2979 = vmatprep.subr.bf16.mxu0 %v2978_v38  ;;  %v3008_v38 = vpack.c.bf16 %v811_v34, %v809_v33 }
 0x190   :  { %3060 = vmatpush1.bf16.msra.mxu1 %v3059_v37 }
 0x191   :  { %3061 = vmatprep.subr.bf16.mxu1 %v3136_v63 }
 0x192   :  { %2981 = vmatpush1.bf16.msra.mxu0 %v2980_v43  ;;  %v815_v43 = vld [vmem:[%s5810_s1 + $0x1770] sm:$0xff] }
 0x193   :  { %2983 = vmatprep.subr.bf16.mxu0 %v2982_v44  ;;  %v818_v44 = vld [vmem:[%s5810_s1 + $0x1788] sm:$0xff]  ;;  %v3012_v47 = vpack.c.bf16 %v815_v43, %v813_v42 }
 0x194   :  { %3063 = vmatpush1.bf16.msra.mxu1 %v3062_v46  ;;  %v1901_v46 = vld [vmem:[%s5814_s5] sm:$0xff] }
 0x195   :  { %3064 = vmatprep.subr.bf16.mxu1 %v3136_v63 }
 0x196   :  { %2985 = vmatpush1.bf16.msra.mxu0 %v2984_v49  ;;  %v1803_v49 = vld [vmem:[%s5812_s3 + $0x68] sm:$0xff] }
 0x197   :  { %2987 = vmatprep.subr.bf16.mxu0 %v2986_v50  ;;  %v3014_v50 = vpack.c.bf16 %v820_v45, %v818_v44 }
 0x19a   :  { %2989 = vmatpush1.bf16.msra.mxu0 %v2988_v55  ;;  %v3065_v55 = vpack.c.bf16 %v1803_v49, %v1802_v48 }
 0x19b   :  { %2991 = vmatprep.subr.bf16.mxu0 %v2990_v56  ;;  %v3016_v56 = vpack.c.bf16 %v819_v52, %v817_v51  ;;  %v1903_v52 = vld [vmem:[%s5814_s5 + $0x10] sm:$0xff] }
 0x19c   :  { %3066 = vmatpush1.bf16.msra.mxu1 %v3065_v55  ;;  %v3086_v54 = vpack.c.bf16 %v1904_v53, %v1903_v52  ;;  %v1905_v55 = vld [vmem:[%s5814_s5 + $0x20] sm:$0xff] }
 0x19d   :  { %3067 = vmatprep.subr.bf16.mxu1 %v3136_v63 }
 0x19e   :  { %2993 = vmatpush1.bf16.msra.mxu0 %v2992_v62  ;;  %v823_v62 = vld [vmem:[%s5810_s1 + $0x17b0] sm:$0xff] }
 0x19f   :  { %2995 = vmatprep.subr.bf16.mxu0 %v2994_v3  ;;  %v3020_v3 = vpack.c.bf16 %v823_v62, %v821_v61  ;;  %v1909_v62 = vld [vmem:[%s5814_s5 + $0x40] sm:$0xff] }
 0x1a0   :  { %3069 = vmatpush1.bf16.msra.mxu1 %v3068_v2  ;;  %v3095_v1 = vpack.c.bf16 %v1910_v0, %v1909_v62  ;;  %v1911_v2 = vld [vmem:[%s5814_s5 + $0x50] sm:$0xff] }
 0x1a1   :  { %3070 = vmatprep.subr.bf16.mxu1 %v3136_v63 }
 0x1a2   :  { %2997 = vmatpush1.bf16.msra.mxu0 %v2996_v11  ;;  %v3071_v11 = vpack.c.bf16 %v1807_v5, %v1806_v4  ;;  %v1913_v5 = vld [vmem:[%s5814_s5 + $0x60] sm:$0xf] }
 0x1a3   :  { %2999 = vmatprep.subr.bf16.mxu0 %v2998_v14  ;;  %v1809_v14 = vld [vmem:[%s5812_s3 + $0x98] sm:$0xff] }
 0x1a4   :  { %3072 = vmatpush1.bf16.msra.mxu1 %v3071_v11  ;;  %v3074_v18 = vpack.c.bf16 %v1809_v14, %v1808_v13  ;;  %v2001_v14 = vld [vmem:[%s5816_s7 + $0x10] sm:$0xff] }
 0x1a5   :  { %3073 = vmatprep.subr.bf16.mxu1 %v3136_v63 }
 0x1a6   :  { %3001 = vmatpush1.bf16.msra.mxu0 %v3000_v20  ;;  %v62_v20 = vld [vmem:[%s5811_s0 + $0xb0] sm:$0xff] }
 0x1a7   :  { %3003 = vmatprep.subr.bf16.mxu0 %v3002_v23  ;;  %v3077_v23 = vpack.c.bf16 %v1811_v22, %v1810_v21  ;;  %v2089_v22 = vld [vmem:[%s5818_s9] sm:$0xf] }
 0x1a8   :  { %3075 = vmatpush1.bf16.msra.mxu1 %v3074_v18 }
 0x1a9   :  { %3076 = vmatprep.subr.bf16.mxu1 %v3136_v63 }
 0x1aa   :  { %3005 = vmatpush1.bf16.msra.mxu0 %v3004_v29  ;;  %v1814_v29 = vld [vmem:[%s5812_s3 + $0xc0] sm:$0xf] }
 0x1ab   :  { %3007 = vmatprep.subr.bf16.mxu0 %v3006_v32  ;;  %v851_v32 = vlaneseq }
 0x1ac   :  { %3078 = vmatpush1.bf16.msra.mxu1 %v3077_v23  ;;  %v16_v23 = vstv %s5819_s10 }
 0x1ad   :  { %3079 = vmatprep.subr.bf16.mxu1 %v3136_v63  ;;  %v852_v33 = vshrl.u32 %v851_v32, 7  ;;  %17 = vst [vmem:[#allocation2] sm:$0x1] %v16_v23 }
 0x1ae   :  { %3009 = vmatpush1.bf16.msra.mxu0 %v3008_v38 }
 0x1af   :  { %3011 = vmatprep.subr.bf16.mxu0 %v3010_v41  ;;  %v853_v34 = vsub.s32 0, %v852_v33  ;;  %v857_v36 = vsub.s32 1, %v852_v33 }
 0x1b0   :  { %3081 = vmatpush1.bf16.msra.mxu1 %v3080_v28 }
 0x1b1   :  { %1878 = vmatprep.subr.mxu1 %v3135_v59  ;;  %v854_v37 = vrot.slane %v849_v35, %v853_v34  ;;  %v858_v38 = vrot.slane %v849_v35, %v857_v36 }
 0x1b2   :  { %3013 = vmatpush1.bf16.msra.mxu0 %v3012_v47  ;;  %v1902_v47 = vld [vmem:[%s5814_s5 + $0x8] sm:$0xff] }
 0x1b3   :  { %3015 = vmatprep.subr.bf16.mxu0 %v3014_v50  ;;  %v3083_v50 = vpack.c.bf16 %v1902_v47, %v1901_v46 }
 0x1b4   :  { %2182 = vmatpush1.msk.msra.mxu1 %vm1826_vm1, %v1814_v29  ;;  %v2190_v28 = vld [vmem:[#allocation2] ss:$0 sm:$0xff] }
 0x1b5   :  { %3082 = vmatprep.subr.bf16.mxu1 %v3136_v63 }
 0x1b6   :  { %3017 = vmatpush1.bf16.msra.mxu0 %v3016_v56  ;;  %v1906_v56 = vld [vmem:[%s5814_s5 + $0x28] sm:$0xff] }
 0x1b7   :  { %3019 = vmatprep.subr.bf16.mxu0 %v3018_v60  ;;  %v3089_v57 = vpack.c.bf16 %v1906_v56, %v1905_v55  ;;  %v1908_v60 = vld [vmem:[%s5814_s5 + $0x38] sm:$0xff] }
 0x1b8   :  { %v3092_v61 = vpack.c.bf16 %v1908_v60, %v1907_v58 }
 0x1ba   :  { %3021 = vmatpush1.bf16.msra.mxu0 %v3020_v3  ;;  %v1912_v3 = vld [vmem:[%s5814_s5 + $0x58] sm:$0xff] }
 0x1bb   :  { %3023 = vmatprep.subr.bf16.mxu0 %v3022_v6  ;;  %v3098_v4 = vpack.c.bf16 %v1912_v3, %v1911_v2  ;;  %v2181_v6 = vld [vmem:[%s5815_s4] ss:$0 sm:$0xff] }
 0x1be   :  { %3025 = vmatpush1.bf16.msra.mxu0 %v3024_v12  ;;  %v3101_v12 = vpack.c.bf16 %v2000_v8, %v1999_v7 }
 0x1bf   :  { %3027 = vmatprep.subr.bf16.mxu0 %v3026_v15  ;;  %v2002_v15 = vld [vmem:[%s5816_s7 + $0x18] sm:$0xff] }
 0x1c0   :  { %v3104_v16 = vpack.c.bf16 %v2002_v15, %v2001_v14 }
 0x1c2   :  { %3029 = vmatpush1.bf16.msra.mxu0 %v3028_v19 }
 0x1c5   :  { %1711 = vmatmul.mubr.f32.vlgmr.msra.gmra.mrb[0].mxu0 %v62_v20 }
 0x217   :  { %v1215_v24 = vpop.f32.mrb[0].mxu1 }
 0x218   :  { %v1217_v25 = vpop.f32.mrb[1].mxu1  ;;  %v3106_v39 = vadd.f32 %v1215_v24, %v854_v37  ;;  %v2187_v24 = vld [vmem:[%s5820_s8] ss:$0 sm:$0xff] }
 0x219   :  { %v3109_v40 = vadd.f32 %v1217_v25, %v858_v38 }
 0x227   :  { %v1783_v30 = vpop.f32.mrb[2].mxu1 }
 0x228   :  { %v1785_v31 = vpop.f32.mrb[3].mxu1 }
 0x298   :  { %v1712_v41 = vpop.f32.mrb[0].mxu0 }
 0x299   :  { %v3107_v42 = vadd.f32 %v3106_v39, %v1712_v41  ;;  %v1714_v43 = vpop.f32.mrb[1].mxu0 }
 0x29a   :  { %v3110_v44 = vadd.f32 %v3109_v40, %v1714_v43 }
 0x29b   :  { %v3108_v45 = vadd.f32 %v3107_v42, %v1783_v30 }
 0x29c   :  { %v3111_v48 = vadd.f32 %v3110_v44, %v1785_v31 }
 0x29d   :  { %v1788_v51 = vmax.f32 %v3108_v45, 0.0 }
 0x29e   :  { %v1789_v49 = vmax.f32 %v3111_v48, 0.0 }
 0x2a0   :  { %2183 = vmatprep.mubr.msk.f32.mxu1 %vm1822_vm2, %v1789_v49 }
 0x2a1   :  { %1895 = vmatmul.mubr.f32.vlgmr.msra.gmra.mrb[4].mxu1 %v1788_v51 }
 0x2a2   :  { %3084 = vmatpush3.bf16.msra.mxu1 %v3083_v50  ;;  %2241 = vmatprep.mubr.msk.f32.mxu1 %vm3137_vm3, %v3135_v59 }
 0x2a3   :  { %3085 = vmatprep.subr.bf16.mxu1 %v3136_v63 }
 0x2a6   :  { %3087 = vmatpush3.bf16.msra.mxu1 %v3086_v54 }
 0x2a7   :  { %3088 = vmatprep.subr.bf16.mxu1 %v3136_v63 }
 0x2aa   :  { %3090 = vmatpush3.bf16.msra.mxu1 %v3089_v57 }
 0x2ab   :  { %3091 = vmatprep.subr.bf16.mxu1 %v3136_v63 }
 0x2ae   :  { %3093 = vmatpush3.bf16.msra.mxu1 %v3092_v61 }
 0x2af   :  { %3094 = vmatprep.subr.bf16.mxu1 %v3136_v63 }
 0x2b2   :  { %3096 = vmatpush3.bf16.msra.mxu1 %v3095_v1 }
 0x2b3   :  { %3097 = vmatprep.subr.bf16.mxu1 %v3136_v63 }
 0x2b6   :  { %3099 = vmatpush3.bf16.msra.mxu1 %v3098_v4 }
 0x2b7   :  { %2239 = vmatprep.subr.mxu1 %v3135_v59 }
 0x2ba   :  { %2240 = vmatpush3.msk.msra.mxu1 %vm1826_vm1, %v1913_v5 }
 0x2bb   :  { %3100 = vmatprep.subr.bf16.mxu1 %v3136_v63 }
 0x374   :  { %v1896_v9 = vpop.f32.mrb[4].mxu1 }
 0x375   :  { %v1897_v10 = vadd.f32 %v2181_v6, %v1896_v9  ;;  %v1898_v11 = vpop.f32.mrb[5].mxu1 }
 0x377   :  { %v1900_v13 = vmax.f32 %v1897_v10, 0.0 }
 0x379   :  { %2242 = vmatmul.mubr.msk.f32.vlgmr.msra.gmra.mrb[6].mxu1 %vm1921_vm4, %v1900_v13 }
 0x37a   :  { %3102 = vmatpush3.bf16.msra.mxu1 %v3101_v12  ;;  %2254 = vmatprep.mubr.msk.f32.mxu1 %vm3137_vm3, %v3135_v59 }
 0x37b   :  { %3103 = vmatprep.subr.bf16.mxu1 %v3136_v63  ;;  %v2184_v63 = vld [vmem:[%s5817_s6] ss:$0 sm:$0xff] }
 0x37e   :  { %3105 = vmatpush3.bf16.msra.mxu1 %v3104_v16 }
 0x37f   :  { %2252 = vmatprep.subr.mxu1 %v3135_v59 }
 0x382   :  { %2253 = vmatpush3.msk.msra.mxu1 %vm1826_vm1, %v2003_v17 }
 0x383   :  { %2257 = vmatprep.subr.mxu1 %v3135_v59 }
 0x44c   :  { %v1994_v18 = vpop.f32.mrb[6].mxu1 }
 0x44d   :  { %v1995_v19 = vadd.f32 %v2184_v63, %v1994_v18  ;;  %v2243_v20 = vpop.f32.mrb[7].mxu1 }
 0x44f   :  { %v1998_v21 = vmax.f32 %v1995_v19, 0.0 }
 0x451   :  { %2255 = vmatmul.mubr.msk.f32.vlgmr.msra.gmra.mrb[8].mxu1 %vm2011_vm5, %v1998_v21 }
 0x452   :  { %2259 = vmatprep.mubr.msk.f32.mxu1 %vm3137_vm3, %v3135_v59  ;;  %2258 = vmatpush3.msk.msra.mxu1 %vm1826_vm1, %v2089_v22 }
 0x524   :  { %v2084_v25 = vpop.f32.mrb[8].mxu1 }
 0x525   :  { %v2085_v26 = vadd.f32 %v2187_v24, %v2084_v25  ;;  %v2256_v27 = vpop.f32.mrb[9].mxu1 }
 0x527   :  { %v2088_v59 = vmax.f32 %v2085_v26, 0.0 }
 0x529   :  { %2260 = vmatmul.mubr.msk.f32.vlgmr.msra.gmra.mrb[10].mxu1 %vm2097_vm6, %v2088_v59 }
 0x5fc   :  { %v2170_v29 = vpop.f32.mrb[10].mxu1 }
 0x5fd   :  { %v2171_v30 = vadd.f32 %v2190_v28, %v2170_v29  ;;  %v2261_v31 = vpop.f32.mrb[11].mxu1 }
 0x5ff   :  { %2175 = vst.msk [vmem:[%s5821_s11] sm:$0xff] %vm2174_vm7, %v2171_v30 }

</bundles_post_ra>
